<compile_context>
chip_gen: v7x
topology: tpu7x:2x2x1
jax: 0.10.0
libtpu: 0.0.40
codegen_flags: <defaults>
</compile_context>

<pallas_src>
import functools

import jax
import jax.numpy as jnp
from jax.experimental import pallas as pl
from jax.experimental.pallas import tpu as pltpu


# ----------------------------------------------------------------------------
# small helpers
# ----------------------------------------------------------------------------

def _pick(dim, candidates):
    """Largest candidate tile that divides `dim`, else the full dim (valid BlockSpec)."""
    for c in candidates:
        if dim % c == 0:
            return c
    return dim


def _pick_tk(K, group_size):
    """Largest multiple of 8*group_size <= 2048 that divides K (groups-per-tile multiple of 8)."""
    step = 8 * group_size
    cand = (2048 // step) * step if step <= 2048 else 0
    while cand >= step:
        if K % cand == 0:
            return cand
        cand -= step
    # TODO(synk): shapes like K=11008/gs=128 have no 8-group-aligned divisor; fall back to full K.
    return K


def _vmem_limit(tile_bytes_est):
    """Scoped-VMEM limit derived from the real tile footprint (fits v5e/v6e 128MiB and v7x 64MiB)."""
    return int(min(max(2 * tile_bytes_est + (8 << 20), 32 << 20), 60 << 20))


# ----------------------------------------------------------------------------
# GPTQ weight (re)packing -- done once at parameter-load time, not per call
# ----------------------------------------------------------------------------

def unpack_qweight(qw_std):
    """AutoGPTQ qweight (K//8, N) int32 -> integer codes (K, N) in natural k order."""
    K8, N = qw_std.shape
    shifts = jnp.arange(8, dtype=jnp.int32) * 4
    q = (qw_std[:, None, :] >> shifts[None, :, None]) & 0xF      # (K8, 8, N)
    return q.reshape(K8 * 8, N)


def repack_qweight_for_kernel(qw_std, group_size):
    """Repack so that the in-kernel plane-major-within-group unpack yields natural k order.

    Kernel expectation: plane s of packed row (g*rpg + r) == Q[g*gs + s*rpg + r].
    """
    qint = unpack_qweight(qw_std)
    K, N = qint.shape
    rpg = group_size // 8
    G = K // group_size
    qr = qint.reshape(G, 8, rpg, N)          # qr[g, s, r] = Q[g*gs + s*rpg + r]
    qw = jnp.zeros((K // 8, N), jnp.int32)
    for s in range(8):
        qw = qw | (qr[:, s, :, :].reshape(K // 8, N) << (4 * s))
    return qw


# ----------------------------------------------------------------------------
# Pallas kernels
# ----------------------------------------------------------------------------

def _dequant_tile(qw_ref, sc_ref, sz_ref, gpt, rpg):
    """Dequantize one (tk, tn) weight tile to bf16 (natural k order; weights repacked at load).

    W[k, n] = scales[g, n] * q[k, n] - sz[g, n]   with   sz = scales * (zeros + 1),
    computed in f32 and rounded to bf16 once.
    """
    groups = []
    for g in range(gpt):                                    # static unroll, gpt is small
        qg = qw_ref[g * rpg:(g + 1) * rpg, :]               # (rpg, tn) int32
        # (& 0xF discards the sign-extension bits of the arithmetic shift for s == 7.)
        wq = jnp.concatenate(
            [jnp.bitwise_and(jnp.right_shift(qg, 4 * s), 0xF) for s in range(8)],
            axis=0).astype(jnp.float32)                     # (gs, tn), natural k order
        wg = wq * sc_ref[g:g + 1, :] - sz_ref[g:g + 1, :]   # full dequant, f32
        groups.append(wg.astype(jnp.bfloat16))
    return jnp.concatenate(groups, axis=0) if gpt > 1 else groups[0]   # (tk, tn) bf16


def _prologue_plain(x_ref):
    return x_ref[...]                                       # already bf16


def _prologue_swiglu(g_ref, u_ref):
    g = g_ref[...].astype(jnp.float32)
    u = u_ref[...].astype(jnp.float32)
    return (g * jax.nn.sigmoid(g) * u).astype(jnp.bfloat16)


def make_gptq_kernel(group_size, prologue, n_act, add_residual):
    """GPTQ matmul kernel: one big MXU dot per K tile, f32 VMEM accumulator across the K grid axis.

    refs = (act..., qweight, scales, sz, [residual], out, acc_scratch)
    """
    def kernel(*refs):
        act_refs = refs[:n_act]
        qw_ref, sc_ref, sz_ref = refs[n_act:n_act + 3]
        resid_ref = refs[-3] if add_residual else None
        out_ref = refs[-2]
        acc_ref = refs[-1]

        @pl.when(pl.program_id(2) == 0)
        def _():
            acc_ref[...] = jnp.zeros_like(acc_ref)

        x = prologue(*act_refs)                             # (tm, tk) bf16
        tk = x.shape[1]
        gpt = tk // group_size
        rpg = group_size // 8
        wb = _dequant_tile(qw_ref, sc_ref, sz_ref, gpt, rpg)            # (tk, tn) bf16
        acc_ref[...] += jnp.dot(x, wb, preferred_element_type=jnp.float32)  # ONE MXU dot / K tile

        @pl.when(pl.program_id(2) == pl.num_programs(2) - 1)
        def _():
            r = acc_ref[...]
            if add_residual:
                r = r + resid_ref[...]                      # fused residual-add epilogue
            out_ref[...] = r.astype(out_ref.dtype)
    return kernel


def rmsnorm_kernel(x_ref, w_ref, o_ref):
    # TODO(synk): could be fused as a prologue of the following GPTQ matmul (per-row rsqrt(var)).
    x = x_ref[...].astype(jnp.float32)
    var = jnp.mean(x * x, axis=-1, keepdims=True)
    o_ref[...] = (x * jax.lax.rsqrt(var + 1e-6) * w_ref[...]).astype(o_ref.dtype)


def flash_attn_kernel(q_ref, k_ref, v_ref, o_ref, m_sc, l_sc, acc_sc, *, scale):
    """Causal flash attention for one (batch*head, q-tile, kv-tile) grid point."""
    qi = pl.program_id(1)
    ki = pl.program_id(2)
    tq = q_ref.shape[1]
    tkv = k_ref.shape[1]

    @pl.when(ki == 0)
    def _():
        m_sc[...] = jnp.full_like(m_sc, -jnp.inf)
        l_sc[...] = jnp.zeros_like(l_sc)
        acc_sc[...] = jnp.zeros_like(acc_sc)

    q_start = qi * tq
    k_start = ki * tkv

    @pl.when(k_start <= q_start + tq - 1)          # skip fully-masked (future) KV tiles
    def _():
        q = (q_ref[0].astype(jnp.float32) * scale).astype(jnp.bfloat16)
        s = jax.lax.dot_general(q, k_ref[0], (((1,), (1,)), ((), ())),
                                preferred_element_type=jnp.float32)        # (tq, tkv)
        row = q_start + jax.lax.broadcasted_iota(jnp.int32, (tq, tkv), 0)
        col = k_start + jax.lax.broadcasted_iota(jnp.int32, (tq, tkv), 1)
        s = jnp.where(col <= row, s, -1e30)                                # causal mask
        m_new = jnp.maximum(m_sc[...], jnp.max(s, axis=-1, keepdims=True))
        alpha = jnp.exp(m_sc[...] - m_new)
        p = jnp.exp(s - m_new)
        l_sc[...] = alpha * l_sc[...] + jnp.sum(p, axis=-1, keepdims=True)
        acc_sc[...] = alpha * acc_sc[...] + jnp.dot(p.astype(jnp.bfloat16), v_ref[0],
                                                    preferred_element_type=jnp.float32)
        m_sc[...] = m_new

    @pl.when(ki == pl.num_programs(2) - 1)
    def _():
        o_ref[0] = (acc_sc[...] * pl.reciprocal(l_sc[...], approx=True)).astype(o_ref.dtype)


def dense_matmul_kernel(x_ref, w_ref, o_ref):
    o_ref[...] = jnp.dot(x_ref[...], w_ref[...],
                         preferred_element_type=jnp.float32).astype(o_ref.dtype)


# ----------------------------------------------------------------------------
# Wrappers (pallas_call plumbing)
# ----------------------------------------------------------------------------

def gptq_linear(x, p, *, out_dtype=jnp.float32, residual=None, swiglu_pair=False):
    """GPTQ 4-bit linear.

    x        : (M, K) activations, or (M, 2K) packed [gate | up] when swiglu_pair=True.
    p        : dict with qweight_k (K//8, N) i32 (kernel-repacked), scales (G, N) f32,
               sz = scales*(zeros+1) (G, N) f32.
    residual : optional (M, N) f32 added in the epilogue (fused residual add).
    """
    qw, sc, sz = p["qweight_k"], p["scales"], p["sz"]
    N = qw.shape[1]
    K = qw.shape[0] * 8
    G = sc.shape[0]
    gs = K // G
    M = x.shape[0]

    tm = _pick(M, (1024, 512, 256, 128))
    tn = _pick(N, (512, 256, 128))
    tk = _pick_tk(K, gs)
    gpt = tk // gs
    nk = K // tk

    xs = x.astype(jnp.bfloat16)
    if swiglu_pair:
        assert x.shape[1] == 2 * K
        act_arrays = [xs, xs]   # same HBM array, two BlockSpec views (gate half, up half)
        act_specs = [pl.BlockSpec((tm, tk), lambda m, n, k: (m, k)),
                     pl.BlockSpec((tm, tk), lambda m, n, k, o=nk: (m, k + o))]
        prologue = _prologue_swiglu
    else:
        assert x.shape[1] == K
        act_arrays = [xs]
        act_specs = [pl.BlockSpec((tm, tk), lambda m, n, k: (m, k))]
        prologue = _prologue_plain

    in_arrays = act_arrays + [qw, sc, sz]
    in_specs = act_specs + [
        pl.BlockSpec((tk // 8, tn), lambda m, n, k: (k, n)),
        pl.BlockSpec((gpt, tn), lambda m, n, k: (k, n)),
        pl.BlockSpec((gpt, tn), lambda m, n, k: (k, n)),
    ]
    add_residual = residual is not None
    if add_residual:
        in_arrays.append(residual)
        in_specs.append(pl.BlockSpec((tm, tn), lambda m, n, k: (m, n)))

    kernel = make_gptq_kernel(gs, prologue, len(act_arrays), add_residual)

    out_bytes = jnp.dtype(out_dtype).itemsize
    est = (2 * (len(act_arrays) * tm * tk * 2            # bf16 activations (double buffered)
                + (tk // 8) * tn * 4                     # packed weights
                + 2 * gpt * tn * 4                       # scales + sz
                + (tm * tn * 4 if add_residual else 0)   # residual
                + tm * tn * out_bytes)                   # output
           + tm * tn * 4)                                # f32 accumulator

    return pl.pallas_call(
        kernel,
        out_shape=jax.ShapeDtypeStruct((M, N), out_dtype),
        grid=(M // tm, N // tn, nk),
        in_specs=in_specs,
        out_specs=pl.BlockSpec((tm, tn), lambda m, n, k: (m, n)),
        scratch_shapes=[pltpu.VMEM((tm, tn), jnp.float32)],
        compiler_params=pltpu.CompilerParams(
            dimension_semantics=("parallel", "parallel", "arbitrary"),
            vmem_limit_bytes=_vmem_limit(est)),
    )(*in_arrays)


def rmsnorm(x, w):
    M, D = x.shape
    tm = _pick(M, (512, 256, 128))
    return pl.pallas_call(
        rmsnorm_kernel,
        out_shape=jax.ShapeDtypeStruct((M, D), jnp.bfloat16),
        grid=(M // tm,),
        in_specs=[pl.BlockSpec((tm, D), lambda i: (i, 0)),
                  pl.BlockSpec((1, D), lambda i: (0, 0))],
        out_specs=pl.BlockSpec((tm, D), lambda i: (i, 0)),
        compiler_params=pltpu.CompilerParams(dimension_semantics=("parallel",)),
    )(x, w.reshape(1, D))


def causal_attention(q, k, v):
    """q, k, v: (B, H, S, hd) (post-RoPE). Flash-style: KV grid axis, online softmax, bf16 dots."""
    B, H, S, hd = q.shape
    BH = B * H
    qf = q.reshape(BH, S, hd).astype(jnp.bfloat16)
    kf = k.reshape(BH, S, hd).astype(jnp.bfloat16)
    vf = v.reshape(BH, S, hd).astype(jnp.bfloat16)

    tq = _pick(S, (256, 128))
    tkv = _pick(S, (256, 128))
    # TODO(synk): fold heads so the lane dim is a multiple of 128 when hd < 128, and fold RoPE
    #             (per-tile cos/sin) + the head transpose into this kernel.

    q_spec = pl.BlockSpec((1, tq, hd), lambda b, i, j: (b, i, 0))
    kv_spec = pl.BlockSpec((1, tkv, hd), lambda b, i, j: (b, j, 0))
    est = (2 * ((tq + 2 * tkv) * hd * 2 + tq * hd * 2)
           + tq * tkv * 4 + tq * hd * 4 + 2 * tq * 4)

    out = pl.pallas_call(
        functools.partial(flash_attn_kernel, scale=1.0 / (hd ** 0.5)),
        out_shape=jax.ShapeDtypeStruct((BH, S, hd), jnp.bfloat16),
        grid=(BH, S // tq, S // tkv),
        in_specs=[q_spec, kv_spec, kv_spec],
        out_specs=q_spec,
        scratch_shapes=[pltpu.VMEM((tq, 1), jnp.float32),
                        pltpu.VMEM((tq, 1), jnp.float32),
                        pltpu.VMEM((tq, hd), jnp.float32)],
        compiler_params=pltpu.CompilerParams(
            dimension_semantics=("parallel", "parallel", "arbitrary"),
            vmem_limit_bytes=_vmem_limit(est)),
    )(qf, kf, vf)
    return out.reshape(B, H, S, hd)


def dense_matmul(x, w, out_dtype=jnp.bfloat16):
    """lm_head matmul; w stored in bf16, bf16 logits out."""
    M, K = x.shape
    N = w.shape[1]
    xb = x.astype(jnp.bfloat16)
    tm = _pick(M, (512, 256, 128))
    tn = _pick(N, (1024, 512, 256, 128))
    est = 2 * (tm * K * 2 + K * tn * 2 + tm * tn * jnp.dtype(out_dtype).itemsize)
    return pl.pallas_call(
        dense_matmul_kernel,
        out_shape=jax.ShapeDtypeStruct((M, N), out_dtype),
        grid=(M // tm, N // tn),
        in_specs=[pl.BlockSpec((tm, K), lambda m, n: (m, 0)),
                  pl.BlockSpec((K, tn), lambda m, n: (0, n))],
        out_specs=pl.BlockSpec((tm, tn), lambda m, n: (m, n)),
        compiler_params=pltpu.CompilerParams(
            dimension_semantics=("parallel", "parallel"),
            vmem_limit_bytes=_vmem_limit(est)),
    )(xb, w)


# ----------------------------------------------------------------------------
# Parameter construction (deterministic synthetic GPTQ checkpoint)
# ----------------------------------------------------------------------------

def init_gptq_linear(key, in_f, out_f, group_size):
    assert in_f % 8 == 0 and out_f % 8 == 0
    assert group_size % 8 == 0 and in_f % group_size == 0
    G = in_f // group_size
    k1, k2, k3 = jax.random.split(key, 3)
    qint = jax.random.randint(k1, (in_f, out_f), 0, 16, dtype=jnp.int32)   # 4-bit codes
    zint = jax.random.randint(k2, (G, out_f), 0, 16, dtype=jnp.int32)      # stored zeros
    scales = jax.random.uniform(k3, (G, out_f), jnp.float32, 0.01, 0.03)

    # standard AutoGPTQ packing: qweight along the input dim
    qw_std = jnp.zeros((in_f // 8, out_f), jnp.int32)
    qr = qint.reshape(in_f // 8, 8, out_f)
    for s in range(8):
        qw_std = qw_std | (qr[:, s, :] << (4 * s))
    # qzeros along the output dim
    qz = jnp.zeros((G, out_f // 8), jnp.int32)
    zr = zint.reshape(G, out_f // 8, 8)
    for s in range(8):
        qz = qz | (zr[:, :, s] << (4 * s))

    return dict(
        qweight=qw_std,
        qzeros=qz,
        scales=scales,
        # kernel-side tables, built ONCE at load time (no per-call activation permute):
        qweight_k=repack_qweight_for_kernel(qw_std, group_size),
        sz=scales * (zint.astype(jnp.float32) + 1.0),       # GPTQ adds 1 to the stored zero
    )


def fuse_gptq(*parts):
    """Concatenate GPTQ linears along the output dim (exact; matches fused qkv / gate_up)."""
    return {k: jnp.concatenate([p[k] for p in parts], axis=1)
            for k in ("qweight", "qweight_k", "qzeros", "scales", "sz")}


def gptq_linear_ref(x, p):
    """Pure-JAX exact dequant reference (from the standard AutoGPTQ packed format)."""
    qw, qz, sc = p["qweight"], p["qzeros"], p["scales"]
    K = qw.shape[0] * 8
    G = sc.shape[0]
    gs = K // G
    shifts = jnp.arange(8, dtype=jnp.int32) * 4
    q = unpack_qweight(qw).astype(jnp.float32)
    z = ((qz[:, :, None] >> shifts[None, None, :]) & 0xF).reshape(G, -1).astype(jnp.float32) + 1.0
    W = jnp.repeat(sc, gs, axis=0) * (q - jnp.repeat(z, gs, axis=0))
    return jnp.dot(x, W, precision=jax.lax.Precision.HIGHEST)


def gptq_linear_ref_matched(x, p):
    """Reference matching the kernel's numerics (dequantized weight rounded to bf16 once)."""
    qw, sc, sz = p["qweight"], p["scales"], p["sz"]
    K = qw.shape[0] * 8
    G = sc.shape[0]
    gs = K // G
    q = unpack_qweight(qw).astype(jnp.float32)
    W = q * jnp.repeat(sc, gs, axis=0) - jnp.repeat(sz, gs, axis=0)
    Wb = W.astype(jnp.bfloat16).astype(jnp.float32)
    return jnp.dot(x, Wb, precision=jax.lax.Precision.HIGHEST)


def init_params(key, cfg):
    D, H, hd, I, V, gs = (cfg["hidden"], cfg["heads"], cfg["head_dim"],
                          cfg["inter"], cfg["vocab"], cfg["group_size"])
    keys = jax.random.split(key, 16)
    q = init_gptq_linear(keys[0], D, H * hd, gs)
    k = init_gptq_linear(keys[1], D, H * hd, gs)
    v = init_gptq_linear(keys[2], D, H * hd, gs)
    gate = init_gptq_linear(keys[4], D, I, gs)
    up = init_gptq_linear(keys[5], D, I, gs)
    layer = dict(
        qkv_proj=fuse_gptq(q, k, v),            # fused q/k/v -> one GPTQ matmul
        o_proj=init_gptq_linear(keys[3], H * hd, D, gs),
        gate_up_proj=fuse_gptq(gate, up),       # fused gate/up -> one GPTQ matmul
        down_proj=init_gptq_linear(keys[6], I, D, gs),
        ln1=1.0 + 0.02 * jax.random.normal(keys[7], (D,), jnp.float32),
        ln2=1.0 + 0.02 * jax.random.normal(keys[8], (D,), jnp.float32),
    )
    return dict(
        embed=(0.02 * jax.random.normal(keys[9], (V, D), jnp.float32)).astype(jnp.bfloat16),
        layer=layer,
        norm=1.0 + 0.02 * jax.random.normal(keys[10], (D,), jnp.float32),
        lm_head=(0.02 * jax.random.normal(keys[11], (D, V), jnp.float32)).astype(jnp.bfloat16),
    )


# ----------------------------------------------------------------------------
# RoPE glue
# ----------------------------------------------------------------------------

def rope_cache(S, hd):
    inv = 1.0 / (10000.0 ** (jnp.arange(0, hd, 2, dtype=jnp.float32) / hd))
    t = jnp.arange(S, dtype=jnp.float32)
    freqs = jnp.outer(t, inv)
    emb = jnp.concatenate([freqs, freqs], axis=-1)
    return jnp.cos(emb), jnp.sin(emb)          # (S, hd) each


def rotate_half(x):
    x1, x2 = jnp.split(x, 2, axis=-1)
    return jnp.concatenate([-x2, x1], axis=-1)


def apply_rope(q, k, cos, sin):
    cos = cos[None, None]
    sin = sin[None, None]
    return q * cos + rotate_half(q) * sin, k * cos + rotate_half(k) * sin


# ----------------------------------------------------------------------------
# Full forward (one LlamaDecoderLayer, GPTQ-quantized)
# ----------------------------------------------------------------------------

@functools.partial(jax.jit, static_argnames=("heads", "head_dim"))
def llama_gptq_forward(params, input_ids, heads, head_dim):
    B, S = input_ids.shape
    D = heads * head_dim
    lyr = params["layer"]

    h = params["embed"][input_ids].astype(jnp.float32).reshape(B * S, D)   # f32 residual stream

    # --- attention block ---
    resid = h
    hn = rmsnorm(h, lyr["ln1"])                                    # bf16 normalized activations
    qkv = gptq_linear(hn, lyr["qkv_proj"], out_dtype=jnp.bfloat16)  # one fused GPTQ matmul
    q, k, v = jnp.split(qkv, 3, axis=-1)
    q = q.reshape(B, S, heads, head_dim).transpose(0, 2, 1, 3)
    k = k.reshape(B, S, heads, head_dim).transpose(0, 2, 1, 3)
    v = v.reshape(B, S, heads, head_dim).transpose(0, 2, 1, 3)
    cos, sin = rope_cache(S, head_dim)
    q, k = apply_rope(q, k, cos, sin)
    attn = causal_attention(q, k, v)                               # flash-style, (B,H,S,hd) bf16
    attn = attn.transpose(0, 2, 1, 3).reshape(B * S, D)
    h = gptq_linear(attn, lyr["o_proj"], residual=resid)           # residual fused in epilogue

    # --- MLP block ---
    resid = h
    hn = rmsnorm(h, lyr["ln2"])
    gu = gptq_linear(hn, lyr["gate_up_proj"], out_dtype=jnp.bfloat16)   # (M, 2I) bf16
    h = gptq_linear(gu, lyr["down_proj"], residual=resid, swiglu_pair=True)  # SwiGLU fused prologue

    # --- head ---
    hn = rmsnorm(h, params["norm"])
    logits = dense_matmul(hn, params["lm_head"])                   # (B*S, V) bf16
    return logits.reshape(B, S, -1)


# ----------------------------------------------------------------------------
# Main
# ----------------------------------------------------------------------------

if __name__ == "__main__":
    cfg = dict(vocab=64, hidden=32, heads=4, head_dim=8, inter=128, group_size=16)
    B, S = 2, 8

    root = jax.random.PRNGKey(0)
    pkey, ikey, tkey, akey = jax.random.split(root, 4)
    params = init_params(pkey, cfg)
    input_ids = jax.random.randint(ikey, (B, S), 0, cfg["vocab"], dtype=jnp.int32)

    logits = llama_gptq_forward(params, input_ids, heads=cfg["heads"], head_dim=cfg["head_dim"])
    logits = jax.block_until_ready(logits)
    assert logits.shape == (B, S, cfg["vocab"])
    assert bool(jnp.isfinite(logits.astype(jnp.float32)).all())

    # sanity 1: Pallas GPTQ matmul matches a reference with identical bf16 weight numerics
    xtest = jax.random.normal(tkey, (B * S, cfg["hidden"]), jnp.float32)
    got = jax.block_until_ready(gptq_linear(xtest, params["layer"]["qkv_proj"]))
    xref = xtest.astype(jnp.bfloat16).astype(jnp.float32)       # kernel sees bf16 activations
    ref_m = gptq_linear_ref_matched(xref, params["layer"]["qkv_proj"])
    assert bool(jnp.allclose(got, ref_m, rtol=2e-3, atol=2e-3)), "matched-numerics mismatch"
    # sanity 2: and stays close to the exact f32 AutoGPTQ dequant formula
    ref_e = gptq_linear_ref(xref, params["layer"]["qkv_proj"])
    assert bool(jnp.allclose(got, ref_e, rtol=3e-2, atol=3e-2)), "exact dequant mismatch"

    # sanity 3: flash attention vs full-softmax reference
    ks = jax.random.split(akey, 3)
    qa = jax.random.normal(ks[0], (B, cfg["heads"], S, cfg["head_dim"]), jnp.float32)
    ka = jax.random.normal(ks[1], (B, cfg["heads"], S, cfg["head_dim"]), jnp.float32)
    va = jax.random.normal(ks[2], (B, cfg["heads"], S, cfg["head_dim"]), jnp.float32)
    got_a = jax.block_until_ready(causal_attention(qa, ka, va)).astype(jnp.float32)
    qb = qa.astype(jnp.bfloat16).astype(jnp.float32)
    kb = ka.astype(jnp.bfloat16).astype(jnp.float32)
    vb = va.astype(jnp.bfloat16).astype(jnp.float32)
    sc = jnp.einsum("bhqd,bhkd->bhqk", qb, kb) / (cfg["head_dim"] ** 0.5)
    mask = jnp.tril(jnp.ones((S, S), bool))
    sc = jnp.where(mask[None, None], sc, -jnp.inf)
    ref_a = jnp.einsum("bhqk,bhkd->bhqd", jax.nn.softmax(sc, axis=-1), vb)
    assert bool(jnp.allclose(got_a, ref_a, rtol=2e-2, atol=2e-2)), "attention mismatch"

    print("KERNEL_OK")
</pallas_src>

<mosaic_0001>
module attributes {stable_mosaic.version = 11 : i64} {
  func.func @rmsnorm_kernel(%arg0: i32, %arg1: memref<16x32xf32, #tpu.memory_space<vmem>>, %arg2: memref<1x32xf32, #tpu.memory_space<vmem>>, %arg3: memref<16x32xbf16, #tpu.memory_space<vmem>>) attributes {dimension_semantics = [#tpu.dimension_semantics<parallel>], iteration_bounds = array<i64: 1>, scalar_prefetch = 0 : i64, scratch_operands = 0 : i64, tpu.core_type = #tpu.core_type<tc>, window_params = [{transform_indices = @transform_0, window_bounds = array<i64: 16, 32>}, {pipeline_mode = #tpu.pipeline_mode<synchronous>, transform_indices = @transform_1, window_bounds = array<i64: 1, 32>}, {transform_indices = @transform_2, window_bounds = array<i64: 16, 32>}]} {
    %c0 = arith.constant 0 : index
    %c0_0 = arith.constant 0 : index
    %0 = vector.load %arg1[%c0, %c0_0] : memref<16x32xf32, #tpu.memory_space<vmem>>, vector<16x32xf32>
    %1 = arith.mulf %0, %0 : vector<16x32xf32>
    %cst = arith.constant dense<0.000000e+00> : vector<16xf32>
    %2 = vector.multi_reduction <add>, %1, %cst [1] : vector<16x32xf32> to vector<16xf32>
    %3 = vector.shape_cast %2 : vector<16xf32> to vector<16x1xf32>
    %cst_1 = arith.constant 3.200000e+01 : f32
    %4 = vector.broadcast %cst_1 : f32 to vector<16x1xf32>
    %5 = arith.divf %3, %4 : vector<16x1xf32>
    %cst_2 = arith.constant 9.99999997E-7 : f32
    %6 = vector.broadcast %cst_2 : f32 to vector<16x1xf32>
    %7 = arith.addf %5, %6 : vector<16x1xf32>
    %8 = math.rsqrt %7 : vector<16x1xf32>
    %9 = vector.broadcast %8 : vector<16x1xf32> to vector<16x32xf32>
    %10 = arith.mulf %0, %9 : vector<16x32xf32>
    %c0_3 = arith.constant 0 : index
    %c0_4 = arith.constant 0 : index
    %11 = vector.load %arg2[%c0_3, %c0_4] : memref<1x32xf32, #tpu.memory_space<vmem>>, vector<1x32xf32>
    %12 = vector.broadcast %11 : vector<1x32xf32> to vector<16x32xf32>
    %13 = arith.mulf %10, %12 : vector<16x32xf32>
    %14 = arith.truncf %13 : vector<16x32xf32> to vector<16x32xbf16>
    %c0_5 = arith.constant 0 : index
    %c0_6 = arith.constant 0 : index
    %15 = vector.load %arg3[%c0_5, %c0_6] : memref<16x32xbf16, #tpu.memory_space<vmem>>, vector<16x32xbf16>
    tpu.vector_store %arg3[%c0_5, %c0_6], %14 {strides = array<i32>} : memref<16x32xbf16, #tpu.memory_space<vmem>>, vector<16x32xbf16>,
    return
  }
  func.func @transform_0(%arg0: i32) -> (i32, i32) {
    %c0_i32 = arith.constant 0 : i32
    %c0_i32_0 = arith.constant 0 : i32
    return %arg0, %c0_i32 : i32, i32
  }
  func.func @transform_1(%arg0: i32) -> (i32, i32) {
    %c0_i32 = arith.constant 0 : i32
    %c0_i32_0 = arith.constant 0 : i32
    %c0_i32_1 = arith.constant 0 : i32
    return %c0_i32, %c0_i32_0 : i32, i32
  }
  func.func @transform_2(%arg0: i32) -> (i32, i32) {
    %c0_i32 = arith.constant 0 : i32
    %c0_i32_0 = arith.constant 0 : i32
    return %arg0, %c0_i32 : i32, i32
  }
}

module attributes {stable_mosaic.version = 11 : i64} {
  func.func @kernel(%arg0: i32, %arg1: i32, %arg2: i32, %arg3: memref<16x32xbf16, #tpu.memory_space<vmem>>, %arg4: memref<4x96xi32, #tpu.memory_space<vmem>>, %arg5: memref<2x96xf32, #tpu.memory_space<vmem>>, %arg6: memref<2x96xf32, #tpu.memory_space<vmem>>, %arg7: memref<16x96xbf16, #tpu.memory_space<vmem>>, %arg8: memref<16x96xf32, #tpu.memory_space<vmem>>) attributes {dimension_semantics = [#tpu.dimension_semantics<parallel>, #tpu.dimension_semantics<parallel>, #tpu.dimension_semantics<arbitrary>], iteration_bounds = array<i64: 1, 1, 1>, scalar_prefetch = 0 : i64, scratch_operands = 1 : i64, tpu.core_type = #tpu.core_type<tc>, window_params = [{transform_indices = @transform_0, window_bounds = array<i64: 16, 32>}, {transform_indices = @transform_1, window_bounds = array<i64: 4, 96>}, {transform_indices = @transform_2, window_bounds = array<i64: 2, 96>}, {transform_indices = @transform_3, window_bounds = array<i64: 2, 96>}, {transform_indices = @transform_4, window_bounds = array<i64: 16, 96>}]} {
    %c0_i32 = arith.constant 0 : i32
    %0 = arith.cmpi eq, %arg2, %c0_i32 : i32
    %1 = arith.extui %0 : i1 to i32
    %c0_i32_0 = arith.constant 0 : i32
    %2 = arith.cmpi ne, %1, %c0_i32_0 : i32
    scf.if %2 {
      %cst_42 = arith.constant 0.000000e+00 : f32
      %96 = vector.broadcast %cst_42 : f32 to vector<16x96xf32>
      %c0_43 = arith.constant 0 : index
      %c0_44 = arith.constant 0 : index
      %97 = vector.load %arg8[%c0_43, %c0_44] : memref<16x96xf32, #tpu.memory_space<vmem>>, vector<16x96xf32>
      tpu.vector_store %arg8[%c0_43, %c0_44], %96 {strides = array<i32>} : memref<16x96xf32, #tpu.memory_space<vmem>>, vector<16x96xf32>,
    } else {
    }
    %c0 = arith.constant 0 : index
    %c0_1 = arith.constant 0 : index
    %3 = vector.load %arg3[%c0, %c0_1] : memref<16x32xbf16, #tpu.memory_space<vmem>>, vector<16x32xbf16>
    %c0_2 = arith.constant 0 : index
    %c0_3 = arith.constant 0 : index
    %4 = vector.load %arg4[%c0_2, %c0_3] : memref<4x96xi32, #tpu.memory_space<vmem>>, vector<2x96xi32>
    %c0_i32_4 = arith.constant 0 : i32
    %5 = vector.broadcast %c0_i32_4 : i32 to vector<2x96xi32>
    %6 = arith.shrsi %4, %5 : vector<2x96xi32>
    %c15_i32 = arith.constant 15 : i32
    %7 = vector.broadcast %c15_i32 : i32 to vector<2x96xi32>
    %8 = arith.andi %6, %7 : vector<2x96xi32>
    %c4_i32 = arith.constant 4 : i32
    %9 = vector.broadcast %c4_i32 : i32 to vector<2x96xi32>
    %10 = arith.shrsi %4, %9 : vector<2x96xi32>
    %c15_i32_5 = arith.constant 15 : i32
    %11 = vector.broadcast %c15_i32_5 : i32 to vector<2x96xi32>
    %12 = arith.andi %10, %11 : vector<2x96xi32>
    %c8_i32 = arith.constant 8 : i32
    %13 = vector.broadcast %c8_i32 : i32 to vector<2x96xi32>
    %14 = arith.shrsi %4, %13 : vector<2x96xi32>
    %c15_i32_6 = arith.constant 15 : i32
    %15 = vector.broadcast %c15_i32_6 : i32 to vector<2x96xi32>
    %16 = arith.andi %14, %15 : vector<2x96xi32>
    %c12_i32 = arith.constant 12 : i32
    %17 = vector.broadcast %c12_i32 : i32 to vector<2x96xi32>
    %18 = arith.shrsi %4, %17 : vector<2x96xi32>
    %c15_i32_7 = arith.constant 15 : i32
    %19 = vector.broadcast %c15_i32_7 : i32 to vector<2x96xi32>
    %20 = arith.andi %18, %19 : vector<2x96xi32>
    %c16_i32 = arith.constant 16 : i32
    %21 = vector.broadcast %c16_i32 : i32 to vector<2x96xi32>
    %22 = arith.shrsi %4, %21 : vector<2x96xi32>
    %c15_i32_8 = arith.constant 15 : i32
    %23 = vector.broadcast %c15_i32_8 : i32 to vector<2x96xi32>
    %24 = arith.andi %22, %23 : vector<2x96xi32>
    %c20_i32 = arith.constant 20 : i32
    %25 = vector.broadcast %c20_i32 : i32 to vector<2x96xi32>
    %26 = arith.shrsi %4, %25 : vector<2x96xi32>
    %c15_i32_9 = arith.constant 15 : i32
    %27 = vector.broadcast %c15_i32_9 : i32 to vector<2x96xi32>
    %28 = arith.andi %26, %27 : vector<2x96xi32>
    %c24_i32 = arith.constant 24 : i32
    %29 = vector.broadcast %c24_i32 : i32 to vector<2x96xi32>
    %30 = arith.shrsi %4, %29 : vector<2x96xi32>
    %c15_i32_10 = arith.constant 15 : i32
    %31 = vector.broadcast %c15_i32_10 : i32 to vector<2x96xi32>
    %32 = arith.andi %30, %31 : vector<2x96xi32>
    %c28_i32 = arith.constant 28 : i32
    %33 = vector.broadcast %c28_i32 : i32 to vector<2x96xi32>
    %34 = arith.shrsi %4, %33 : vector<2x96xi32>
    %c15_i32_11 = arith.constant 15 : i32
    %35 = vector.broadcast %c15_i32_11 : i32 to vector<2x96xi32>
    %36 = arith.andi %34, %35 : vector<2x96xi32>
    %37 = tpu.concatenate %8, %12, %16, %20, %24, %28, %32, %36 in 0 : vector<2x96xi32>, vector<2x96xi32>, vector<2x96xi32>, vector<2x96xi32>, vector<2x96xi32>, vector<2x96xi32>, vector<2x96xi32>, vector<2x96xi32> -> vector<16x96xi32>
    %38 = arith.sitofp %37 : vector<16x96xi32> to vector<16x96xf32>
    %c0_12 = arith.constant 0 : index
    %c0_13 = arith.constant 0 : index
    %39 = vector.load %arg5[%c0_12, %c0_13] : memref<2x96xf32, #tpu.memory_space<vmem>>, vector<1x96xf32>
    %40 = vector.broadcast %39 : vector<1x96xf32> to vector<16x96xf32>
    %41 = arith.mulf %38, %40 : vector<16x96xf32>
    %c0_14 = arith.constant 0 : index
    %c0_15 = arith.constant 0 : index
    %42 = vector.load %arg6[%c0_14, %c0_15] : memref<2x96xf32, #tpu.memory_space<vmem>>, vector<1x96xf32>
    %43 = vector.broadcast %42 : vector<1x96xf32> to vector<16x96xf32>
    %44 = arith.subf %41, %43 : vector<16x96xf32>
    %45 = arith.truncf %44 : vector<16x96xf32> to vector<16x96xbf16>
    %c2 = arith.constant 2 : index
    %c0_16 = arith.constant 0 : index
    %46 = vector.load %arg4[%c2, %c0_16] : memref<4x96xi32, #tpu.memory_space<vmem>>, vector<2x96xi32>
    %c0_i32_17 = arith.constant 0 : i32
    %47 = vector.broadcast %c0_i32_17 : i32 to vector<2x96xi32>
    %48 = arith.shrsi %46, %47 : vector<2x96xi32>
    %c15_i32_18 = arith.constant 15 : i32
    %49 = vector.broadcast %c15_i32_18 : i32 to vector<2x96xi32>
    %50 = arith.andi %48, %49 : vector<2x96xi32>
    %c4_i32_19 = arith.constant 4 : i32
    %51 = vector.broadcast %c4_i32_19 : i32 to vector<2x96xi32>
    %52 = arith.shrsi %46, %51 : vector<2x96xi32>
    %c15_i32_20 = arith.constant 15 : i32
    %53 = vector.broadcast %c15_i32_20 : i32 to vector<2x96xi32>
    %54 = arith.andi %52, %53 : vector<2x96xi32>
    %c8_i32_21 = arith.constant 8 : i32
    %55 = vector.broadcast %c8_i32_21 : i32 to vector<2x96xi32>
    %56 = arith.shrsi %46, %55 : vector<2x96xi32>
    %c15_i32_22 = arith.constant 15 : i32
    %57 = vector.broadcast %c15_i32_22 : i32 to vector<2x96xi32>
    %58 = arith.andi %56, %57 : vector<2x96xi32>
    %c12_i32_23 = arith.constant 12 : i32
    %59 = vector.broadcast %c12_i32_23 : i32 to vector<2x96xi32>
    %60 = arith.shrsi %46, %59 : vector<2x96xi32>
    %c15_i32_24 = arith.constant 15 : i32
    %61 = vector.broadcast %c15_i32_24 : i32 to vector<2x96xi32>
    %62 = arith.andi %60, %61 : vector<2x96xi32>
    %c16_i32_25 = arith.constant 16 : i32
    %63 = vector.broadcast %c16_i32_25 : i32 to vector<2x96xi32>
    %64 = arith.shrsi %46, %63 : vector<2x96xi32>
    %c15_i32_26 = arith.constant 15 : i32
    %65 = vector.broadcast %c15_i32_26 : i32 to vector<2x96xi32>
    %66 = arith.andi %64, %65 : vector<2x96xi32>
    %c20_i32_27 = arith.constant 20 : i32
    %67 = vector.broadcast %c20_i32_27 : i32 to vector<2x96xi32>
    %68 = arith.shrsi %46, %67 : vector<2x96xi32>
    %c15_i32_28 = arith.constant 15 : i32
    %69 = vector.broadcast %c15_i32_28 : i32 to vector<2x96xi32>
    %70 = arith.andi %68, %69 : vector<2x96xi32>
    %c24_i32_29 = arith.constant 24 : i32
    %71 = vector.broadcast %c24_i32_29 : i32 to vector<2x96xi32>
    %72 = arith.shrsi %46, %71 : vector<2x96xi32>
    %c15_i32_30 = arith.constant 15 : i32
    %73 = vector.broadcast %c15_i32_30 : i32 to vector<2x96xi32>
    %74 = arith.andi %72, %73 : vector<2x96xi32>
    %c28_i32_31 = arith.constant 28 : i32
    %75 = vector.broadcast %c28_i32_31 : i32 to vector<2x96xi32>
    %76 = arith.shrsi %46, %75 : vector<2x96xi32>
    %c15_i32_32 = arith.constant 15 : i32
    %77 = vector.broadcast %c15_i32_32 : i32 to vector<2x96xi32>
    %78 = arith.andi %76, %77 : vector<2x96xi32>
    %79 = tpu.concatenate %50, %54, %58, %62, %66, %70, %74, %78 in 0 : vector<2x96xi32>, vector<2x96xi32>, vector<2x96xi32>, vector<2x96xi32>, vector<2x96xi32>, vector<2x96xi32>, vector<2x96xi32>, vector<2x96xi32> -> vector<16x96xi32>
    %80 = arith.sitofp %79 : vector<16x96xi32> to vector<16x96xf32>
    %c1 = arith.constant 1 : index
    %c0_33 = arith.constant 0 : index
    %81 = vector.load %arg5[%c1, %c0_33] : memref<2x96xf32, #tpu.memory_space<vmem>>, vector<1x96xf32>
    %82 = vector.broadcast %81 : vector<1x96xf32> to vector<16x96xf32>
    %83 = arith.mulf %80, %82 : vector<16x96xf32>
    %c1_34 = arith.constant 1 : index
    %c0_35 = arith.constant 0 : index
    %84 = vector.load %arg6[%c1_34, %c0_35] : memref<2x96xf32, #tpu.memory_space<vmem>>, vector<1x96xf32>
    %85 = vector.broadcast %84 : vector<1x96xf32> to vector<16x96xf32>
    %86 = arith.subf %83, %85 : vector<16x96xf32>
    %87 = arith.truncf %86 : vector<16x96xf32> to vector<16x96xbf16>
    %88 = tpu.concatenate %45, %87 in 0 : vector<16x96xbf16>, vector<16x96xbf16> -> vector<32x96xbf16>
    %c0_36 = arith.constant 0 : index
    %c0_37 = arith.constant 0 : index
    %89 = vector.load %arg8[%c0_36, %c0_37] : memref<16x96xf32, #tpu.memory_space<vmem>>, vector<16x96xf32>
    %cst = arith.constant dense<0.000000e+00> : vector<16x96xf32>
    %90 = tpu.matmul %3, %88, %cst {dimension_numbers = #tpu.dot_dimension_numbers<[1], [0], [0], [1], [0, 0, 1, 1], [], []>} : vector<16x32xbf16>, vector<32x96xbf16>, vector<16x96xf32> -> vector<16x96xf32>
    %91 = arith.addf %89, %90 : vector<16x96xf32>
    %c0_38 = arith.constant 0 : index
    %c0_39 = arith.constant 0 : index
    %92 = vector.load %arg8[%c0_38, %c0_39] : memref<16x96xf32, #tpu.memory_space<vmem>>, vector<16x96xf32>
    tpu.vector_store %arg8[%c0_38, %c0_39], %91 {strides = array<i32>} : memref<16x96xf32, #tpu.memory_space<vmem>>, vector<16x96xf32>,
    %c0_i32_40 = arith.constant 0 : i32
    %93 = arith.cmpi eq, %arg2, %c0_i32_40 : i32
    %94 = arith.extui %93 : i1 to i32
    %c0_i32_41 = arith.constant 0 : i32
    %95 = arith.cmpi ne, %94, %c0_i32_41 : i32
    scf.if %95 {
      %c0_42 = arith.constant 0 : index
      %c0_43 = arith.constant 0 : index
      %96 = vector.load %arg8[%c0_42, %c0_43] : memref<16x96xf32, #tpu.memory_space<vmem>>, vector<16x96xf32>
      %97 = arith.truncf %96 : vector<16x96xf32> to vector<16x96xbf16>
      %c0_44 = arith.constant 0 : index
      %c0_45 = arith.constant 0 : index
      %98 = vector.load %arg7[%c0_44, %c0_45] : memref<16x96xbf16, #tpu.memory_space<vmem>>, vector<16x96xbf16>
      tpu.vector_store %arg7[%c0_44, %c0_45], %97 {strides = array<i32>} : memref<16x96xbf16, #tpu.memory_space<vmem>>, vector<16x96xbf16>,
    } else {
    }
    return
  }
  func.func @transform_0(%arg0: i32, %arg1: i32, %arg2: i32) -> (i32, i32) {
    %c0_i32 = arith.constant 0 : i32
    return %arg0, %arg2 : i32, i32
  }
  func.func @transform_1(%arg0: i32, %arg1: i32, %arg2: i32) -> (i32, i32) {
    %c0_i32 = arith.constant 0 : i32
    return %arg2, %arg1 : i32, i32
  }
  func.func @transform_2(%arg0: i32, %arg1: i32, %arg2: i32) -> (i32, i32) {
    %c0_i32 = arith.constant 0 : i32
    return %arg2, %arg1 : i32, i32
  }
  func.func @transform_3(%arg0: i32, %arg1: i32, %arg2: i32) -> (i32, i32) {
    %c0_i32 = arith.constant 0 : i32
    return %arg2, %arg1 : i32, i32
  }
  func.func @transform_4(%arg0: i32, %arg1: i32, %arg2: i32) -> (i32, i32) {
    %c0_i32 = arith.constant 0 : i32
    return %arg0, %arg1 : i32, i32
  }
}

module attributes {stable_mosaic.version = 11 : i64} {
  func.func @flash_attn_kernel(%arg0: i32, %arg1: i32, %arg2: i32, %arg3: memref<1x8x8xbf16, #tpu.memory_space<vmem>>, %arg4: memref<1x8x8xbf16, #tpu.memory_space<vmem>>, %arg5: memref<1x8x8xbf16, #tpu.memory_space<vmem>>, %arg6: memref<1x8x8xbf16, #tpu.memory_space<vmem>>, %arg7: memref<8x1xf32, #tpu.memory_space<vmem>>, %arg8: memref<8x1xf32, #tpu.memory_space<vmem>>, %arg9: memref<8x8xf32, #tpu.memory_space<vmem>>) attributes {dimension_semantics = [#tpu.dimension_semantics<parallel>, #tpu.dimension_semantics<parallel>, #tpu.dimension_semantics<arbitrary>], iteration_bounds = array<i64: 8, 1, 1>, scalar_prefetch = 0 : i64, scratch_operands = 3 : i64, tpu.core_type = #tpu.core_type<tc>, window_params = [{transform_indices = @transform_0, window_bounds = array<i64: 1, 8, 8>}, {transform_indices = @transform_1, window_bounds = array<i64: 1, 8, 8>}, {transform_indices = @transform_2, window_bounds = array<i64: 1, 8, 8>}, {transform_indices = @transform_3, window_bounds = array<i64: 1, 8, 8>}]} {
    %c0_i32 = arith.constant 0 : i32
    %0 = arith.cmpi eq, %arg2, %c0_i32 : i32
    %1 = arith.extui %0 : i1 to i32
    %c0_i32_0 = arith.constant 0 : i32
    %2 = arith.cmpi ne, %1, %c0_i32_0 : i32
    scf.if %2 {
      %cst = arith.constant 0xFF800000 : f32
      %13 = vector.broadcast %cst : f32 to vector<8x1xf32>
      %c0 = arith.constant 0 : index
      %c0_6 = arith.constant 0 : index
      %14 = vector.load %arg7[%c0, %c0_6] : memref<8x1xf32, #tpu.memory_space<vmem>>, vector<8x1xf32>
      tpu.vector_store %arg7[%c0, %c0_6], %13 {strides = array<i32>} : memref<8x1xf32, #tpu.memory_space<vmem>>, vector<8x1xf32>,
      %cst_7 = arith.constant 0.000000e+00 : f32
      %15 = vector.broadcast %cst_7 : f32 to vector<8x1xf32>
      %c0_8 = arith.constant 0 : index
      %c0_9 = arith.constant 0 : index
      %16 = vector.load %arg8[%c0_8, %c0_9] : memref<8x1xf32, #tpu.memory_space<vmem>>, vector<8x1xf32>
      tpu.vector_store %arg8[%c0_8, %c0_9], %15 {strides = array<i32>} : memref<8x1xf32, #tpu.memory_space<vmem>>, vector<8x1xf32>,
      %cst_10 = arith.constant 0.000000e+00 : f32
      %17 = vector.broadcast %cst_10 : f32 to vector<8x8xf32>
      %c0_11 = arith.constant 0 : index
      %c0_12 = arith.constant 0 : index
      %18 = vector.load %arg9[%c0_11, %c0_12] : memref<8x8xf32, #tpu.memory_space<vmem>>, vector<8x8xf32>
      tpu.vector_store %arg9[%c0_11, %c0_12], %17 {strides = array<i32>} : memref<8x8xf32, #tpu.memory_space<vmem>>, vector<8x8xf32>,
    } else {
    }
    %c8_i32 = arith.constant 8 : i32
    %3 = arith.muli %arg1, %c8_i32 : i32
    %c8_i32_1 = arith.constant 8 : i32
    %4 = arith.muli %arg2, %c8_i32_1 : i32
    %c8_i32_2 = arith.constant 8 : i32
    %5 = arith.addi %3, %c8_i32_2 : i32
    %c1_i32 = arith.constant 1 : i32
    %6 = arith.subi %5, %c1_i32 : i32
    %7 = arith.cmpi sle, %4, %6 : i32
    %8 = arith.extui %7 : i1 to i32
    %c0_i32_3 = arith.constant 0 : i32
    %9 = arith.cmpi ne, %8, %c0_i32_3 : i32
    scf.if %9 {
      %c0 = arith.constant 0 : index
      %c0_6 = arith.constant 0 : index
      %c0_7 = arith.constant 0 : index
      %13 = vector.load %arg3[%c0, %c0_6, %c0_7] : memref<1x8x8xbf16, #tpu.memory_space<vmem>>, vector<1x8x8xbf16>
      %14 = vector.shape_cast %13 : vector<1x8x8xbf16> to vector<8x8xbf16>
      %15 = arith.extf %14 : vector<8x8xbf16> to vector<8x8xf32>
      %cst = arith.constant 0.353553385 : f32
      %16 = vector.broadcast %cst : f32 to vector<8x8xf32>
      %17 = arith.mulf %15, %16 : vector<8x8xf32>
      %18 = arith.truncf %17 : vector<8x8xf32> to vector<8x8xbf16>
      %c0_8 = arith.constant 0 : index
      %c0_9 = arith.constant 0 : index
      %c0_10 = arith.constant 0 : index
      %19 = vector.load %arg4[%c0_8, %c0_9, %c0_10] : memref<1x8x8xbf16, #tpu.memory_space<vmem>>, vector<1x8x8xbf16>
      %20 = vector.shape_cast %19 : vector<1x8x8xbf16> to vector<8x8xbf16>
      %cst_11 = arith.constant dense<0.000000e+00> : vector<8x8xf32>
      %21 = tpu.matmul %18, %20, %cst_11 {dimension_numbers = #tpu.dot_dimension_numbers<[1], [1], [0], [0], [0, 0, 1, 0], [], []>} : vector<8x8xbf16>, vector<8x8xbf16>, vector<8x8xf32> -> vector<8x8xf32>
      %22 = tpu.iota {dimensions = array<i32: 0>} : vector<8x8xi32>
      %23 = vector.broadcast %3 : i32 to vector<8x8xi32>
      %24 = arith.addi %23, %22 : vector<8x8xi32>
      %25 = tpu.iota {dimensions = array<i32: 1>} : vector<8x8xi32>
      %26 = vector.broadcast %4 : i32 to vector<8x8xi32>
      %27 = arith.addi %26, %25 : vector<8x8xi32>
      %28 = arith.cmpi sle, %27, %24 : vector<8x8xi32>
      %cst_12 = arith.constant -1.000000e+30 : f32
      %29 = vector.broadcast %cst_12 : f32 to vector<8x8xf32>
      %30 = arith.select %28, %21, %29 : vector<8x8xi1>, vector<8x8xf32>
      %c0_13 = arith.constant 0 : index
      %c0_14 = arith.constant 0 : index
      %31 = vector.load %arg7[%c0_13, %c0_14] : memref<8x1xf32, #tpu.memory_space<vmem>>, vector<8x1xf32>
      %cst_15 = arith.constant dense<0xFF800000> : vector<8xf32>
      %32 = vector.multi_reduction <maximumf>, %30, %cst_15 [1] : vector<8x8xf32> to vector<8xf32>
      %33 = vector.shape_cast %32 : vector<8xf32> to vector<8x1xf32>
      %34 = arith.maximumf %31, %33 : vector<8x1xf32>
      %c0_16 = arith.constant 0 : index
      %c0_17 = arith.constant 0 : index
      %35 = vector.load %arg7[%c0_16, %c0_17] : memref<8x1xf32, #tpu.memory_space<vmem>>, vector<8x1xf32>
      %36 = arith.subf %35, %34 : vector<8x1xf32>
      %37 = math.exp %36 : vector<8x1xf32>
      %38 = vector.broadcast %34 : vector<8x1xf32> to vector<8x8xf32>
      %39 = arith.subf %30, %38 : vector<8x8xf32>
      %40 = math.exp %39 : vector<8x8xf32>
      %c0_18 = arith.constant 0 : index
      %c0_19 = arith.constant 0 : index
      %41 = vector.load %arg8[%c0_18, %c0_19] : memref<8x1xf32, #tpu.memory_space<vmem>>, vector<8x1xf32>
      %42 = arith.mulf %37, %41 : vector<8x1xf32>
      %cst_20 = arith.constant dense<0.000000e+00> : vector<8xf32>
      %43 = vector.multi_reduction <add>, %40, %cst_20 [1] : vector<8x8xf32> to vector<8xf32>
      %44 = vector.shape_cast %43 : vector<8xf32> to vector<8x1xf32>
      %45 = arith.addf %42, %44 : vector<8x1xf32>
      %c0_21 = arith.constant 0 : index
      %c0_22 = arith.constant 0 : index
      %46 = vector.load %arg8[%c0_21, %c0_22] : memref<8x1xf32, #tpu.memory_space<vmem>>, vector<8x1xf32>
      tpu.vector_store %arg8[%c0_21, %c0_22], %45 {strides = array<i32>} : memref<8x1xf32, #tpu.memory_space<vmem>>, vector<8x1xf32>,
      %c0_23 = arith.constant 0 : index
      %c0_24 = arith.constant 0 : index
      %47 = vector.load %arg9[%c0_23, %c0_24] : memref<8x8xf32, #tpu.memory_space<vmem>>, vector<8x8xf32>
      %48 = vector.broadcast %37 : vector<8x1xf32> to vector<8x8xf32>
      %49 = arith.mulf %48, %47 : vector<8x8xf32>
      %50 = arith.truncf %40 : vector<8x8xf32> to vector<8x8xbf16>
      %c0_25 = arith.constant 0 : index
      %c0_26 = arith.constant 0 : index
      %c0_27 = arith.constant 0 : index
      %51 = vector.load %arg5[%c0_25, %c0_26, %c0_27] : memref<1x8x8xbf16, #tpu.memory_space<vmem>>, vector<1x8x8xbf16>
      %52 = vector.shape_cast %51 : vector<1x8x8xbf16> to vector<8x8xbf16>
      %cst_28 = arith.constant dense<0.000000e+00> : vector<8x8xf32>
      %53 = tpu.matmul %50, %52, %cst_28 {dimension_numbers = #tpu.dot_dimension_numbers<[1], [0], [0], [1], [0, 0, 1, 1], [], []>} : vector<8x8xbf16>, vector<8x8xbf16>, vector<8x8xf32> -> vector<8x8xf32>
      %54 = arith.addf %49, %53 : vector<8x8xf32>
      %c0_29 = arith.constant 0 : index
      %c0_30 = arith.constant 0 : index
      %55 = vector.load %arg9[%c0_29, %c0_30] : memref<8x8xf32, #tpu.memory_space<vmem>>, vector<8x8xf32>
      tpu.vector_store %arg9[%c0_29, %c0_30], %54 {strides = array<i32>} : memref<8x8xf32, #tpu.memory_space<vmem>>, vector<8x8xf32>,
      %c0_31 = arith.constant 0 : index
      %c0_32 = arith.constant 0 : index
      %56 = vector.load %arg7[%c0_31, %c0_32] : memref<8x1xf32, #tpu.memory_space<vmem>>, vector<8x1xf32>
      tpu.vector_store %arg7[%c0_31, %c0_32], %34 {strides = array<i32>} : memref<8x1xf32, #tpu.memory_space<vmem>>, vector<8x1xf32>,
    } else {
    }
    %c0_i32_4 = arith.constant 0 : i32
    %10 = arith.cmpi eq, %arg2, %c0_i32_4 : i32
    %11 = arith.extui %10 : i1 to i32
    %c0_i32_5 = arith.constant 0 : i32
    %12 = arith.cmpi ne, %11, %c0_i32_5 : i32
    scf.if %12 {
      %c0 = arith.constant 0 : index
      %c0_6 = arith.constant 0 : index
      %13 = vector.load %arg9[%c0, %c0_6] : memref<8x8xf32, #tpu.memory_space<vmem>>, vector<8x8xf32>
      %c0_7 = arith.constant 0 : index
      %c0_8 = arith.constant 0 : index
      %14 = vector.load %arg8[%c0_7, %c0_8] : memref<8x1xf32, #tpu.memory_space<vmem>>, vector<8x1xf32>
      %15 = tpu.reciprocal %14 {approx = true} : vector<8x1xf32> -> vector<8x1xf32>
      %16 = vector.broadcast %15 : vector<8x1xf32> to vector<8x8xf32>
      %17 = arith.mulf %13, %16 : vector<8x8xf32>
      %18 = arith.truncf %17 : vector<8x8xf32> to vector<8x8xbf16>
      %c0_9 = arith.constant 0 : index
      %c0_10 = arith.constant 0 : index
      %c0_11 = arith.constant 0 : index
      %19 = vector.load %arg6[%c0_9, %c0_10, %c0_11] : memref<1x8x8xbf16, #tpu.memory_space<vmem>>, vector<1x8x8xbf16>
      %20 = vector.shape_cast %19 : vector<1x8x8xbf16> to vector<8x8xbf16>
      %21 = vector.shape_cast %18 : vector<8x8xbf16> to vector<1x8x8xbf16>
      tpu.vector_store %arg6[%c0_9, %c0_10, %c0_11], %21 {strides = array<i32>} : memref<1x8x8xbf16, #tpu.memory_space<vmem>>, vector<1x8x8xbf16>,
    } else {
    }
    return
  }
  func.func @transform_0(%arg0: i32, %arg1: i32, %arg2: i32) -> (i32, i32, i32) {
    %c0_i32 = arith.constant 0 : i32
    %c0_i32_0 = arith.constant 0 : i32
    return %arg0, %arg1, %c0_i32 : i32, i32, i32
  }
  func.func @transform_1(%arg0: i32, %arg1: i32, %arg2: i32) -> (i32, i32, i32) {
    %c0_i32 = arith.constant 0 : i32
    %c0_i32_0 = arith.constant 0 : i32
    return %arg0, %arg2, %c0_i32 : i32, i32, i32
  }
  func.func @transform_2(%arg0: i32, %arg1: i32, %arg2: i32) -> (i32, i32, i32) {
    %c0_i32 = arith.constant 0 : i32
    %c0_i32_0 = arith.constant 0 : i32
    return %arg0, %arg2, %c0_i32 : i32, i32, i32
  }
  func.func @transform_3(%arg0: i32, %arg1: i32, %arg2: i32) -> (i32, i32, i32) {
    %c0_i32 = arith.constant 0 : i32
    %c0_i32_0 = arith.constant 0 : i32
    return %arg0, %arg1, %c0_i32 : i32, i32, i32
  }
}

module attributes {stable_mosaic.version = 11 : i64} {
  func.func @kernel(%arg0: i32, %arg1: i32, %arg2: i32, %arg3: memref<16x32xbf16, #tpu.memory_space<vmem>>, %arg4: memref<4x32xi32, #tpu.memory_space<vmem>>, %arg5: memref<2x32xf32, #tpu.memory_space<vmem>>, %arg6: memref<2x32xf32, #tpu.memory_space<vmem>>, %arg7: memref<16x32xf32, #tpu.memory_space<vmem>>, %arg8: memref<16x32xf32, #tpu.memory_space<vmem>>, %arg9: memref<16x32xf32, #tpu.memory_space<vmem>>) attributes {dimension_semantics = [#tpu.dimension_semantics<parallel>, #tpu.dimension_semantics<parallel>, #tpu.dimension_semantics<arbitrary>], iteration_bounds = array<i64: 1, 1, 1>, scalar_prefetch = 0 : i64, scratch_operands = 1 : i64, tpu.core_type = #tpu.core_type<tc>, window_params = [{transform_indices = @transform_0, window_bounds = array<i64: 16, 32>}, {transform_indices = @transform_1, window_bounds = array<i64: 4, 32>}, {transform_indices = @transform_2, window_bounds = array<i64: 2, 32>}, {transform_indices = @transform_3, window_bounds = array<i64: 2, 32>}, {transform_indices = @transform_4, window_bounds = array<i64: 16, 32>}, {transform_indices = @transform_5, window_bounds = array<i64: 16, 32>}]} {
    %c0_i32 = arith.constant 0 : i32
    %0 = arith.cmpi eq, %arg2, %c0_i32 : i32
    %1 = arith.extui %0 : i1 to i32
    %c0_i32_0 = arith.constant 0 : i32
    %2 = arith.cmpi ne, %1, %c0_i32_0 : i32
    scf.if %2 {
      %cst_42 = arith.constant 0.000000e+00 : f32
      %96 = vector.broadcast %cst_42 : f32 to vector<16x32xf32>
      %c0_43 = arith.constant 0 : index
      %c0_44 = arith.constant 0 : index
      %97 = vector.load %arg9[%c0_43, %c0_44] : memref<16x32xf32, #tpu.memory_space<vmem>>, vector<16x32xf32>
      tpu.vector_store %arg9[%c0_43, %c0_44], %96 {strides = array<i32>} : memref<16x32xf32, #tpu.memory_space<vmem>>, vector<16x32xf32>,
    } else {
    }
    %c0 = arith.constant 0 : index
    %c0_1 = arith.constant 0 : index
    %3 = vector.load %arg3[%c0, %c0_1] : memref<16x32xbf16, #tpu.memory_space<vmem>>, vector<16x32xbf16>
    %c0_2 = arith.constant 0 : index
    %c0_3 = arith.constant 0 : index
    %4 = vector.load %arg4[%c0_2, %c0_3] : memref<4x32xi32, #tpu.memory_space<vmem>>, vector<2x32xi32>
    %c0_i32_4 = arith.constant 0 : i32
    %5 = vector.broadcast %c0_i32_4 : i32 to vector<2x32xi32>
    %6 = arith.shrsi %4, %5 : vector<2x32xi32>
    %c15_i32 = arith.constant 15 : i32
    %7 = vector.broadcast %c15_i32 : i32 to vector<2x32xi32>
    %8 = arith.andi %6, %7 : vector<2x32xi32>
    %c4_i32 = arith.constant 4 : i32
    %9 = vector.broadcast %c4_i32 : i32 to vector<2x32xi32>
    %10 = arith.shrsi %4, %9 : vector<2x32xi32>
    %c15_i32_5 = arith.constant 15 : i32
    %11 = vector.broadcast %c15_i32_5 : i32 to vector<2x32xi32>
    %12 = arith.andi %10, %11 : vector<2x32xi32>
    %c8_i32 = arith.constant 8 : i32
    %13 = vector.broadcast %c8_i32 : i32 to vector<2x32xi32>
    %14 = arith.shrsi %4, %13 : vector<2x32xi32>
    %c15_i32_6 = arith.constant 15 : i32
    %15 = vector.broadcast %c15_i32_6 : i32 to vector<2x32xi32>
    %16 = arith.andi %14, %15 : vector<2x32xi32>
    %c12_i32 = arith.constant 12 : i32
    %17 = vector.broadcast %c12_i32 : i32 to vector<2x32xi32>
    %18 = arith.shrsi %4, %17 : vector<2x32xi32>
    %c15_i32_7 = arith.constant 15 : i32
    %19 = vector.broadcast %c15_i32_7 : i32 to vector<2x32xi32>
    %20 = arith.andi %18, %19 : vector<2x32xi32>
    %c16_i32 = arith.constant 16 : i32
    %21 = vector.broadcast %c16_i32 : i32 to vector<2x32xi32>
    %22 = arith.shrsi %4, %21 : vector<2x32xi32>
    %c15_i32_8 = arith.constant 15 : i32
    %23 = vector.broadcast %c15_i32_8 : i32 to vector<2x32xi32>
    %24 = arith.andi %22, %23 : vector<2x32xi32>
    %c20_i32 = arith.constant 20 : i32
    %25 = vector.broadcast %c20_i32 : i32 to vector<2x32xi32>
    %26 = arith.shrsi %4, %25 : vector<2x32xi32>
    %c15_i32_9 = arith.constant 15 : i32
    %27 = vector.broadcast %c15_i32_9 : i32 to vector<2x32xi32>
    %28 = arith.andi %26, %27 : vector<2x32xi32>
    %c24_i32 = arith.constant 24 : i32
    %29 = vector.broadcast %c24_i32 : i32 to vector<2x32xi32>
    %30 = arith.shrsi %4, %29 : vector<2x32xi32>
    %c15_i32_10 = arith.constant 15 : i32
    %31 = vector.broadcast %c15_i32_10 : i32 to vector<2x32xi32>
    %32 = arith.andi %30, %31 : vector<2x32xi32>
    %c28_i32 = arith.constant 28 : i32
    %33 = vector.broadcast %c28_i32 : i32 to vector<2x32xi32>
    %34 = arith.shrsi %4, %33 : vector<2x32xi32>
    %c15_i32_11 = arith.constant 15 : i32
    %35 = vector.broadcast %c15_i32_11 : i32 to vector<2x32xi32>
    %36 = arith.andi %34, %35 : vector<2x32xi32>
    %37 = tpu.concatenate %8, %12, %16, %20, %24, %28, %32, %36 in 0 : vector<2x32xi32>, vector<2x32xi32>, vector<2x32xi32>, vector<2x32xi32>, vector<2x32xi32>, vector<2x32xi32>, vector<2x32xi32>, vector<2x32xi32> -> vector<16x32xi32>
    %38 = arith.sitofp %37 : vector<16x32xi32> to vector<16x32xf32>
    %c0_12 = arith.constant 0 : index
    %c0_13 = arith.constant 0 : index
    %39 = vector.load %arg5[%c0_12, %c0_13] : memref<2x32xf32, #tpu.memory_space<vmem>>, vector<1x32xf32>
    %40 = vector.broadcast %39 : vector<1x32xf32> to vector<16x32xf32>
    %41 = arith.mulf %38, %40 : vector<16x32xf32>
    %c0_14 = arith.constant 0 : index
    %c0_15 = arith.constant 0 : index
    %42 = vector.load %arg6[%c0_14, %c0_15] : memref<2x32xf32, #tpu.memory_space<vmem>>, vector<1x32xf32>
    %43 = vector.broadcast %42 : vector<1x32xf32> to vector<16x32xf32>
    %44 = arith.subf %41, %43 : vector<16x32xf32>
    %45 = arith.truncf %44 : vector<16x32xf32> to vector<16x32xbf16>
    %c2 = arith.constant 2 : index
    %c0_16 = arith.constant 0 : index
    %46 = vector.load %arg4[%c2, %c0_16] : memref<4x32xi32, #tpu.memory_space<vmem>>, vector<2x32xi32>
    %c0_i32_17 = arith.constant 0 : i32
    %47 = vector.broadcast %c0_i32_17 : i32 to vector<2x32xi32>
    %48 = arith.shrsi %46, %47 : vector<2x32xi32>
    %c15_i32_18 = arith.constant 15 : i32
    %49 = vector.broadcast %c15_i32_18 : i32 to vector<2x32xi32>
    %50 = arith.andi %48, %49 : vector<2x32xi32>
    %c4_i32_19 = arith.constant 4 : i32
    %51 = vector.broadcast %c4_i32_19 : i32 to vector<2x32xi32>
    %52 = arith.shrsi %46, %51 : vector<2x32xi32>
    %c15_i32_20 = arith.constant 15 : i32
    %53 = vector.broadcast %c15_i32_20 : i32 to vector<2x32xi32>
    %54 = arith.andi %52, %53 : vector<2x32xi32>
    %c8_i32_21 = arith.constant 8 : i32
    %55 = vector.broadcast %c8_i32_21 : i32 to vector<2x32xi32>
    %56 = arith.shrsi %46, %55 : vector<2x32xi32>
    %c15_i32_22 = arith.constant 15 : i32
    %57 = vector.broadcast %c15_i32_22 : i32 to vector<2x32xi32>
    %58 = arith.andi %56, %57 : vector<2x32xi32>
    %c12_i32_23 = arith.constant 12 : i32
    %59 = vector.broadcast %c12_i32_23 : i32 to vector<2x32xi32>
    %60 = arith.shrsi %46, %59 : vector<2x32xi32>
    %c15_i32_24 = arith.constant 15 : i32
    %61 = vector.broadcast %c15_i32_24 : i32 to vector<2x32xi32>
    %62 = arith.andi %60, %61 : vector<2x32xi32>
    %c16_i32_25 = arith.constant 16 : i32
    %63 = vector.broadcast %c16_i32_25 : i32 to vector<2x32xi32>
    %64 = arith.shrsi %46, %63 : vector<2x32xi32>
    %c15_i32_26 = arith.constant 15 : i32
    %65 = vector.broadcast %c15_i32_26 : i32 to vector<2x32xi32>
    %66 = arith.andi %64, %65 : vector<2x32xi32>
    %c20_i32_27 = arith.constant 20 : i32
    %67 = vector.broadcast %c20_i32_27 : i32 to vector<2x32xi32>
    %68 = arith.shrsi %46, %67 : vector<2x32xi32>
    %c15_i32_28 = arith.constant 15 : i32
    %69 = vector.broadcast %c15_i32_28 : i32 to vector<2x32xi32>
    %70 = arith.andi %68, %69 : vector<2x32xi32>
    %c24_i32_29 = arith.constant 24 : i32
    %71 = vector.broadcast %c24_i32_29 : i32 to vector<2x32xi32>
    %72 = arith.shrsi %46, %71 : vector<2x32xi32>
    %c15_i32_30 = arith.constant 15 : i32
    %73 = vector.broadcast %c15_i32_30 : i32 to vector<2x32xi32>
    %74 = arith.andi %72, %73 : vector<2x32xi32>
    %c28_i32_31 = arith.constant 28 : i32
    %75 = vector.broadcast %c28_i32_31 : i32 to vector<2x32xi32>
    %76 = arith.shrsi %46, %75 : vector<2x32xi32>
    %c15_i32_32 = arith.constant 15 : i32
    %77 = vector.broadcast %c15_i32_32 : i32 to vector<2x32xi32>
    %78 = arith.andi %76, %77 : vector<2x32xi32>
    %79 = tpu.concatenate %50, %54, %58, %62, %66, %70, %74, %78 in 0 : vector<2x32xi32>, vector<2x32xi32>, vector<2x32xi32>, vector<2x32xi32>, vector<2x32xi32>, vector<2x32xi32>, vector<2x32xi32>, vector<2x32xi32> -> vector<16x32xi32>
    %80 = arith.sitofp %79 : vector<16x32xi32> to vector<16x32xf32>
    %c1 = arith.constant 1 : index
    %c0_33 = arith.constant 0 : index
    %81 = vector.load %arg5[%c1, %c0_33] : memref<2x32xf32, #tpu.memory_space<vmem>>, vector<1x32xf32>
    %82 = vector.broadcast %81 : vector<1x32xf32> to vector<16x32xf32>
    %83 = arith.mulf %80, %82 : vector<16x32xf32>
    %c1_34 = arith.constant 1 : index
    %c0_35 = arith.constant 0 : index
    %84 = vector.load %arg6[%c1_34, %c0_35] : memref<2x32xf32, #tpu.memory_space<vmem>>, vector<1x32xf32>
    %85 = vector.broadcast %84 : vector<1x32xf32> to vector<16x32xf32>
    %86 = arith.subf %83, %85 : vector<16x32xf32>
    %87 = arith.truncf %86 : vector<16x32xf32> to vector<16x32xbf16>
    %88 = tpu.concatenate %45, %87 in 0 : vector<16x32xbf16>, vector<16x32xbf16> -> vector<32x32xbf16>
    %c0_36 = arith.constant 0 : index
    %c0_37 = arith.constant 0 : index
    %89 = vector.load %arg9[%c0_36, %c0_37] : memref<16x32xf32, #tpu.memory_space<vmem>>, vector<16x32xf32>
    %cst = arith.constant dense<0.000000e+00> : vector<16x32xf32>
    %90 = tpu.matmul %3, %88, %cst {dimension_numbers = #tpu.dot_dimension_numbers<[1], [0], [0], [1], [0, 0, 1, 1], [], []>} : vector<16x32xbf16>, vector<32x32xbf16>, vector<16x32xf32> -> vector<16x32xf32>
    %91 = arith.addf %89, %90 : vector<16x32xf32>
    %c0_38 = arith.constant 0 : index
    %c0_39 = arith.constant 0 : index
    %92 = vector.load %arg9[%c0_38, %c0_39] : memref<16x32xf32, #tpu.memory_space<vmem>>, vector<16x32xf32>
    tpu.vector_store %arg9[%c0_38, %c0_39], %91 {strides = array<i32>} : memref<16x32xf32, #tpu.memory_space<vmem>>, vector<16x32xf32>,
    %c0_i32_40 = arith.constant 0 : i32
    %93 = arith.cmpi eq, %arg2, %c0_i32_40 : i32
    %94 = arith.extui %93 : i1 to i32
    %c0_i32_41 = arith.constant 0 : i32
    %95 = arith.cmpi ne, %94, %c0_i32_41 : i32
    scf.if %95 {
      %c0_42 = arith.constant 0 : index
      %c0_43 = arith.constant 0 : index
      %96 = vector.load %arg9[%c0_42, %c0_43] : memref<16x32xf32, #tpu.memory_space<vmem>>, vector<16x32xf32>
      %c0_44 = arith.constant 0 : index
      %c0_45 = arith.constant 0 : index
      %97 = vector.load %arg7[%c0_44, %c0_45] : memref<16x32xf32, #tpu.memory_space<vmem>>, vector<16x32xf32>
      %98 = arith.addf %96, %97 : vector<16x32xf32>
      %c0_46 = arith.constant 0 : index
      %c0_47 = arith.constant 0 : index
      %99 = vector.load %arg8[%c0_46, %c0_47] : memref<16x32xf32, #tpu.memory_space<vmem>>, vector<16x32xf32>
      tpu.vector_store %arg8[%c0_46, %c0_47], %98 {strides = array<i32>} : memref<16x32xf32, #tpu.memory_space<vmem>>, vector<16x32xf32>,
    } else {
    }
    return
  }
  func.func @transform_0(%arg0: i32, %arg1: i32, %arg2: i32) -> (i32, i32) {
    %c0_i32 = arith.constant 0 : i32
    return %arg0, %arg2 : i32, i32
  }
  func.func @transform_1(%arg0: i32, %arg1: i32, %arg2: i32) -> (i32, i32) {
    %c0_i32 = arith.constant 0 : i32
    return %arg2, %arg1 : i32, i32
  }
  func.func @transform_2(%arg0: i32, %arg1: i32, %arg2: i32) -> (i32, i32) {
    %c0_i32 = arith.constant 0 : i32
    return %arg2, %arg1 : i32, i32
  }
  func.func @transform_3(%arg0: i32, %arg1: i32, %arg2: i32) -> (i32, i32) {
    %c0_i32 = arith.constant 0 : i32
    return %arg2, %arg1 : i32, i32
  }
  func.func @transform_4(%arg0: i32, %arg1: i32, %arg2: i32) -> (i32, i32) {
    %c0_i32 = arith.constant 0 : i32
    return %arg0, %arg1 : i32, i32
  }
  func.func @transform_5(%arg0: i32, %arg1: i32, %arg2: i32) -> (i32, i32) {
    %c0_i32 = arith.constant 0 : i32
    return %arg0, %arg1 : i32, i32
  }
}

module attributes {stable_mosaic.version = 11 : i64} {
  func.func @kernel(%arg0: i32, %arg1: i32, %arg2: i32, %arg3: memref<16x128xbf16, #tpu.memory_space<vmem>>, %arg4: memref<16x128xbf16, #tpu.memory_space<vmem>>, %arg5: memref<16x32xi32, #tpu.memory_space<vmem>>, %arg6: memref<8x32xf32, #tpu.memory_space<vmem>>, %arg7: memref<8x32xf32, #tpu.memory_space<vmem>>, %arg8: memref<16x32xf32, #tpu.memory_space<vmem>>, %arg9: memref<16x32xf32, #tpu.memory_space<vmem>>, %arg10: memref<16x32xf32, #tpu.memory_space<vmem>>) attributes {dimension_semantics = [#tpu.dimension_semantics<parallel>, #tpu.dimension_semantics<parallel>, #tpu.dimension_semantics<arbitrary>], iteration_bounds = array<i64: 1, 1, 1>, scalar_prefetch = 0 : i64, scratch_operands = 1 : i64, tpu.core_type = #tpu.core_type<tc>, window_params = [{transform_indices = @transform_0, window_bounds = array<i64: 16, 128>}, {transform_indices = @transform_1, window_bounds = array<i64: 16, 128>}, {transform_indices = @transform_2, window_bounds = array<i64: 16, 32>}, {transform_indices = @transform_3, window_bounds = array<i64: 8, 32>}, {transform_indices = @transform_4, window_bounds = array<i64: 8, 32>}, {transform_indices = @transform_5, window_bounds = array<i64: 16, 32>}, {transform_indices = @transform_6, window_bounds = array<i64: 16, 32>}]} {
    %c0_i32 = arith.constant 0 : i32
    %0 = arith.cmpi eq, %arg2, %c0_i32 : i32
    %1 = arith.extui %0 : i1 to i32
    %c0_i32_0 = arith.constant 0 : i32
    %2 = arith.cmpi ne, %1, %c0_i32_0 : i32
    scf.if %2 {
      %cst_168 = arith.constant 0.000000e+00 : f32
      %359 = vector.broadcast %cst_168 : f32 to vector<16x32xf32>
      %c0_169 = arith.constant 0 : index
      %c0_170 = arith.constant 0 : index
      %360 = vector.load %arg10[%c0_169, %c0_170] : memref<16x32xf32, #tpu.memory_space<vmem>>, vector<16x32xf32>
      tpu.vector_store %arg10[%c0_169, %c0_170], %359 {strides = array<i32>} : memref<16x32xf32, #tpu.memory_space<vmem>>, vector<16x32xf32>,
    } else {
    }
    %c0 = arith.constant 0 : index
    %c0_1 = arith.constant 0 : index
    %3 = vector.load %arg3[%c0, %c0_1] : memref<16x128xbf16, #tpu.memory_space<vmem>>, vector<16x128xbf16>
    %4 = arith.extf %3 : vector<16x128xbf16> to vector<16x128xf32>
    %c0_2 = arith.constant 0 : index
    %c0_3 = arith.constant 0 : index
    %5 = vector.load %arg4[%c0_2, %c0_3] : memref<16x128xbf16, #tpu.memory_space<vmem>>, vector<16x128xbf16>
    %6 = arith.extf %5 : vector<16x128xbf16> to vector<16x128xf32>
    %7 = arith.negf %4 : vector<16x128xf32>
    %8 = math.exp %7 : vector<16x128xf32>
    %cst = arith.constant 1.000000e+00 : f32
    %9 = vector.broadcast %cst : f32 to vector<16x128xf32>
    %10 = arith.addf %9, %8 : vector<16x128xf32>
    %11 = arith.divf %9, %10 : vector<16x128xf32>
    %12 = arith.mulf %4, %11 : vector<16x128xf32>
    %13 = arith.mulf %12, %6 : vector<16x128xf32>
    %14 = arith.truncf %13 : vector<16x128xf32> to vector<16x128xbf16>
    %c0_4 = arith.constant 0 : index
    %c0_5 = arith.constant 0 : index
    %15 = vector.load %arg5[%c0_4, %c0_5] : memref<16x32xi32, #tpu.memory_space<vmem>>, vector<2x32xi32>
    %c0_i32_6 = arith.constant 0 : i32
    %16 = vector.broadcast %c0_i32_6 : i32 to vector<2x32xi32>
    %17 = arith.shrsi %15, %16 : vector<2x32xi32>
    %c15_i32 = arith.constant 15 : i32
    %18 = vector.broadcast %c15_i32 : i32 to vector<2x32xi32>
    %19 = arith.andi %17, %18 : vector<2x32xi32>
    %c4_i32 = arith.constant 4 : i32
    %20 = vector.broadcast %c4_i32 : i32 to vector<2x32xi32>
    %21 = arith.shrsi %15, %20 : vector<2x32xi32>
    %c15_i32_7 = arith.constant 15 : i32
    %22 = vector.broadcast %c15_i32_7 : i32 to vector<2x32xi32>
    %23 = arith.andi %21, %22 : vector<2x32xi32>
    %c8_i32 = arith.constant 8 : i32
    %24 = vector.broadcast %c8_i32 : i32 to vector<2x32xi32>
    %25 = arith.shrsi %15, %24 : vector<2x32xi32>
    %c15_i32_8 = arith.constant 15 : i32
    %26 = vector.broadcast %c15_i32_8 : i32 to vector<2x32xi32>
    %27 = arith.andi %25, %26 : vector<2x32xi32>
    %c12_i32 = arith.constant 12 : i32
    %28 = vector.broadcast %c12_i32 : i32 to vector<2x32xi32>
    %29 = arith.shrsi %15, %28 : vector<2x32xi32>
    %c15_i32_9 = arith.constant 15 : i32
    %30 = vector.broadcast %c15_i32_9 : i32 to vector<2x32xi32>
    %31 = arith.andi %29, %30 : vector<2x32xi32>
    %c16_i32 = arith.constant 16 : i32
    %32 = vector.broadcast %c16_i32 : i32 to vector<2x32xi32>
    %33 = arith.shrsi %15, %32 : vector<2x32xi32>
    %c15_i32_10 = arith.constant 15 : i32
    %34 = vector.broadcast %c15_i32_10 : i32 to vector<2x32xi32>
    %35 = arith.andi %33, %34 : vector<2x32xi32>
    %c20_i32 = arith.constant 20 : i32
    %36 = vector.broadcast %c20_i32 : i32 to vector<2x32xi32>
    %37 = arith.shrsi %15, %36 : vector<2x32xi32>
    %c15_i32_11 = arith.constant 15 : i32
    %38 = vector.broadcast %c15_i32_11 : i32 to vector<2x32xi32>
    %39 = arith.andi %37, %38 : vector<2x32xi32>
    %c24_i32 = arith.constant 24 : i32
    %40 = vector.broadcast %c24_i32 : i32 to vector<2x32xi32>
    %41 = arith.shrsi %15, %40 : vector<2x32xi32>
    %c15_i32_12 = arith.constant 15 : i32
    %42 = vector.broadcast %c15_i32_12 : i32 to vector<2x32xi32>
    %43 = arith.andi %41, %42 : vector<2x32xi32>
    %c28_i32 = arith.constant 28 : i32
    %44 = vector.broadcast %c28_i32 : i32 to vector<2x32xi32>
    %45 = arith.shrsi %15, %44 : vector<2x32xi32>
    %c15_i32_13 = arith.constant 15 : i32
    %46 = vector.broadcast %c15_i32_13 : i32 to vector<2x32xi32>
    %47 = arith.andi %45, %46 : vector<2x32xi32>
    %48 = tpu.concatenate %19, %23, %27, %31, %35, %39, %43, %47 in 0 : vector<2x32xi32>, vector<2x32xi32>, vector<2x32xi32>, vector<2x32xi32>, vector<2x32xi32>, vector<2x32xi32>, vector<2x32xi32>, vector<2x32xi32> -> vector<16x32xi32>
    %49 = arith.sitofp %48 : vector<16x32xi32> to vector<16x32xf32>
    %c0_14 = arith.constant 0 : index
    %c0_15 = arith.constant 0 : index
    %50 = vector.load %arg6[%c0_14, %c0_15] : memref<8x32xf32, #tpu.memory_space<vmem>>, vector<1x32xf32>
    %51 = vector.broadcast %50 : vector<1x32xf32> to vector<16x32xf32>
    %52 = arith.mulf %49, %51 : vector<16x32xf32>
    %c0_16 = arith.constant 0 : index
    %c0_17 = arith.constant 0 : index
    %53 = vector.load %arg7[%c0_16, %c0_17] : memref<8x32xf32, #tpu.memory_space<vmem>>, vector<1x32xf32>
    %54 = vector.broadcast %53 : vector<1x32xf32> to vector<16x32xf32>
    %55 = arith.subf %52, %54 : vector<16x32xf32>
    %56 = arith.truncf %55 : vector<16x32xf32> to vector<16x32xbf16>
    %c2 = arith.constant 2 : index
    %c0_18 = arith.constant 0 : index
    %57 = vector.load %arg5[%c2, %c0_18] : memref<16x32xi32, #tpu.memory_space<vmem>>, vector<2x32xi32>
    %c0_i32_19 = arith.constant 0 : i32
    %58 = vector.broadcast %c0_i32_19 : i32 to vector<2x32xi32>
    %59 = arith.shrsi %57, %58 : vector<2x32xi32>
    %c15_i32_20 = arith.constant 15 : i32
    %60 = vector.broadcast %c15_i32_20 : i32 to vector<2x32xi32>
    %61 = arith.andi %59, %60 : vector<2x32xi32>
    %c4_i32_21 = arith.constant 4 : i32
    %62 = vector.broadcast %c4_i32_21 : i32 to vector<2x32xi32>
    %63 = arith.shrsi %57, %62 : vector<2x32xi32>
    %c15_i32_22 = arith.constant 15 : i32
    %64 = vector.broadcast %c15_i32_22 : i32 to vector<2x32xi32>
    %65 = arith.andi %63, %64 : vector<2x32xi32>
    %c8_i32_23 = arith.constant 8 : i32
    %66 = vector.broadcast %c8_i32_23 : i32 to vector<2x32xi32>
    %67 = arith.shrsi %57, %66 : vector<2x32xi32>
    %c15_i32_24 = arith.constant 15 : i32
    %68 = vector.broadcast %c15_i32_24 : i32 to vector<2x32xi32>
    %69 = arith.andi %67, %68 : vector<2x32xi32>
    %c12_i32_25 = arith.constant 12 : i32
    %70 = vector.broadcast %c12_i32_25 : i32 to vector<2x32xi32>
    %71 = arith.shrsi %57, %70 : vector<2x32xi32>
    %c15_i32_26 = arith.constant 15 : i32
    %72 = vector.broadcast %c15_i32_26 : i32 to vector<2x32xi32>
    %73 = arith.andi %71, %72 : vector<2x32xi32>
    %c16_i32_27 = arith.constant 16 : i32
    %74 = vector.broadcast %c16_i32_27 : i32 to vector<2x32xi32>
    %75 = arith.shrsi %57, %74 : vector<2x32xi32>
    %c15_i32_28 = arith.constant 15 : i32
    %76 = vector.broadcast %c15_i32_28 : i32 to vector<2x32xi32>
    %77 = arith.andi %75, %76 : vector<2x32xi32>
    %c20_i32_29 = arith.constant 20 : i32
    %78 = vector.broadcast %c20_i32_29 : i32 to vector<2x32xi32>
    %79 = arith.shrsi %57, %78 : vector<2x32xi32>
    %c15_i32_30 = arith.constant 15 : i32
    %80 = vector.broadcast %c15_i32_30 : i32 to vector<2x32xi32>
    %81 = arith.andi %79, %80 : vector<2x32xi32>
    %c24_i32_31 = arith.constant 24 : i32
    %82 = vector.broadcast %c24_i32_31 : i32 to vector<2x32xi32>
    %83 = arith.shrsi %57, %82 : vector<2x32xi32>
    %c15_i32_32 = arith.constant 15 : i32
    %84 = vector.broadcast %c15_i32_32 : i32 to vector<2x32xi32>
    %85 = arith.andi %83, %84 : vector<2x32xi32>
    %c28_i32_33 = arith.constant 28 : i32
    %86 = vector.broadcast %c28_i32_33 : i32 to vector<2x32xi32>
    %87 = arith.shrsi %57, %86 : vector<2x32xi32>
    %c15_i32_34 = arith.constant 15 : i32
    %88 = vector.broadcast %c15_i32_34 : i32 to vector<2x32xi32>
    %89 = arith.andi %87, %88 : vector<2x32xi32>
    %90 = tpu.concatenate %61, %65, %69, %73, %77, %81, %85, %89 in 0 : vector<2x32xi32>, vector<2x32xi32>, vector<2x32xi32>, vector<2x32xi32>, vector<2x32xi32>, vector<2x32xi32>, vector<2x32xi32>, vector<2x32xi32> -> vector<16x32xi32>
    %91 = arith.sitofp %90 : vector<16x32xi32> to vector<16x32xf32>
    %c1 = arith.constant 1 : index
    %c0_35 = arith.constant 0 : index
    %92 = vector.load %arg6[%c1, %c0_35] : memref<8x32xf32, #tpu.memory_space<vmem>>, vector<1x32xf32>
    %93 = vector.broadcast %92 : vector<1x32xf32> to vector<16x32xf32>
    %94 = arith.mulf %91, %93 : vector<16x32xf32>
    %c1_36 = arith.constant 1 : index
    %c0_37 = arith.constant 0 : index
    %95 = vector.load %arg7[%c1_36, %c0_37] : memref<8x32xf32, #tpu.memory_space<vmem>>, vector<1x32xf32>
    %96 = vector.broadcast %95 : vector<1x32xf32> to vector<16x32xf32>
    %97 = arith.subf %94, %96 : vector<16x32xf32>
    %98 = arith.truncf %97 : vector<16x32xf32> to vector<16x32xbf16>
    %c4 = arith.constant 4 : index
    %c0_38 = arith.constant 0 : index
    %99 = vector.load %arg5[%c4, %c0_38] : memref<16x32xi32, #tpu.memory_space<vmem>>, vector<2x32xi32>
    %c0_i32_39 = arith.constant 0 : i32
    %100 = vector.broadcast %c0_i32_39 : i32 to vector<2x32xi32>
    %101 = arith.shrsi %99, %100 : vector<2x32xi32>
    %c15_i32_40 = arith.constant 15 : i32
    %102 = vector.broadcast %c15_i32_40 : i32 to vector<2x32xi32>
    %103 = arith.andi %101, %102 : vector<2x32xi32>
    %c4_i32_41 = arith.constant 4 : i32
    %104 = vector.broadcast %c4_i32_41 : i32 to vector<2x32xi32>
    %105 = arith.shrsi %99, %104 : vector<2x32xi32>
    %c15_i32_42 = arith.constant 15 : i32
    %106 = vector.broadcast %c15_i32_42 : i32 to vector<2x32xi32>
    %107 = arith.andi %105, %106 : vector<2x32xi32>
    %c8_i32_43 = arith.constant 8 : i32
    %108 = vector.broadcast %c8_i32_43 : i32 to vector<2x32xi32>
    %109 = arith.shrsi %99, %108 : vector<2x32xi32>
    %c15_i32_44 = arith.constant 15 : i32
    %110 = vector.broadcast %c15_i32_44 : i32 to vector<2x32xi32>
    %111 = arith.andi %109, %110 : vector<2x32xi32>
    %c12_i32_45 = arith.constant 12 : i32
    %112 = vector.broadcast %c12_i32_45 : i32 to vector<2x32xi32>
    %113 = arith.shrsi %99, %112 : vector<2x32xi32>
    %c15_i32_46 = arith.constant 15 : i32
    %114 = vector.broadcast %c15_i32_46 : i32 to vector<2x32xi32>
    %115 = arith.andi %113, %114 : vector<2x32xi32>
    %c16_i32_47 = arith.constant 16 : i32
    %116 = vector.broadcast %c16_i32_47 : i32 to vector<2x32xi32>
    %117 = arith.shrsi %99, %116 : vector<2x32xi32>
    %c15_i32_48 = arith.constant 15 : i32
    %118 = vector.broadcast %c15_i32_48 : i32 to vector<2x32xi32>
    %119 = arith.andi %117, %118 : vector<2x32xi32>
    %c20_i32_49 = arith.constant 20 : i32
    %120 = vector.broadcast %c20_i32_49 : i32 to vector<2x32xi32>
    %121 = arith.shrsi %99, %120 : vector<2x32xi32>
    %c15_i32_50 = arith.constant 15 : i32
    %122 = vector.broadcast %c15_i32_50 : i32 to vector<2x32xi32>
    %123 = arith.andi %121, %122 : vector<2x32xi32>
    %c24_i32_51 = arith.constant 24 : i32
    %124 = vector.broadcast %c24_i32_51 : i32 to vector<2x32xi32>
    %125 = arith.shrsi %99, %124 : vector<2x32xi32>
    %c15_i32_52 = arith.constant 15 : i32
    %126 = vector.broadcast %c15_i32_52 : i32 to vector<2x32xi32>
    %127 = arith.andi %125, %126 : vector<2x32xi32>
    %c28_i32_53 = arith.constant 28 : i32
    %128 = vector.broadcast %c28_i32_53 : i32 to vector<2x32xi32>
    %129 = arith.shrsi %99, %128 : vector<2x32xi32>
    %c15_i32_54 = arith.constant 15 : i32
    %130 = vector.broadcast %c15_i32_54 : i32 to vector<2x32xi32>
    %131 = arith.andi %129, %130 : vector<2x32xi32>
    %132 = tpu.concatenate %103, %107, %111, %115, %119, %123, %127, %131 in 0 : vector<2x32xi32>, vector<2x32xi32>, vector<2x32xi32>, vector<2x32xi32>, vector<2x32xi32>, vector<2x32xi32>, vector<2x32xi32>, vector<2x32xi32> -> vector<16x32xi32>
    %133 = arith.sitofp %132 : vector<16x32xi32> to vector<16x32xf32>
    %c2_55 = arith.constant 2 : index
    %c0_56 = arith.constant 0 : index
    %134 = vector.load %arg6[%c2_55, %c0_56] : memref<8x32xf32, #tpu.memory_space<vmem>>, vector<1x32xf32>
    %135 = vector.broadcast %134 : vector<1x32xf32> to vector<16x32xf32>
    %136 = arith.mulf %133, %135 : vector<16x32xf32>
    %c2_57 = arith.constant 2 : index
    %c0_58 = arith.constant 0 : index
    %137 = vector.load %arg7[%c2_57, %c0_58] : memref<8x32xf32, #tpu.memory_space<vmem>>, vector<1x32xf32>
    %138 = vector.broadcast %137 : vector<1x32xf32> to vector<16x32xf32>
    %139 = arith.subf %136, %138 : vector<16x32xf32>
    %140 = arith.truncf %139 : vector<16x32xf32> to vector<16x32xbf16>
    %c6 = arith.constant 6 : index
    %c0_59 = arith.constant 0 : index
    %141 = vector.load %arg5[%c6, %c0_59] : memref<16x32xi32, #tpu.memory_space<vmem>>, vector<2x32xi32>
    %c0_i32_60 = arith.constant 0 : i32
    %142 = vector.broadcast %c0_i32_60 : i32 to vector<2x32xi32>
    %143 = arith.shrsi %141, %142 : vector<2x32xi32>
    %c15_i32_61 = arith.constant 15 : i32
    %144 = vector.broadcast %c15_i32_61 : i32 to vector<2x32xi32>
    %145 = arith.andi %143, %144 : vector<2x32xi32>
    %c4_i32_62 = arith.constant 4 : i32
    %146 = vector.broadcast %c4_i32_62 : i32 to vector<2x32xi32>
    %147 = arith.shrsi %141, %146 : vector<2x32xi32>
    %c15_i32_63 = arith.constant 15 : i32
    %148 = vector.broadcast %c15_i32_63 : i32 to vector<2x32xi32>
    %149 = arith.andi %147, %148 : vector<2x32xi32>
    %c8_i32_64 = arith.constant 8 : i32
    %150 = vector.broadcast %c8_i32_64 : i32 to vector<2x32xi32>
    %151 = arith.shrsi %141, %150 : vector<2x32xi32>
    %c15_i32_65 = arith.constant 15 : i32
    %152 = vector.broadcast %c15_i32_65 : i32 to vector<2x32xi32>
    %153 = arith.andi %151, %152 : vector<2x32xi32>
    %c12_i32_66 = arith.constant 12 : i32
    %154 = vector.broadcast %c12_i32_66 : i32 to vector<2x32xi32>
    %155 = arith.shrsi %141, %154 : vector<2x32xi32>
    %c15_i32_67 = arith.constant 15 : i32
    %156 = vector.broadcast %c15_i32_67 : i32 to vector<2x32xi32>
    %157 = arith.andi %155, %156 : vector<2x32xi32>
    %c16_i32_68 = arith.constant 16 : i32
    %158 = vector.broadcast %c16_i32_68 : i32 to vector<2x32xi32>
    %159 = arith.shrsi %141, %158 : vector<2x32xi32>
    %c15_i32_69 = arith.constant 15 : i32
    %160 = vector.broadcast %c15_i32_69 : i32 to vector<2x32xi32>
    %161 = arith.andi %159, %160 : vector<2x32xi32>
    %c20_i32_70 = arith.constant 20 : i32
    %162 = vector.broadcast %c20_i32_70 : i32 to vector<2x32xi32>
    %163 = arith.shrsi %141, %162 : vector<2x32xi32>
    %c15_i32_71 = arith.constant 15 : i32
    %164 = vector.broadcast %c15_i32_71 : i32 to vector<2x32xi32>
    %165 = arith.andi %163, %164 : vector<2x32xi32>
    %c24_i32_72 = arith.constant 24 : i32
    %166 = vector.broadcast %c24_i32_72 : i32 to vector<2x32xi32>
    %167 = arith.shrsi %141, %166 : vector<2x32xi32>
    %c15_i32_73 = arith.constant 15 : i32
    %168 = vector.broadcast %c15_i32_73 : i32 to vector<2x32xi32>
    %169 = arith.andi %167, %168 : vector<2x32xi32>
    %c28_i32_74 = arith.constant 28 : i32
    %170 = vector.broadcast %c28_i32_74 : i32 to vector<2x32xi32>
    %171 = arith.shrsi %141, %170 : vector<2x32xi32>
    %c15_i32_75 = arith.constant 15 : i32
    %172 = vector.broadcast %c15_i32_75 : i32 to vector<2x32xi32>
    %173 = arith.andi %171, %172 : vector<2x32xi32>
    %174 = tpu.concatenate %145, %149, %153, %157, %161, %165, %169, %173 in 0 : vector<2x32xi32>, vector<2x32xi32>, vector<2x32xi32>, vector<2x32xi32>, vector<2x32xi32>, vector<2x32xi32>, vector<2x32xi32>, vector<2x32xi32> -> vector<16x32xi32>
    %175 = arith.sitofp %174 : vector<16x32xi32> to vector<16x32xf32>
    %c3 = arith.constant 3 : index
    %c0_76 = arith.constant 0 : index
    %176 = vector.load %arg6[%c3, %c0_76] : memref<8x32xf32, #tpu.memory_space<vmem>>, vector<1x32xf32>
    %177 = vector.broadcast %176 : vector<1x32xf32> to vector<16x32xf32>
    %178 = arith.mulf %175, %177 : vector<16x32xf32>
    %c3_77 = arith.constant 3 : index
    %c0_78 = arith.constant 0 : index
    %179 = vector.load %arg7[%c3_77, %c0_78] : memref<8x32xf32, #tpu.memory_space<vmem>>, vector<1x32xf32>
    %180 = vector.broadcast %179 : vector<1x32xf32> to vector<16x32xf32>
    %181 = arith.subf %178, %180 : vector<16x32xf32>
    %182 = arith.truncf %181 : vector<16x32xf32> to vector<16x32xbf16>
    %c8 = arith.constant 8 : index
    %c0_79 = arith.constant 0 : index
    %183 = vector.load %arg5[%c8, %c0_79] : memref<16x32xi32, #tpu.memory_space<vmem>>, vector<2x32xi32>
    %c0_i32_80 = arith.constant 0 : i32
    %184 = vector.broadcast %c0_i32_80 : i32 to vector<2x32xi32>
    %185 = arith.shrsi %183, %184 : vector<2x32xi32>
    %c15_i32_81 = arith.constant 15 : i32
    %186 = vector.broadcast %c15_i32_81 : i32 to vector<2x32xi32>
    %187 = arith.andi %185, %186 : vector<2x32xi32>
    %c4_i32_82 = arith.constant 4 : i32
    %188 = vector.broadcast %c4_i32_82 : i32 to vector<2x32xi32>
    %189 = arith.shrsi %183, %188 : vector<2x32xi32>
    %c15_i32_83 = arith.constant 15 : i32
    %190 = vector.broadcast %c15_i32_83 : i32 to vector<2x32xi32>
    %191 = arith.andi %189, %190 : vector<2x32xi32>
    %c8_i32_84 = arith.constant 8 : i32
    %192 = vector.broadcast %c8_i32_84 : i32 to vector<2x32xi32>
    %193 = arith.shrsi %183, %192 : vector<2x32xi32>
    %c15_i32_85 = arith.constant 15 : i32
    %194 = vector.broadcast %c15_i32_85 : i32 to vector<2x32xi32>
    %195 = arith.andi %193, %194 : vector<2x32xi32>
    %c12_i32_86 = arith.constant 12 : i32
    %196 = vector.broadcast %c12_i32_86 : i32 to vector<2x32xi32>
    %197 = arith.shrsi %183, %196 : vector<2x32xi32>
    %c15_i32_87 = arith.constant 15 : i32
    %198 = vector.broadcast %c15_i32_87 : i32 to vector<2x32xi32>
    %199 = arith.andi %197, %198 : vector<2x32xi32>
    %c16_i32_88 = arith.constant 16 : i32
    %200 = vector.broadcast %c16_i32_88 : i32 to vector<2x32xi32>
    %201 = arith.shrsi %183, %200 : vector<2x32xi32>
    %c15_i32_89 = arith.constant 15 : i32
    %202 = vector.broadcast %c15_i32_89 : i32 to vector<2x32xi32>
    %203 = arith.andi %201, %202 : vector<2x32xi32>
    %c20_i32_90 = arith.constant 20 : i32
    %204 = vector.broadcast %c20_i32_90 : i32 to vector<2x32xi32>
    %205 = arith.shrsi %183, %204 : vector<2x32xi32>
    %c15_i32_91 = arith.constant 15 : i32
    %206 = vector.broadcast %c15_i32_91 : i32 to vector<2x32xi32>
    %207 = arith.andi %205, %206 : vector<2x32xi32>
    %c24_i32_92 = arith.constant 24 : i32
    %208 = vector.broadcast %c24_i32_92 : i32 to vector<2x32xi32>
    %209 = arith.shrsi %183, %208 : vector<2x32xi32>
    %c15_i32_93 = arith.constant 15 : i32
    %210 = vector.broadcast %c15_i32_93 : i32 to vector<2x32xi32>
    %211 = arith.andi %209, %210 : vector<2x32xi32>
    %c28_i32_94 = arith.constant 28 : i32
    %212 = vector.broadcast %c28_i32_94 : i32 to vector<2x32xi32>
    %213 = arith.shrsi %183, %212 : vector<2x32xi32>
    %c15_i32_95 = arith.constant 15 : i32
    %214 = vector.broadcast %c15_i32_95 : i32 to vector<2x32xi32>
    %215 = arith.andi %213, %214 : vector<2x32xi32>
    %216 = tpu.concatenate %187, %191, %195, %199, %203, %207, %211, %215 in 0 : vector<2x32xi32>, vector<2x32xi32>, vector<2x32xi32>, vector<2x32xi32>, vector<2x32xi32>, vector<2x32xi32>, vector<2x32xi32>, vector<2x32xi32> -> vector<16x32xi32>
    %217 = arith.sitofp %216 : vector<16x32xi32> to vector<16x32xf32>
    %c4_96 = arith.constant 4 : index
    %c0_97 = arith.constant 0 : index
    %218 = vector.load %arg6[%c4_96, %c0_97] : memref<8x32xf32, #tpu.memory_space<vmem>>, vector<1x32xf32>
    %219 = vector.broadcast %218 : vector<1x32xf32> to vector<16x32xf32>
    %220 = arith.mulf %217, %219 : vector<16x32xf32>
    %c4_98 = arith.constant 4 : index
    %c0_99 = arith.constant 0 : index
    %221 = vector.load %arg7[%c4_98, %c0_99] : memref<8x32xf32, #tpu.memory_space<vmem>>, vector<1x32xf32>
    %222 = vector.broadcast %221 : vector<1x32xf32> to vector<16x32xf32>
    %223 = arith.subf %220, %222 : vector<16x32xf32>
    %224 = arith.truncf %223 : vector<16x32xf32> to vector<16x32xbf16>
    %c10 = arith.constant 10 : index
    %c0_100 = arith.constant 0 : index
    %225 = vector.load %arg5[%c10, %c0_100] : memref<16x32xi32, #tpu.memory_space<vmem>>, vector<2x32xi32>
    %c0_i32_101 = arith.constant 0 : i32
    %226 = vector.broadcast %c0_i32_101 : i32 to vector<2x32xi32>
    %227 = arith.shrsi %225, %226 : vector<2x32xi32>
    %c15_i32_102 = arith.constant 15 : i32
    %228 = vector.broadcast %c15_i32_102 : i32 to vector<2x32xi32>
    %229 = arith.andi %227, %228 : vector<2x32xi32>
    %c4_i32_103 = arith.constant 4 : i32
    %230 = vector.broadcast %c4_i32_103 : i32 to vector<2x32xi32>
    %231 = arith.shrsi %225, %230 : vector<2x32xi32>
    %c15_i32_104 = arith.constant 15 : i32
    %232 = vector.broadcast %c15_i32_104 : i32 to vector<2x32xi32>
    %233 = arith.andi %231, %232 : vector<2x32xi32>
    %c8_i32_105 = arith.constant 8 : i32
    %234 = vector.broadcast %c8_i32_105 : i32 to vector<2x32xi32>
    %235 = arith.shrsi %225, %234 : vector<2x32xi32>
    %c15_i32_106 = arith.constant 15 : i32
    %236 = vector.broadcast %c15_i32_106 : i32 to vector<2x32xi32>
    %237 = arith.andi %235, %236 : vector<2x32xi32>
    %c12_i32_107 = arith.constant 12 : i32
    %238 = vector.broadcast %c12_i32_107 : i32 to vector<2x32xi32>
    %239 = arith.shrsi %225, %238 : vector<2x32xi32>
    %c15_i32_108 = arith.constant 15 : i32
    %240 = vector.broadcast %c15_i32_108 : i32 to vector<2x32xi32>
    %241 = arith.andi %239, %240 : vector<2x32xi32>
    %c16_i32_109 = arith.constant 16 : i32
    %242 = vector.broadcast %c16_i32_109 : i32 to vector<2x32xi32>
    %243 = arith.shrsi %225, %242 : vector<2x32xi32>
    %c15_i32_110 = arith.constant 15 : i32
    %244 = vector.broadcast %c15_i32_110 : i32 to vector<2x32xi32>
    %245 = arith.andi %243, %244 : vector<2x32xi32>
    %c20_i32_111 = arith.constant 20 : i32
    %246 = vector.broadcast %c20_i32_111 : i32 to vector<2x32xi32>
    %247 = arith.shrsi %225, %246 : vector<2x32xi32>
    %c15_i32_112 = arith.constant 15 : i32
    %248 = vector.broadcast %c15_i32_112 : i32 to vector<2x32xi32>
    %249 = arith.andi %247, %248 : vector<2x32xi32>
    %c24_i32_113 = arith.constant 24 : i32
    %250 = vector.broadcast %c24_i32_113 : i32 to vector<2x32xi32>
    %251 = arith.shrsi %225, %250 : vector<2x32xi32>
    %c15_i32_114 = arith.constant 15 : i32
    %252 = vector.broadcast %c15_i32_114 : i32 to vector<2x32xi32>
    %253 = arith.andi %251, %252 : vector<2x32xi32>
    %c28_i32_115 = arith.constant 28 : i32
    %254 = vector.broadcast %c28_i32_115 : i32 to vector<2x32xi32>
    %255 = arith.shrsi %225, %254 : vector<2x32xi32>
    %c15_i32_116 = arith.constant 15 : i32
    %256 = vector.broadcast %c15_i32_116 : i32 to vector<2x32xi32>
    %257 = arith.andi %255, %256 : vector<2x32xi32>
    %258 = tpu.concatenate %229, %233, %237, %241, %245, %249, %253, %257 in 0 : vector<2x32xi32>, vector<2x32xi32>, vector<2x32xi32>, vector<2x32xi32>, vector<2x32xi32>, vector<2x32xi32>, vector<2x32xi32>, vector<2x32xi32> -> vector<16x32xi32>
    %259 = arith.sitofp %258 : vector<16x32xi32> to vector<16x32xf32>
    %c5 = arith.constant 5 : index
    %c0_117 = arith.constant 0 : index
    %260 = vector.load %arg6[%c5, %c0_117] : memref<8x32xf32, #tpu.memory_space<vmem>>, vector<1x32xf32>
    %261 = vector.broadcast %260 : vector<1x32xf32> to vector<16x32xf32>
    %262 = arith.mulf %259, %261 : vector<16x32xf32>
    %c5_118 = arith.constant 5 : index
    %c0_119 = arith.constant 0 : index
    %263 = vector.load %arg7[%c5_118, %c0_119] : memref<8x32xf32, #tpu.memory_space<vmem>>, vector<1x32xf32>
    %264 = vector.broadcast %263 : vector<1x32xf32> to vector<16x32xf32>
    %265 = arith.subf %262, %264 : vector<16x32xf32>
    %266 = arith.truncf %265 : vector<16x32xf32> to vector<16x32xbf16>
    %c12 = arith.constant 12 : index
    %c0_120 = arith.constant 0 : index
    %267 = vector.load %arg5[%c12, %c0_120] : memref<16x32xi32, #tpu.memory_space<vmem>>, vector<2x32xi32>
    %c0_i32_121 = arith.constant 0 : i32
    %268 = vector.broadcast %c0_i32_121 : i32 to vector<2x32xi32>
    %269 = arith.shrsi %267, %268 : vector<2x32xi32>
    %c15_i32_122 = arith.constant 15 : i32
    %270 = vector.broadcast %c15_i32_122 : i32 to vector<2x32xi32>
    %271 = arith.andi %269, %270 : vector<2x32xi32>
    %c4_i32_123 = arith.constant 4 : i32
    %272 = vector.broadcast %c4_i32_123 : i32 to vector<2x32xi32>
    %273 = arith.shrsi %267, %272 : vector<2x32xi32>
    %c15_i32_124 = arith.constant 15 : i32
    %274 = vector.broadcast %c15_i32_124 : i32 to vector<2x32xi32>
    %275 = arith.andi %273, %274 : vector<2x32xi32>
    %c8_i32_125 = arith.constant 8 : i32
    %276 = vector.broadcast %c8_i32_125 : i32 to vector<2x32xi32>
    %277 = arith.shrsi %267, %276 : vector<2x32xi32>
    %c15_i32_126 = arith.constant 15 : i32
    %278 = vector.broadcast %c15_i32_126 : i32 to vector<2x32xi32>
    %279 = arith.andi %277, %278 : vector<2x32xi32>
    %c12_i32_127 = arith.constant 12 : i32
    %280 = vector.broadcast %c12_i32_127 : i32 to vector<2x32xi32>
    %281 = arith.shrsi %267, %280 : vector<2x32xi32>
    %c15_i32_128 = arith.constant 15 : i32
    %282 = vector.broadcast %c15_i32_128 : i32 to vector<2x32xi32>
    %283 = arith.andi %281, %282 : vector<2x32xi32>
    %c16_i32_129 = arith.constant 16 : i32
    %284 = vector.broadcast %c16_i32_129 : i32 to vector<2x32xi32>
    %285 = arith.shrsi %267, %284 : vector<2x32xi32>
    %c15_i32_130 = arith.constant 15 : i32
    %286 = vector.broadcast %c15_i32_130 : i32 to vector<2x32xi32>
    %287 = arith.andi %285, %286 : vector<2x32xi32>
    %c20_i32_131 = arith.constant 20 : i32
    %288 = vector.broadcast %c20_i32_131 : i32 to vector<2x32xi32>
    %289 = arith.shrsi %267, %288 : vector<2x32xi32>
    %c15_i32_132 = arith.constant 15 : i32
    %290 = vector.broadcast %c15_i32_132 : i32 to vector<2x32xi32>
    %291 = arith.andi %289, %290 : vector<2x32xi32>
    %c24_i32_133 = arith.constant 24 : i32
    %292 = vector.broadcast %c24_i32_133 : i32 to vector<2x32xi32>
    %293 = arith.shrsi %267, %292 : vector<2x32xi32>
    %c15_i32_134 = arith.constant 15 : i32
    %294 = vector.broadcast %c15_i32_134 : i32 to vector<2x32xi32>
    %295 = arith.andi %293, %294 : vector<2x32xi32>
    %c28_i32_135 = arith.constant 28 : i32
    %296 = vector.broadcast %c28_i32_135 : i32 to vector<2x32xi32>
    %297 = arith.shrsi %267, %296 : vector<2x32xi32>
    %c15_i32_136 = arith.constant 15 : i32
    %298 = vector.broadcast %c15_i32_136 : i32 to vector<2x32xi32>
    %299 = arith.andi %297, %298 : vector<2x32xi32>
    %300 = tpu.concatenate %271, %275, %279, %283, %287, %291, %295, %299 in 0 : vector<2x32xi32>, vector<2x32xi32>, vector<2x32xi32>, vector<2x32xi32>, vector<2x32xi32>, vector<2x32xi32>, vector<2x32xi32>, vector<2x32xi32> -> vector<16x32xi32>
    %301 = arith.sitofp %300 : vector<16x32xi32> to vector<16x32xf32>
    %c6_137 = arith.constant 6 : index
    %c0_138 = arith.constant 0 : index
    %302 = vector.load %arg6[%c6_137, %c0_138] : memref<8x32xf32, #tpu.memory_space<vmem>>, vector<1x32xf32>
    %303 = vector.broadcast %302 : vector<1x32xf32> to vector<16x32xf32>
    %304 = arith.mulf %301, %303 : vector<16x32xf32>
    %c6_139 = arith.constant 6 : index
    %c0_140 = arith.constant 0 : index
    %305 = vector.load %arg7[%c6_139, %c0_140] : memref<8x32xf32, #tpu.memory_space<vmem>>, vector<1x32xf32>
    %306 = vector.broadcast %305 : vector<1x32xf32> to vector<16x32xf32>
    %307 = arith.subf %304, %306 : vector<16x32xf32>
    %308 = arith.truncf %307 : vector<16x32xf32> to vector<16x32xbf16>
    %c14 = arith.constant 14 : index
    %c0_141 = arith.constant 0 : index
    %309 = vector.load %arg5[%c14, %c0_141] : memref<16x32xi32, #tpu.memory_space<vmem>>, vector<2x32xi32>
    %c0_i32_142 = arith.constant 0 : i32
    %310 = vector.broadcast %c0_i32_142 : i32 to vector<2x32xi32>
    %311 = arith.shrsi %309, %310 : vector<2x32xi32>
    %c15_i32_143 = arith.constant 15 : i32
    %312 = vector.broadcast %c15_i32_143 : i32 to vector<2x32xi32>
    %313 = arith.andi %311, %312 : vector<2x32xi32>
    %c4_i32_144 = arith.constant 4 : i32
    %314 = vector.broadcast %c4_i32_144 : i32 to vector<2x32xi32>
    %315 = arith.shrsi %309, %314 : vector<2x32xi32>
    %c15_i32_145 = arith.constant 15 : i32
    %316 = vector.broadcast %c15_i32_145 : i32 to vector<2x32xi32>
    %317 = arith.andi %315, %316 : vector<2x32xi32>
    %c8_i32_146 = arith.constant 8 : i32
    %318 = vector.broadcast %c8_i32_146 : i32 to vector<2x32xi32>
    %319 = arith.shrsi %309, %318 : vector<2x32xi32>
    %c15_i32_147 = arith.constant 15 : i32
    %320 = vector.broadcast %c15_i32_147 : i32 to vector<2x32xi32>
    %321 = arith.andi %319, %320 : vector<2x32xi32>
    %c12_i32_148 = arith.constant 12 : i32
    %322 = vector.broadcast %c12_i32_148 : i32 to vector<2x32xi32>
    %323 = arith.shrsi %309, %322 : vector<2x32xi32>
    %c15_i32_149 = arith.constant 15 : i32
    %324 = vector.broadcast %c15_i32_149 : i32 to vector<2x32xi32>
    %325 = arith.andi %323, %324 : vector<2x32xi32>
    %c16_i32_150 = arith.constant 16 : i32
    %326 = vector.broadcast %c16_i32_150 : i32 to vector<2x32xi32>
    %327 = arith.shrsi %309, %326 : vector<2x32xi32>
    %c15_i32_151 = arith.constant 15 : i32
    %328 = vector.broadcast %c15_i32_151 : i32 to vector<2x32xi32>
    %329 = arith.andi %327, %328 : vector<2x32xi32>
    %c20_i32_152 = arith.constant 20 : i32
    %330 = vector.broadcast %c20_i32_152 : i32 to vector<2x32xi32>
    %331 = arith.shrsi %309, %330 : vector<2x32xi32>
    %c15_i32_153 = arith.constant 15 : i32
    %332 = vector.broadcast %c15_i32_153 : i32 to vector<2x32xi32>
    %333 = arith.andi %331, %332 : vector<2x32xi32>
    %c24_i32_154 = arith.constant 24 : i32
    %334 = vector.broadcast %c24_i32_154 : i32 to vector<2x32xi32>
    %335 = arith.shrsi %309, %334 : vector<2x32xi32>
    %c15_i32_155 = arith.constant 15 : i32
    %336 = vector.broadcast %c15_i32_155 : i32 to vector<2x32xi32>
    %337 = arith.andi %335, %336 : vector<2x32xi32>
    %c28_i32_156 = arith.constant 28 : i32
    %338 = vector.broadcast %c28_i32_156 : i32 to vector<2x32xi32>
    %339 = arith.shrsi %309, %338 : vector<2x32xi32>
    %c15_i32_157 = arith.constant 15 : i32
    %340 = vector.broadcast %c15_i32_157 : i32 to vector<2x32xi32>
    %341 = arith.andi %339, %340 : vector<2x32xi32>
    %342 = tpu.concatenate %313, %317, %321, %325, %329, %333, %337, %341 in 0 : vector<2x32xi32>, vector<2x32xi32>, vector<2x32xi32>, vector<2x32xi32>, vector<2x32xi32>, vector<2x32xi32>, vector<2x32xi32>, vector<2x32xi32> -> vector<16x32xi32>
    %343 = arith.sitofp %342 : vector<16x32xi32> to vector<16x32xf32>
    %c7 = arith.constant 7 : index
    %c0_158 = arith.constant 0 : index
    %344 = vector.load %arg6[%c7, %c0_158] : memref<8x32xf32, #tpu.memory_space<vmem>>, vector<1x32xf32>
    %345 = vector.broadcast %344 : vector<1x32xf32> to vector<16x32xf32>
    %346 = arith.mulf %343, %345 : vector<16x32xf32>
    %c7_159 = arith.constant 7 : index
    %c0_160 = arith.constant 0 : index
    %347 = vector.load %arg7[%c7_159, %c0_160] : memref<8x32xf32, #tpu.memory_space<vmem>>, vector<1x32xf32>
    %348 = vector.broadcast %347 : vector<1x32xf32> to vector<16x32xf32>
    %349 = arith.subf %346, %348 : vector<16x32xf32>
    %350 = arith.truncf %349 : vector<16x32xf32> to vector<16x32xbf16>
    %351 = tpu.concatenate %56, %98, %140, %182, %224, %266, %308, %350 in 0 : vector<16x32xbf16>, vector<16x32xbf16>, vector<16x32xbf16>, vector<16x32xbf16>, vector<16x32xbf16>, vector<16x32xbf16>, vector<16x32xbf16>, vector<16x32xbf16> -> vector<128x32xbf16>
    %c0_161 = arith.constant 0 : index
    %c0_162 = arith.constant 0 : index
    %352 = vector.load %arg10[%c0_161, %c0_162] : memref<16x32xf32, #tpu.memory_space<vmem>>, vector<16x32xf32>
    %cst_163 = arith.constant dense<0.000000e+00> : vector<16x32xf32>
    %353 = tpu.matmul %14, %351, %cst_163 {dimension_numbers = #tpu.dot_dimension_numbers<[1], [0], [0], [1], [0, 0, 1, 1], [], []>} : vector<16x128xbf16>, vector<128x32xbf16>, vector<16x32xf32> -> vector<16x32xf32>
    %354 = arith.addf %352, %353 : vector<16x32xf32>
    %c0_164 = arith.constant 0 : index
    %c0_165 = arith.constant 0 : index
    %355 = vector.load %arg10[%c0_164, %c0_165] : memref<16x32xf32, #tpu.memory_space<vmem>>, vector<16x32xf32>
    tpu.vector_store %arg10[%c0_164, %c0_165], %354 {strides = array<i32>} : memref<16x32xf32, #tpu.memory_space<vmem>>, vector<16x32xf32>,
    %c0_i32_166 = arith.constant 0 : i32
    %356 = arith.cmpi eq, %arg2, %c0_i32_166 : i32
    %357 = arith.extui %356 : i1 to i32
    %c0_i32_167 = arith.constant 0 : i32
    %358 = arith.cmpi ne, %357, %c0_i32_167 : i32
    scf.if %358 {
      %c0_168 = arith.constant 0 : index
      %c0_169 = arith.constant 0 : index
      %359 = vector.load %arg10[%c0_168, %c0_169] : memref<16x32xf32, #tpu.memory_space<vmem>>, vector<16x32xf32>
      %c0_170 = arith.constant 0 : index
      %c0_171 = arith.constant 0 : index
      %360 = vector.load %arg8[%c0_170, %c0_171] : memref<16x32xf32, #tpu.memory_space<vmem>>, vector<16x32xf32>
      %361 = arith.addf %359, %360 : vector<16x32xf32>
      %c0_172 = arith.constant 0 : index
      %c0_173 = arith.constant 0 : index
      %362 = vector.load %arg9[%c0_172, %c0_173] : memref<16x32xf32, #tpu.memory_space<vmem>>, vector<16x32xf32>
      tpu.vector_store %arg9[%c0_172, %c0_173], %361 {strides = array<i32>} : memref<16x32xf32, #tpu.memory_space<vmem>>, vector<16x32xf32>,
    } else {
    }
    return
  }
  func.func @transform_0(%arg0: i32, %arg1: i32, %arg2: i32) -> (i32, i32) {
    %c0_i32 = arith.constant 0 : i32
    return %arg0, %arg2 : i32, i32
  }
  func.func @transform_1(%arg0: i32, %arg1: i32, %arg2: i32) -> (i32, i32) {
    %c1_i32 = arith.constant 1 : i32
    %0 = arith.addi %arg2, %c1_i32 : i32
    %c0_i32 = arith.constant 0 : i32
    return %arg0, %0 : i32, i32
  }
  func.func @transform_2(%arg0: i32, %arg1: i32, %arg2: i32) -> (i32, i32) {
    %c0_i32 = arith.constant 0 : i32
    return %arg2, %arg1 : i32, i32
  }
  func.func @transform_3(%arg0: i32, %arg1: i32, %arg2: i32) -> (i32, i32) {
    %c0_i32 = arith.constant 0 : i32
    return %arg2, %arg1 : i32, i32
  }
  func.func @transform_4(%arg0: i32, %arg1: i32, %arg2: i32) -> (i32, i32) {
    %c0_i32 = arith.constant 0 : i32
    return %arg2, %arg1 : i32, i32
  }
  func.func @transform_5(%arg0: i32, %arg1: i32, %arg2: i32) -> (i32, i32) {
    %c0_i32 = arith.constant 0 : i32
    return %arg0, %arg1 : i32, i32
  }
  func.func @transform_6(%arg0: i32, %arg1: i32, %arg2: i32) -> (i32, i32) {
    %c0_i32 = arith.constant 0 : i32
    return %arg0, %arg1 : i32, i32
  }
}

module attributes {stable_mosaic.version = 11 : i64} {
  func.func @kernel(%arg0: i32, %arg1: i32, %arg2: i32, %arg3: memref<16x32xbf16, #tpu.memory_space<vmem>>, %arg4: memref<4x256xi32, #tpu.memory_space<vmem>>, %arg5: memref<2x256xf32, #tpu.memory_space<vmem>>, %arg6: memref<2x256xf32, #tpu.memory_space<vmem>>, %arg7: memref<16x256xbf16, #tpu.memory_space<vmem>>, %arg8: memref<16x256xf32, #tpu.memory_space<vmem>>) attributes {dimension_semantics = [#tpu.dimension_semantics<parallel>, #tpu.dimension_semantics<parallel>, #tpu.dimension_semantics<arbitrary>], iteration_bounds = array<i64: 1, 1, 1>, scalar_prefetch = 0 : i64, scratch_operands = 1 : i64, tpu.core_type = #tpu.core_type<tc>, window_params = [{transform_indices = @transform_0, window_bounds = array<i64: 16, 32>}, {transform_indices = @transform_1, window_bounds = array<i64: 4, 256>}, {transform_indices = @transform_2, window_bounds = array<i64: 2, 256>}, {transform_indices = @transform_3, window_bounds = array<i64: 2, 256>}, {transform_indices = @transform_4, window_bounds = array<i64: 16, 256>}]} {
    %c0_i32 = arith.constant 0 : i32
    %0 = arith.cmpi eq, %arg2, %c0_i32 : i32
    %1 = arith.extui %0 : i1 to i32
    %c0_i32_0 = arith.constant 0 : i32
    %2 = arith.cmpi ne, %1, %c0_i32_0 : i32
    scf.if %2 {
      %cst_42 = arith.constant 0.000000e+00 : f32
      %96 = vector.broadcast %cst_42 : f32 to vector<16x256xf32>
      %c0_43 = arith.constant 0 : index
      %c0_44 = arith.constant 0 : index
      %97 = vector.load %arg8[%c0_43, %c0_44] : memref<16x256xf32, #tpu.memory_space<vmem>>, vector<16x256xf32>
      tpu.vector_store %arg8[%c0_43, %c0_44], %96 {strides = array<i32>} : memref<16x256xf32, #tpu.memory_space<vmem>>, vector<16x256xf32>,
    } else {
    }
    %c0 = arith.constant 0 : index
    %c0_1 = arith.constant 0 : index
    %3 = vector.load %arg3[%c0, %c0_1] : memref<16x32xbf16, #tpu.memory_space<vmem>>, vector<16x32xbf16>
    %c0_2 = arith.constant 0 : index
    %c0_3 = arith.constant 0 : index
    %4 = vector.load %arg4[%c0_2, %c0_3] : memref<4x256xi32, #tpu.memory_space<vmem>>, vector<2x256xi32>
    %c0_i32_4 = arith.constant 0 : i32
    %5 = vector.broadcast %c0_i32_4 : i32 to vector<2x256xi32>
    %6 = arith.shrsi %4, %5 : vector<2x256xi32>
    %c15_i32 = arith.constant 15 : i32
    %7 = vector.broadcast %c15_i32 : i32 to vector<2x256xi32>
    %8 = arith.andi %6, %7 : vector<2x256xi32>
    %c4_i32 = arith.constant 4 : i32
    %9 = vector.broadcast %c4_i32 : i32 to vector<2x256xi32>
    %10 = arith.shrsi %4, %9 : vector<2x256xi32>
    %c15_i32_5 = arith.constant 15 : i32
    %11 = vector.broadcast %c15_i32_5 : i32 to vector<2x256xi32>
    %12 = arith.andi %10, %11 : vector<2x256xi32>
    %c8_i32 = arith.constant 8 : i32
    %13 = vector.broadcast %c8_i32 : i32 to vector<2x256xi32>
    %14 = arith.shrsi %4, %13 : vector<2x256xi32>
    %c15_i32_6 = arith.constant 15 : i32
    %15 = vector.broadcast %c15_i32_6 : i32 to vector<2x256xi32>
    %16 = arith.andi %14, %15 : vector<2x256xi32>
    %c12_i32 = arith.constant 12 : i32
    %17 = vector.broadcast %c12_i32 : i32 to vector<2x256xi32>
    %18 = arith.shrsi %4, %17 : vector<2x256xi32>
    %c15_i32_7 = arith.constant 15 : i32
    %19 = vector.broadcast %c15_i32_7 : i32 to vector<2x256xi32>
    %20 = arith.andi %18, %19 : vector<2x256xi32>
    %c16_i32 = arith.constant 16 : i32
    %21 = vector.broadcast %c16_i32 : i32 to vector<2x256xi32>
    %22 = arith.shrsi %4, %21 : vector<2x256xi32>
    %c15_i32_8 = arith.constant 15 : i32
    %23 = vector.broadcast %c15_i32_8 : i32 to vector<2x256xi32>
    %24 = arith.andi %22, %23 : vector<2x256xi32>
    %c20_i32 = arith.constant 20 : i32
    %25 = vector.broadcast %c20_i32 : i32 to vector<2x256xi32>
    %26 = arith.shrsi %4, %25 : vector<2x256xi32>
    %c15_i32_9 = arith.constant 15 : i32
    %27 = vector.broadcast %c15_i32_9 : i32 to vector<2x256xi32>
    %28 = arith.andi %26, %27 : vector<2x256xi32>
    %c24_i32 = arith.constant 24 : i32
    %29 = vector.broadcast %c24_i32 : i32 to vector<2x256xi32>
    %30 = arith.shrsi %4, %29 : vector<2x256xi32>
    %c15_i32_10 = arith.constant 15 : i32
    %31 = vector.broadcast %c15_i32_10 : i32 to vector<2x256xi32>
    %32 = arith.andi %30, %31 : vector<2x256xi32>
    %c28_i32 = arith.constant 28 : i32
    %33 = vector.broadcast %c28_i32 : i32 to vector<2x256xi32>
    %34 = arith.shrsi %4, %33 : vector<2x256xi32>
    %c15_i32_11 = arith.constant 15 : i32
    %35 = vector.broadcast %c15_i32_11 : i32 to vector<2x256xi32>
    %36 = arith.andi %34, %35 : vector<2x256xi32>
    %37 = tpu.concatenate %8, %12, %16, %20, %24, %28, %32, %36 in 0 : vector<2x256xi32>, vector<2x256xi32>, vector<2x256xi32>, vector<2x256xi32>, vector<2x256xi32>, vector<2x256xi32>, vector<2x256xi32>, vector<2x256xi32> -> vector<16x256xi32>
    %38 = arith.sitofp %37 : vector<16x256xi32> to vector<16x256xf32>
    %c0_12 = arith.constant 0 : index
    %c0_13 = arith.constant 0 : index
    %39 = vector.load %arg5[%c0_12, %c0_13] : memref<2x256xf32, #tpu.memory_space<vmem>>, vector<1x256xf32>
    %40 = vector.broadcast %39 : vector<1x256xf32> to vector<16x256xf32>
    %41 = arith.mulf %38, %40 : vector<16x256xf32>
    %c0_14 = arith.constant 0 : index
    %c0_15 = arith.constant 0 : index
    %42 = vector.load %arg6[%c0_14, %c0_15] : memref<2x256xf32, #tpu.memory_space<vmem>>, vector<1x256xf32>
    %43 = vector.broadcast %42 : vector<1x256xf32> to vector<16x256xf32>
    %44 = arith.subf %41, %43 : vector<16x256xf32>
    %45 = arith.truncf %44 : vector<16x256xf32> to vector<16x256xbf16>
    %c2 = arith.constant 2 : index
    %c0_16 = arith.constant 0 : index
    %46 = vector.load %arg4[%c2, %c0_16] : memref<4x256xi32, #tpu.memory_space<vmem>>, vector<2x256xi32>
    %c0_i32_17 = arith.constant 0 : i32
    %47 = vector.broadcast %c0_i32_17 : i32 to vector<2x256xi32>
    %48 = arith.shrsi %46, %47 : vector<2x256xi32>
    %c15_i32_18 = arith.constant 15 : i32
    %49 = vector.broadcast %c15_i32_18 : i32 to vector<2x256xi32>
    %50 = arith.andi %48, %49 : vector<2x256xi32>
    %c4_i32_19 = arith.constant 4 : i32
    %51 = vector.broadcast %c4_i32_19 : i32 to vector<2x256xi32>
    %52 = arith.shrsi %46, %51 : vector<2x256xi32>
    %c15_i32_20 = arith.constant 15 : i32
    %53 = vector.broadcast %c15_i32_20 : i32 to vector<2x256xi32>
    %54 = arith.andi %52, %53 : vector<2x256xi32>
    %c8_i32_21 = arith.constant 8 : i32
    %55 = vector.broadcast %c8_i32_21 : i32 to vector<2x256xi32>
    %56 = arith.shrsi %46, %55 : vector<2x256xi32>
    %c15_i32_22 = arith.constant 15 : i32
    %57 = vector.broadcast %c15_i32_22 : i32 to vector<2x256xi32>
    %58 = arith.andi %56, %57 : vector<2x256xi32>
    %c12_i32_23 = arith.constant 12 : i32
    %59 = vector.broadcast %c12_i32_23 : i32 to vector<2x256xi32>
    %60 = arith.shrsi %46, %59 : vector<2x256xi32>
    %c15_i32_24 = arith.constant 15 : i32
    %61 = vector.broadcast %c15_i32_24 : i32 to vector<2x256xi32>
    %62 = arith.andi %60, %61 : vector<2x256xi32>
    %c16_i32_25 = arith.constant 16 : i32
    %63 = vector.broadcast %c16_i32_25 : i32 to vector<2x256xi32>
    %64 = arith.shrsi %46, %63 : vector<2x256xi32>
    %c15_i32_26 = arith.constant 15 : i32
    %65 = vector.broadcast %c15_i32_26 : i32 to vector<2x256xi32>
    %66 = arith.andi %64, %65 : vector<2x256xi32>
    %c20_i32_27 = arith.constant 20 : i32
    %67 = vector.broadcast %c20_i32_27 : i32 to vector<2x256xi32>
    %68 = arith.shrsi %46, %67 : vector<2x256xi32>
    %c15_i32_28 = arith.constant 15 : i32
    %69 = vector.broadcast %c15_i32_28 : i32 to vector<2x256xi32>
    %70 = arith.andi %68, %69 : vector<2x256xi32>
    %c24_i32_29 = arith.constant 24 : i32
    %71 = vector.broadcast %c24_i32_29 : i32 to vector<2x256xi32>
    %72 = arith.shrsi %46, %71 : vector<2x256xi32>
    %c15_i32_30 = arith.constant 15 : i32
    %73 = vector.broadcast %c15_i32_30 : i32 to vector<2x256xi32>
    %74 = arith.andi %72, %73 : vector<2x256xi32>
    %c28_i32_31 = arith.constant 28 : i32
    %75 = vector.broadcast %c28_i32_31 : i32 to vector<2x256xi32>
    %76 = arith.shrsi %46, %75 : vector<2x256xi32>
    %c15_i32_32 = arith.constant 15 : i32
    %77 = vector.broadcast %c15_i32_32 : i32 to vector<2x256xi32>
    %78 = arith.andi %76, %77 : vector<2x256xi32>
    %79 = tpu.concatenate %50, %54, %58, %62, %66, %70, %74, %78 in 0 : vector<2x256xi32>, vector<2x256xi32>, vector<2x256xi32>, vector<2x256xi32>, vector<2x256xi32>, vector<2x256xi32>, vector<2x256xi32>, vector<2x256xi32> -> vector<16x256xi32>
    %80 = arith.sitofp %79 : vector<16x256xi32> to vector<16x256xf32>
    %c1 = arith.constant 1 : index
    %c0_33 = arith.constant 0 : index
    %81 = vector.load %arg5[%c1, %c0_33] : memref<2x256xf32, #tpu.memory_space<vmem>>, vector<1x256xf32>
    %82 = vector.broadcast %81 : vector<1x256xf32> to vector<16x256xf32>
    %83 = arith.mulf %80, %82 : vector<16x256xf32>
    %c1_34 = arith.constant 1 : index
    %c0_35 = arith.constant 0 : index
    %84 = vector.load %arg6[%c1_34, %c0_35] : memref<2x256xf32, #tpu.memory_space<vmem>>, vector<1x256xf32>
    %85 = vector.broadcast %84 : vector<1x256xf32> to vector<16x256xf32>
    %86 = arith.subf %83, %85 : vector<16x256xf32>
    %87 = arith.truncf %86 : vector<16x256xf32> to vector<16x256xbf16>
    %88 = tpu.concatenate %45, %87 in 0 : vector<16x256xbf16>, vector<16x256xbf16> -> vector<32x256xbf16>
    %c0_36 = arith.constant 0 : index
    %c0_37 = arith.constant 0 : index
    %89 = vector.load %arg8[%c0_36, %c0_37] : memref<16x256xf32, #tpu.memory_space<vmem>>, vector<16x256xf32>
    %cst = arith.constant dense<0.000000e+00> : vector<16x256xf32>
    %90 = tpu.matmul %3, %88, %cst {dimension_numbers = #tpu.dot_dimension_numbers<[1], [0], [0], [1], [0, 0, 1, 1], [], []>} : vector<16x32xbf16>, vector<32x256xbf16>, vector<16x256xf32> -> vector<16x256xf32>
    %91 = arith.addf %89, %90 : vector<16x256xf32>
    %c0_38 = arith.constant 0 : index
    %c0_39 = arith.constant 0 : index
    %92 = vector.load %arg8[%c0_38, %c0_39] : memref<16x256xf32, #tpu.memory_space<vmem>>, vector<16x256xf32>
    tpu.vector_store %arg8[%c0_38, %c0_39], %91 {strides = array<i32>} : memref<16x256xf32, #tpu.memory_space<vmem>>, vector<16x256xf32>,
    %c0_i32_40 = arith.constant 0 : i32
    %93 = arith.cmpi eq, %arg2, %c0_i32_40 : i32
    %94 = arith.extui %93 : i1 to i32
    %c0_i32_41 = arith.constant 0 : i32
    %95 = arith.cmpi ne, %94, %c0_i32_41 : i32
    scf.if %95 {
      %c0_42 = arith.constant 0 : index
      %c0_43 = arith.constant 0 : index
      %96 = vector.load %arg8[%c0_42, %c0_43] : memref<16x256xf32, #tpu.memory_space<vmem>>, vector<16x256xf32>
      %97 = arith.truncf %96 : vector<16x256xf32> to vector<16x256xbf16>
      %c0_44 = arith.constant 0 : index
      %c0_45 = arith.constant 0 : index
      %98 = vector.load %arg7[%c0_44, %c0_45] : memref<16x256xbf16, #tpu.memory_space<vmem>>, vector<16x256xbf16>
      tpu.vector_store %arg7[%c0_44, %c0_45], %97 {strides = array<i32>} : memref<16x256xbf16, #tpu.memory_space<vmem>>, vector<16x256xbf16>,
    } else {
    }
    return
  }
  func.func @transform_0(%arg0: i32, %arg1: i32, %arg2: i32) -> (i32, i32) {
    %c0_i32 = arith.constant 0 : i32
    return %arg0, %arg2 : i32, i32
  }
  func.func @transform_1(%arg0: i32, %arg1: i32, %arg2: i32) -> (i32, i32) {
    %c0_i32 = arith.constant 0 : i32
    return %arg2, %arg1 : i32, i32
  }
  func.func @transform_2(%arg0: i32, %arg1: i32, %arg2: i32) -> (i32, i32) {
    %c0_i32 = arith.constant 0 : i32
    return %arg2, %arg1 : i32, i32
  }
  func.func @transform_3(%arg0: i32, %arg1: i32, %arg2: i32) -> (i32, i32) {
    %c0_i32 = arith.constant 0 : i32
    return %arg2, %arg1 : i32, i32
  }
  func.func @transform_4(%arg0: i32, %arg1: i32, %arg2: i32) -> (i32, i32) {
    %c0_i32 = arith.constant 0 : i32
    return %arg0, %arg1 : i32, i32
  }
}

module attributes {stable_mosaic.version = 11 : i64} {
  func.func @dense_matmul_kernel(%arg0: i32, %arg1: i32, %arg2: memref<16x32xbf16, #tpu.memory_space<vmem>>, %arg3: memref<32x64xbf16, #tpu.memory_space<vmem>>, %arg4: memref<16x64xbf16, #tpu.memory_space<vmem>>) attributes {dimension_semantics = [#tpu.dimension_semantics<parallel>, #tpu.dimension_semantics<parallel>], iteration_bounds = array<i64: 1, 1>, scalar_prefetch = 0 : i64, scratch_operands = 0 : i64, tpu.core_type = #tpu.core_type<tc>, window_params = [{transform_indices = @transform_0, window_bounds = array<i64: 16, 32>}, {transform_indices = @transform_1, window_bounds = array<i64: 32, 64>}, {transform_indices = @transform_2, window_bounds = array<i64: 16, 64>}]} {
    %c0 = arith.constant 0 : index
    %c0_0 = arith.constant 0 : index
    %0 = vector.load %arg2[%c0, %c0_0] : memref<16x32xbf16, #tpu.memory_space<vmem>>, vector<16x32xbf16>
    %c0_1 = arith.constant 0 : index
    %c0_2 = arith.constant 0 : index
    %1 = vector.load %arg3[%c0_1, %c0_2] : memref<32x64xbf16, #tpu.memory_space<vmem>>, vector<32x64xbf16>
    %cst = arith.constant dense<0.000000e+00> : vector<16x64xf32>
    %2 = tpu.matmul %0, %1, %cst {dimension_numbers = #tpu.dot_dimension_numbers<[1], [0], [0], [1], [0, 0, 1, 1], [], []>} : vector<16x32xbf16>, vector<32x64xbf16>, vector<16x64xf32> -> vector<16x64xf32>
    %3 = arith.truncf %2 : vector<16x64xf32> to vector<16x64xbf16>
    %c0_3 = arith.constant 0 : index
    %c0_4 = arith.constant 0 : index
    %4 = vector.load %arg4[%c0_3, %c0_4] : memref<16x64xbf16, #tpu.memory_space<vmem>>, vector<16x64xbf16>
    tpu.vector_store %arg4[%c0_3, %c0_4], %3 {strides = array<i32>} : memref<16x64xbf16, #tpu.memory_space<vmem>>, vector<16x64xbf16>,
    return
  }
  func.func @transform_0(%arg0: i32, %arg1: i32) -> (i32, i32) {
    %c0_i32 = arith.constant 0 : i32
    %c0_i32_0 = arith.constant 0 : i32
    return %arg0, %c0_i32 : i32, i32
  }
  func.func @transform_1(%arg0: i32, %arg1: i32) -> (i32, i32) {
    %c0_i32 = arith.constant 0 : i32
    %c0_i32_0 = arith.constant 0 : i32
    return %c0_i32, %arg1 : i32, i32
  }
  func.func @transform_2(%arg0: i32, %arg1: i32) -> (i32, i32) {
    %c0_i32 = arith.constant 0 : i32
    return %arg0, %arg1 : i32, i32
  }
}

</mosaic_0001>

<bundles_post_ra>
// kernel: llama_gptq_forward.9
= control target key start
LH: loop header
LB: loop body
LE: loop exit
PB: predicated region body
PF: predicated region fallthrough
CT: control target
= control target key end

     0   :  { %vm15_vm0 = vcmask 261120   ;;  %vm48_vm1 = vcmask 257024   ;;  %s94_s0 = inlined_call_operand.vmem [shape: f32[16,32], index: 0, kind: input, shape index: {}]   ;;  %s95_s1 = inlined_call_operand.vmem [shape: f32[1,32], index: 1, kind: input, shape index: {}]   ;;  %s96_s2 = inlined_call_operand.vmem [shape: bf16[16,32], index: 2, kind: output, shape index: {}]  }
   0x1   :  { %v11_v0 = vld [vmem:[%s94_s0] sm:$0xff]  ;;  %v12_v1 = vld [vmem:[%s94_s0 + $0x8] sm:$0xff] }
   0x2   :  { %v13_v2 = vmul.f32 %v11_v0, %v11_v0  ;;  %v14_v3 = vmul.f32 %v12_v1, %v12_v1  ;;  %v55_v13 = vld [vmem:[%s95_s1] ss:$0 sm:$0xff] }
   0x4   :  { %v16_v4 = vsel %vm15_vm0, %v13_v2, 0.0  ;;  %v19_v5 = vsel %vm15_vm0, %v14_v3, 0.0 }
   0x5   :  { %17 = vadd.xlane.f32.xlu0 %v16_v4 }
   0x9   :  { %20 = vadd.xlane.f32.xlu0 %v19_v5 }
  0x92   :  { %v18_v6 = vpop.xlane.xlu0 %17 }
  0x93   :  { %v23_v7 = vmul.f32 0.03125, %v18_v6 }
  0x95   :  { %v25_v8 = vadd.f32 1e-06, %v23_v7 }
  0x96   :  { %v21_v9 = vpop.xlane.xlu0 %20 }
  0x97   :  { %60 = vrsqrt.f32 %v25_v8  ;;  %v24_v10 = vmul.f32 0.03125, %v21_v9 }
  0x99   :  { %v26_v11 = vadd.f32 1e-06, %v24_v10 }
  0x9b   :  { %62 = vrsqrt.f32 %v26_v11 }
  0xa1   :  { %v61_v12 = vpop.eup %60 }
  0xa2   :  { %v29_v14 = vmul.f32 %v61_v12, %v11_v0 }
  0xa4   :  { %v38_v15 = vmul.f32 %v55_v13, %v29_v14 }
  0xa5   :  { %v63_v16 = vpop.eup %62 }
  0xa6   :  { %v58_v17 = vpack.c.bf16 %v38_v15, %v38_v15  ;;  %v30_v18 = vmul.f32 %v63_v16, %v12_v1 }
  0xa8   :  { %49 = vst.msk [vmem:[%s96_s2] sm:$0xf] %vm48_vm1, %v58_v17  ;;  %v39_v19 = vmul.f32 %v55_v13, %v30_v18 }
  0xaa   :  { %v59_v20 = vpack.c.bf16 %v39_v19, %v39_v19 }
  0xac   :  { %50 = vst.msk [vmem:[%s96_s2 + $0x4] sm:$0xf] %vm48_vm1, %v59_v20 }

// kernel: llama_gptq_forward.10
= control target key start
LH: loop header
LB: loop body
LE: loop exit
PB: predicated region body
PF: predicated region fallthrough
CT: control target
= control target key end

     0   :  { %v223_v0 = vmov 0.0   ;;  %vm49_vm0 = vcmask 1041408   ;;  %vm51_vm1 = vcmask 1043456   ;;  %vm53_vm2 = vcmask 1045504   ;;  %s298_s1 = inlined_call_operand.vmem [shape: s32[4,96], index: 1, kind: input, shape index: {}]   ;;  %s299_s0 = inlined_call_operand.vmem [shape: bf16[16,32], index: 0, kind: input, shape index: {}]   ;;  %s300_s2 = inlined_call_operand.vmem [shape: f32[2,96], index: 2, kind: input, shape index: {}]   ;;  %s301_s3 = inlined_call_operand.vmem [shape: f32[2,96], index: 3, kind: input, shape index: {}]   ;;  %s302_s4 = inlined_call_operand.vmem [shape: bf16[16,96], index: 4, kind: output, shape index: {}]  }
   0x1   :  { %212 = vmatprep.subr.bf16.mxu0 %v223_v0  ;;  %v27_v1 = vld [vmem:[%s298_s1] sm:$0x3]  ;;  %v75_v10 = vld [vmem:[%s298_s1 + $0x2] sm:$0x3]  ;;  %vm224_vm3 = vmmov 0   ;;  %vm22_vm4 = vcmask 785408  }
   0x2   :  { %v28_v2 = vand.u32 15, %v27_v1  ;;  %v29_v3 = vshra.s32 %v27_v1, 4  ;;  %v31_v4 = vshra.s32 %v27_v1, 8  ;;  %v33_v5 = vshra.s32 %v27_v1, 12  ;;  %v198_v37 = vld [vmem:[%s300_s2] ss:$0 sm:$0xff]  ;;  %216 = vmatprep.mubr.msk.bf16.mxu0 %vm224_vm3, %v223_v0 }
   0x3   :  { %v35_v6 = vshra.s32 %v27_v1, 16  ;;  %v37_v7 = vshra.s32 %v27_v1, 20  ;;  %v39_v8 = vshra.s32 %v27_v1, 24  ;;  %v197_v9 = vshrl.u32 %v27_v1, 28  ;;  %v199_v45 = vld [vmem:[%s301_s3] ss:$0 sm:$0xff] }
   0x4   :  { %v30_v11 = vand.u32 15, %v29_v3  ;;  %v32_v12 = vand.u32 15, %v31_v4  ;;  %v34_v13 = vand.u32 15, %v33_v5  ;;  %v76_v14 = vand.u32 15, %v75_v10  ;;  %v201_v60 = vld [vmem:[%s300_s2 + $0x1] ss:$0 sm:$0xff] }
   0x5   :  { %v36_v15 = vand.u32 15, %v35_v6  ;;  %v38_v16 = vand.u32 15, %v37_v7  ;;  %v40_v17 = vand.u32 15, %v39_v8  ;;  %v48_v18 = vrot.slane %v197_v9, 2  ;;  %23 = vst.msk [vmem:[#allocation2] sm:$0xff] %vm22_vm4, %v223_v0  ;;  %24 = vst.msk [vmem:[#allocation2 + $0x8] sm:$0xff] %vm22_vm4, %v223_v0 }
   0x6   :  { %v43_v19 = vrot.slane %v30_v11, 6  ;;  %v44_v20 = vrot.slane %v32_v12, 4  ;;  %v45_v21 = vrot.slane %v34_v13, 2  ;;  %v77_v22 = vshra.s32 %v75_v10, 4 }
   0x7   :  { %v46_v23 = vrot.slane %v38_v16, 6  ;;  %v47_v24 = vrot.slane %v40_v17, 4  ;;  %v79_v25 = vshra.s32 %v75_v10, 8  ;;  %v81_v26 = vshra.s32 %v75_v10, 12 }
   0x8   :  { %v50_v27 = vsel %vm49_vm0, %v28_v2, %v43_v19  ;;  %v78_v28 = vand.u32 15, %v77_v22  ;;  %v83_v29 = vshra.s32 %v75_v10, 16  ;;  %v85_v30 = vshra.s32 %v75_v10, 20  ;;  %v202_v2 = vld [vmem:[%s301_s3 + $0x1] ss:$0 sm:$0xff] }
   0x9   :  { %v52_v31 = vsel %vm51_vm1, %v50_v27, %v44_v20  ;;  %v55_v32 = vsel %vm49_vm0, %v36_v15, %v46_v23  ;;  %v80_v33 = vand.u32 15, %v79_v25  ;;  %v82_v34 = vand.u32 15, %v81_v26 }
   0xa   :  { %v54_v35 = vsel %vm53_vm2, %v52_v31, %v45_v21  ;;  %v56_v36 = vsel %vm51_vm1, %v55_v32, %v47_v24  ;;  %v84_v38 = vand.u32 15, %v83_v29  ;;  %v86_v39 = vand.u32 15, %v85_v30 }
   0xb   :  { %v57_v40 = vsel %vm53_vm2, %v56_v36, %v48_v18  ;;  %v58_v41 = vcvt.s32.f32 %v54_v35  ;;  %v87_v42 = vshra.s32 %v75_v10, 24  ;;  %v200_v43 = vshrl.u32 %v75_v10, 28  ;;  %v222_v10 = vld [vmem:[%s299_s0] sm:$0xff]  }
   0xc   :  { %v59_v44 = vcvt.s32.f32 %v57_v40  ;;  %v91_v46 = vrot.slane %v78_v28, 6  ;;  %v92_v47 = vrot.slane %v80_v33, 4  ;;  %v93_v48 = vrot.slane %v82_v34, 2  ;;  %v120_v11 = vld [vmem:[#allocation2] sm:$0xff]  ;;  %v121_v13 = vld [vmem:[#allocation2 + $0x8] sm:$0xff] }
   0xd   :  { %v65_v49 = vmul.f32 %v198_v37, %v58_v41  ;;  %v88_v50 = vand.u32 15, %v87_v42  ;;  %v94_v51 = vrot.slane %v86_v39, 6  ;;  %v96_v53 = vrot.slane %v200_v43, 2 }
   0xe   :  { %v66_v52 = vmul.f32 %v198_v37, %v59_v44  ;;  %v97_v54 = vsel %vm49_vm0, %v76_v14, %v91_v46  ;;  %vm127_vm5 = vcmask 261120   ;;  %vm190_vm6 = vcmask 781312  }
   0xf   :  { %v72_v55 = vsub.f32 %v65_v49, %v199_v45  ;;  %v95_v56 = vrot.slane %v88_v50, 4  ;;  %v98_v57 = vsel %vm51_vm1, %v97_v54, %v92_v47  ;;  %v100_v58 = vsel %vm49_vm0, %v84_v38, %v94_v51 }
  0x10   :  { %v73_v59 = vsub.f32 %v66_v52, %v199_v45  ;;  %v99_v61 = vsel %vm53_vm2, %v98_v57, %v93_v48 }
  0x11   :  { %v101_v62 = vsel %vm51_vm1, %v100_v58, %v95_v56  ;;  %v103_v63 = vcvt.s32.f32 %v99_v61 }
  0x12   :  { %v74_v1 = vpack.c.bf16 %v73_v59, %v72_v55  ;;  %v102_v3 = vsel %vm53_vm2, %v101_v62, %v96_v53 }
  0x13   :  { %v104_v4 = vcvt.s32.f32 %v102_v3  ;;  %v110_v5 = vmul.f32 %v201_v60, %v103_v63 }
  0x14   :  { %213 = vmatpush3.bf16.msra.mxu0 %v74_v1 }
  0x15   :  { %214 = vmatprep.subr.bf16.mxu0 %v223_v0  ;;  %v111_v6 = vmul.f32 %v201_v60, %v104_v4  ;;  %v117_v7 = vsub.f32 %v110_v5, %v202_v2 }
  0x17   :  { %v118_v8 = vsub.f32 %v111_v6, %v202_v2 }
  0x19   :  { %v119_v9 = vpack.c.bf16 %v118_v8, %v117_v7 }
  0x1b   :  { %215 = vmatpush3.bf16.msra.mxu0 %v119_v9 }
  0x1e   :  { %217 = vmatmul.mubr.msk.bf16.vlgmr.msra.gmra.mrb[0].mxu0 %vm127_vm5, %v222_v10 }
  0xf1   :  { %v165_v12 = vpop.f32.mrb[0].mxu0 }
  0xf2   :  { %v172_v14 = vadd.f32 %v165_v12, %v120_v11  ;;  %v218_v15 = vpop.f32.mrb[1].mxu0 }
  0xf3   :  { %v168_v16 = vpop.f32.mrb[2].mxu0 }
  0xf4   :  { %175 = vst.msk [vmem:[#allocation2] sm:$0xff] %vm22_vm4, %v172_v14  ;;  %v173_v0 = vadd.f32 %v168_v16, %v121_v13  ;;  %v219_v17 = vpop.f32.mrb[3].mxu0 }
  0xf6   :  { %176 = vst.msk [vmem:[#allocation2 + $0x8] sm:$0xff] %vm22_vm4, %v173_v0 }
  0xfb   :  { %v180_v18 = vld [vmem:[#allocation2] sm:$0xff] }
  0xfc   :  { %v207_v19 = vpack.c.bf16 %v180_v18, %v180_v18 }
  0xfd   :  { %v181_v20 = vld [vmem:[#allocation2 + $0x8] sm:$0xff] }
  0xfe   :  { %191 = vst.msk [vmem:[%s302_s4] sm:$0xf] %vm190_vm6, %v207_v19  ;;  %v208_v21 = vpack.c.bf16 %v181_v20, %v181_v20 }
 0x100   :  { %192 = vst.msk [vmem:[%s302_s4 + $0x4] sm:$0xf] %vm190_vm6, %v208_v21 }

// kernel: llama_gptq_forward.11
= control target key start
LH: loop header
LB: loop body
LE: loop exit
PB: predicated region body
PF: predicated region fallthrough
CT: control target
= control target key end

     0   :  { %s657_s12 = smov 0   ;;  %s659_s13 = smov 0   ;;  %s713_s0 = inlined_call_operand.vmem [shape: bf16[8,8,8], index: 0, kind: input, shape index: {}]   ;;  %s714_s1 = inlined_call_operand.vmem [shape: bf16[8,8,8], index: 1, kind: input, shape index: {}]   ;;  %s715_s2 = inlined_call_operand.vmem [shape: bf16[8,8,8], index: 2, kind: input, shape index: {}]   ;;  %s716_s3 = inlined_call_operand.vmem [shape: bf16[8,8,8], index: 3, kind: output, shape index: {}]  }
   0x1   :  { %s661_s14 = smov 0  }
   0x2 LB: > { %s32_s15 = sadd.s32 1, %s627_s13  ;;  %p548_p0 = scmp.ge.s32.totalorder %s631_s14, 1  ;;  %s631_s14 = sphi %s661_s14, %s13_s14   ;;  %s627_s13 = sphi %s659_s13, %s718_s13   ;;  %s623_s12 = sphi %s657_s12, %s717_s12  }
   0x3   : > { %p34_p1 = scmp.ge.s32.totalorder %s32_s15, 8  ;;  %p190_p2 = scmp.lt.s32.totalorder %s631_s14, 9 }
   0x5   : > { %s720_s15 = smov (%p34_p1, %s32_s15), 0  ;;  %p191_p3 = pnand %p548_p0, %p190_p2 }
   0x6   : > { %p232_p4 = scmp.lt.s32.totalorder (!%p191_p3), %s623_s12, 7  ;;  %vm268_vm0 = vcmask (!%p191_p3), 64512   ;;  %v633_v0 = vmov (!%p191_p3), 0.0   ;;  %vm634_vm1 = vmmov (!%p191_p3), 0   ;;  %vm265_vm2 = vcmask (!%p191_p3), 7168  }
   0x7   : > { %194 = sbr.rel (%p191_p3) target bundleno = 824 (0x338), region = 32  ;;  %561 = vmatprep.subr.bf16.mxu0 (!%p191_p3), %v633_v0  ;;  %269 = vst.msk [vmem:[#allocation4] sm:$0xff] (!%p191_p3), %vm268_vm0, %v633_v0  ;;  %563 = vmatprep.mubr.msk.bf16.mxu0 (!%p191_p3), %vm634_vm1, %v633_v0  ;;  %v635_v7 = vmov (!%p191_p3), -inf   ;;  %v329_v8 = vlaneseq (!%p191_p3)  ;;  %v636_v17 = vmov (!%p191_p3), 0   ;;  %vm375_vm4 = vcmask (!%p191_p3), 1043456  }
   0x8   : > { %567 = vmatprep.subr.bf16.mxu1 (!%p191_p3), %v633_v0  ;;  %569 = vmatprep.mubr.msk.bf16.mxu1 (!%p191_p3), %vm634_vm1, %v633_v0  ;;  %266 = vst.msk [vmem:[#allocation2] sm:$0xff] (!%p191_p3), %vm265_vm2, %v635_v7  ;;  %267 = vst.msk [vmem:[#allocation3] sm:$0xff] (!%p191_p3), %vm265_vm2, %v633_v0  ;;  %vm435_vm5 = vcmask (!%p191_p3), 60416  }
   0x9   : > { %v330_v9 = vshrl.u32 (!%p191_p3), %v329_v8, 7  ;;  %v334_v10 = vand.u32 (!%p191_p3), 127, %v329_v8  ;;  %601 = vset.pattern.permute.xlu0 (!%p191_p3), %v636_v17  ;;  %602 = vset.pattern.permute.xlu1 (!%p191_p3), %v636_v17 }
   0xb   : > { %vm337_vm3 = vcmp.le.s32.totalorder (!%p191_p3), %v334_v10, %v330_v9 }
   0xe   : > { %s722_s12 = smov (!%p232_p4, %s623_s12), 7  ;;  %v363_v38 = vld [vmem:[#allocation4] sm:$0xff] }
   0xf   : > { %s676_s16 = sshll.u32 %s722_s12, 2  ;;  %v339_v18 = vld [vmem:[#allocation2] sm:$0xff]  ;;  %v355_v32 = vld [vmem:[#allocation3] sm:$0xff] }
  0x10   : > { %s245_s19 = scalar_lea.vmem %s714_s1, %s676_s16  ;;  %s238_s22 = scalar_lea.vmem %s713_s0, %s676_s16 }
  0x11   : > { %v281_v1 = vld [vmem:[%s245_s19] sm:$0xf]  ;;  %s252_s25 = scalar_lea.vmem %s715_s2, %s676_s16  ;;  %s259_s28 = scalar_lea.vmem %s716_s3, %s676_s16 }
  0x12   : > { %v277_v2 = vld [vmem:[%s238_s22] sm:$0xf]  ;;  %v287_v3 = vsel %vm268_vm0, %v281_v1, 0 }
  0x13   : > { %v278_v4 = vunpack.c.l.bf16 %v277_v2  ;;  %562 = vmatpush3.bf16.xpose.msra.mxu0 %v287_v3  ;;  %v371_v22 = vld [vmem:[%s252_s25] sm:$0xf] }
  0x14   : > { %v377_v23 = vsel %vm375_vm4, %v371_v22, 0 }
  0x15   : > { %v279_v5 = vmul.f32 0.35355338, %v278_v4  ;;  %568 = vmatpush3.bf16.msra.mxu1 %v377_v23 }
  0x17   : > { %v280_v6 = vpack.c.bf16 %v279_v5, %v279_v5 }
  0x1a   : > { %564 = vmatmul.mubr.msk.bf16.vlgmr.msra.gmra.mrb[0].mxu0 %vm268_vm0, %v280_v6 }
  0xed   : > { %v323_v11 = vpop.f32.mrb[0].mxu0 }
  0xee   : > { %v338_v12 = vsel %vm337_vm3, %v323_v11, -1e+30  ;;  %v565_v13 = vpop.f32.mrb[1].mxu0 }
  0xef   : > { %v326_v14 = vpop.f32.mrb[2].mxu0  ;;  %v340_v15 = vsel %vm268_vm0, %v338_v12, -inf }
  0xf0   : > { %341 = vmax.xlane.f32.xlu0 %v340_v15  ;;  %v566_v16 = vpop.f32.mrb[3].mxu0 }
 0x17d   : > { %v342_v19 = vpop.xlane.xlu0 %341 }
 0x17e   : > { %v343_v20 = vmax.f32 %v339_v18, %v342_v19 }
 0x180   : > { %v344_v21 = vsub.f32 %v339_v18, %v343_v20  ;;  %421 = vst.msk [vmem:[#allocation2] sm:$0xff] %vm265_vm2, %v343_v20  ;;  %349 = vperm.xlu0 %601, %v343_v20  }
 0x182   : > { %v345_v30 = vmul.f32 1.442695, %v344_v21 }
 0x1ff   : > { %v350_v24 = vpop.permute.xlu0 %349 }
 0x200   : > { %v352_v25 = vsub.f32 %v338_v12, %v350_v24 }
 0x202   : > { %v353_v26 = vmul.f32 1.442695, %v352_v25 }
 0x204   : > { %603 = vpow2.f32 %v353_v26 }
 0x205   : > { %605 = vpow2.f32 %v345_v30 }
 0x20e   : > { %v604_v27 = vpop.eup %603 }
 0x20f   : > { %v357_v28 = vsel %vm268_vm0, %v604_v27, 0.0  ;;  %v370_v29 = vpack.c.bf16 %v604_v27, %v604_v27  ;;  %v606_v31 = vpop.eup %605 }
 0x210   : > { %358 = vadd.xlane.f32.xlu1 %v357_v28  ;;  %v356_v33 = vmul.f32 %v606_v31, %v355_v32 }
 0x211   : > { %570 = vmatmul.mubr.msk.bf16.vlgmr.msra.gmra.mrb[0].mxu1 %vm268_vm0, %v370_v29 }
 0x221   : > { %366 = vperm.xlu1 %602, %v606_v31  }
 0x29d   : > { %v359_v34 = vpop.xlane.xlu1 %358 }
 0x29e   : > { %v360_v35 = vadd.f32 %v359_v34, %v356_v33 }
 0x2a0   : > { %362 = vst.msk [vmem:[#allocation3] sm:$0xff] %vm265_vm2, %v360_v35 }
 0x2a1   : > { %v367_v39 = vpop.permute.xlu1 %366 }
 0x2a2   : > { %v369_v40 = vmul.f32 %v367_v39, %v363_v38 }
 0x2a7   : > { %v426_v36 = vld [vmem:[#allocation3] sm:$0xff] }
 0x2a8   : > { %607 = vrcp.f32 %v426_v36 }
 0x2b2   : > { %v608_v37 = vpop.eup %607 }
 0x2b3   : > { %430 = vperm.xlu1 %602, %v608_v37  }
 0x2e4   : > { %v413_v41 = vpop.f32.mrb[0].mxu1 }
 0x2e5   : > { %v419_v42 = vadd.f32 %v413_v41, %v369_v40  ;;  %v571_v43 = vpop.f32.mrb[1].mxu1 }
 0x2e6   : > { %v416_v44 = vpop.f32.mrb[2].mxu1 }
 0x2e7   : > { %420 = vst.msk [vmem:[#allocation4] sm:$0xff] %vm268_vm0, %v419_v42  ;;  %v572_v45 = vpop.f32.mrb[3].mxu1 }
 0x2ee   : > { %v425_v46 = vld [vmem:[#allocation4] sm:$0xff] }
 0x332   : > { %v431_v47 = vpop.permute.xlu1 %430 }
 0x333   : > { %v433_v48 = vmul.f32 %v431_v47, %v425_v46 }
 0x335   : > { %v434_v49 = vpack.c.bf16 %v433_v48, %v433_v48 }
 0x337   : > { %436 = vst.msk [vmem:[%s259_s28] sm:$0xf] %vm435_vm5, %v434_v49 }
 0x338 PF: > { %s13_s14 = sadd.s32 1, %s631_s14   ;;  %s717_s12 = smov %s627_s13 }
 0x339   : > { %p10_p5 = scmp.ge.s32.totalorder %s13_s14, 10   ;;  %s718_s13 = smov %s720_s15 }
 0x33b   :  { %12 = sbr.rel (!%p10_p5) target bundleno = 2 (0x2), region = 80 }

// kernel: llama_gptq_forward.12
= control target key start
LH: loop header
LB: loop body
LE: loop exit
PB: predicated region body
PF: predicated region fallthrough
CT: control target
= control target key end

     0   :  { %v216_v0 = vmov 0.0   ;;  %vm52_vm0 = vcmask 1041408   ;;  %vm54_vm1 = vcmask 1043456   ;;  %vm56_vm2 = vcmask 1045504   ;;  %s305_s1 = inlined_call_operand.vmem [shape: s32[4,32], index: 1, kind: input, shape index: {}]   ;;  %s306_s0 = inlined_call_operand.vmem [shape: bf16[16,32], index: 0, kind: input, shape index: {}]   ;;  %s307_s2 = inlined_call_operand.vmem [shape: f32[2,32], index: 2, kind: input, shape index: {}]   ;;  %s308_s3 = inlined_call_operand.vmem [shape: f32[2,32], index: 3, kind: input, shape index: {}]   ;;  %s309_s4 = inlined_call_operand.vmem [shape: f32[16,32], index: 4, kind: input, shape index: {}]   ;;  %s310_s5 = inlined_call_operand.vmem [shape: f32[16,32], index: 5, kind: output, shape index: {}]  }
   0x1   :  { %205 = vmatprep.subr.bf16.mxu0 %v216_v0  ;;  %v30_v1 = vld [vmem:[%s305_s1] sm:$0x3]  ;;  %v78_v10 = vld [vmem:[%s305_s1 + $0x2] sm:$0x3]  ;;  %vm25_vm3 = vcmask 261120   ;;  %vm217_vm4 = vmmov 0  }
   0x2   :  { %v31_v2 = vand.u32 15, %v30_v1  ;;  %v32_v3 = vshra.s32 %v30_v1, 4  ;;  %v34_v4 = vshra.s32 %v30_v1, 8  ;;  %v36_v5 = vshra.s32 %v30_v1, 12  ;;  %v195_v37 = vld [vmem:[%s307_s2] ss:$0 sm:$0xff]  ;;  %209 = vmatprep.mubr.msk.bf16.mxu0 %vm217_vm4, %v216_v0 }
   0x3   :  { %v38_v6 = vshra.s32 %v30_v1, 16  ;;  %v40_v7 = vshra.s32 %v30_v1, 20  ;;  %v42_v8 = vshra.s32 %v30_v1, 24  ;;  %v194_v9 = vshrl.u32 %v30_v1, 28  ;;  %v196_v45 = vld [vmem:[%s308_s3] ss:$0 sm:$0xff] }
   0x4   :  { %v33_v11 = vand.u32 15, %v32_v3  ;;  %v35_v12 = vand.u32 15, %v34_v4  ;;  %v37_v13 = vand.u32 15, %v36_v5  ;;  %v79_v14 = vand.u32 15, %v78_v10  ;;  %26 = vst.msk [vmem:[#allocation2] sm:$0xff] %vm25_vm3, %v216_v0  ;;  %27 = vst.msk [vmem:[#allocation2 + $0x8] sm:$0xff] %vm25_vm3, %v216_v0 }
   0x5   :  { %v39_v15 = vand.u32 15, %v38_v6  ;;  %v41_v16 = vand.u32 15, %v40_v7  ;;  %v43_v17 = vand.u32 15, %v42_v8  ;;  %v51_v18 = vrot.slane %v194_v9, 2  ;;  %v198_v60 = vld [vmem:[%s307_s2 + $0x1] ss:$0 sm:$0xff] }
   0x6   :  { %v46_v19 = vrot.slane %v33_v11, 6  ;;  %v47_v20 = vrot.slane %v35_v12, 4  ;;  %v48_v21 = vrot.slane %v37_v13, 2  ;;  %v80_v22 = vshra.s32 %v78_v10, 4 }
   0x7   :  { %v49_v23 = vrot.slane %v41_v16, 6  ;;  %v50_v24 = vrot.slane %v43_v17, 4  ;;  %v82_v25 = vshra.s32 %v78_v10, 8  ;;  %v84_v26 = vshra.s32 %v78_v10, 12 }
   0x8   :  { %v53_v27 = vsel %vm52_vm0, %v31_v2, %v46_v19  ;;  %v81_v28 = vand.u32 15, %v80_v22  ;;  %v86_v29 = vshra.s32 %v78_v10, 16  ;;  %v88_v30 = vshra.s32 %v78_v10, 20  ;;  %v199_v2 = vld [vmem:[%s308_s3 + $0x1] ss:$0 sm:$0xff] }
   0x9   :  { %v55_v31 = vsel %vm54_vm1, %v53_v27, %v47_v20  ;;  %v58_v32 = vsel %vm52_vm0, %v39_v15, %v49_v23  ;;  %v83_v33 = vand.u32 15, %v82_v25  ;;  %v85_v34 = vand.u32 15, %v84_v26  ;;  %v185_v20 = vld [vmem:[%s309_s4 + $0x8] sm:$0xff] }
   0xa   :  { %v57_v35 = vsel %vm56_vm2, %v55_v31, %v48_v21  ;;  %v59_v36 = vsel %vm54_vm1, %v58_v32, %v50_v24  ;;  %v87_v38 = vand.u32 15, %v86_v29  ;;  %v89_v39 = vand.u32 15, %v88_v30 }
   0xb   :  { %v60_v40 = vsel %vm56_vm2, %v59_v36, %v51_v18  ;;  %v61_v41 = vcvt.s32.f32 %v57_v35  ;;  %v90_v42 = vshra.s32 %v78_v10, 24  ;;  %v197_v43 = vshrl.u32 %v78_v10, 28  ;;  %v215_v10 = vld [vmem:[%s306_s0] sm:$0xff]   ;;  %v124_v13 = vld [vmem:[#allocation2 + $0x8] sm:$0xff] }
   0xc   :  { %v62_v44 = vcvt.s32.f32 %v60_v40  ;;  %v94_v46 = vrot.slane %v81_v28, 6  ;;  %v95_v47 = vrot.slane %v83_v33, 4  ;;  %v96_v48 = vrot.slane %v85_v34, 2  ;;  %v123_v11 = vld [vmem:[#allocation2] sm:$0xff] }
   0xd   :  { %v68_v49 = vmul.f32 %v195_v37, %v61_v41  ;;  %v91_v50 = vand.u32 15, %v90_v42  ;;  %v97_v51 = vrot.slane %v89_v39, 6  ;;  %v99_v52 = vrot.slane %v197_v43, 2  ;;  %v184_v18 = vld [vmem:[%s309_s4] sm:$0xff] }
   0xe   :  { %v69_v53 = vmul.f32 %v195_v37, %v62_v44  ;;  %v100_v54 = vsel %vm52_vm0, %v79_v14, %v94_v46 }
   0xf   :  { %v75_v55 = vsub.f32 %v68_v49, %v196_v45  ;;  %v98_v56 = vrot.slane %v91_v50, 4  ;;  %v101_v57 = vsel %vm54_vm1, %v100_v54, %v95_v47  ;;  %v103_v58 = vsel %vm52_vm0, %v87_v38, %v97_v51 }
  0x10   :  { %v76_v59 = vsub.f32 %v69_v53, %v196_v45  ;;  %v102_v61 = vsel %vm56_vm2, %v101_v57, %v96_v48 }
  0x11   :  { %v104_v62 = vsel %vm54_vm1, %v103_v58, %v98_v56  ;;  %v106_v63 = vcvt.s32.f32 %v102_v61 }
  0x12   :  { %v77_v1 = vpack.c.bf16 %v76_v59, %v75_v55  ;;  %v105_v3 = vsel %vm56_vm2, %v104_v62, %v99_v52 }
  0x13   :  { %v107_v4 = vcvt.s32.f32 %v105_v3  ;;  %v113_v5 = vmul.f32 %v198_v60, %v106_v63 }
  0x14   :  { %206 = vmatpush3.bf16.msra.mxu0 %v77_v1 }
  0x15   :  { %207 = vmatprep.subr.bf16.mxu0 %v216_v0  ;;  %v114_v6 = vmul.f32 %v198_v60, %v107_v4  ;;  %v120_v7 = vsub.f32 %v113_v5, %v199_v2 }
  0x17   :  { %v121_v8 = vsub.f32 %v114_v6, %v199_v2 }
  0x19   :  { %v122_v9 = vpack.c.bf16 %v121_v8, %v120_v7 }
  0x1b   :  { %208 = vmatpush3.bf16.msra.mxu0 %v122_v9 }
  0x1e   :  { %210 = vmatmul.mubr.msk.bf16.vlgmr.msra.gmra.mrb[0].mxu0 %vm25_vm3, %v215_v10 }
  0xf1   :  { %v168_v12 = vpop.f32.mrb[0].mxu0 }
  0xf2   :  { %v175_v14 = vadd.f32 %v168_v12, %v123_v11  ;;  %v211_v15 = vpop.f32.mrb[1].mxu0 }
  0xf3   :  { %v171_v16 = vpop.f32.mrb[2].mxu0 }
  0xf4   :  { %177 = vst.msk [vmem:[#allocation2] sm:$0xff] %vm25_vm3, %v175_v14  ;;  %v176_v0 = vadd.f32 %v171_v16, %v124_v13  ;;  %v212_v17 = vpop.f32.mrb[3].mxu0 }
  0xf6   :  { %178 = vst.msk [vmem:[#allocation2 + $0x8] sm:$0xff] %vm25_vm3, %v176_v0 }
  0xfb   :  { %v182_v19 = vld [vmem:[#allocation2] sm:$0xff] }
  0xfc   :  { %v186_v21 = vadd.f32 %v184_v18, %v182_v19 }
  0xfd   :  { %v183_v22 = vld [vmem:[#allocation2 + $0x8] sm:$0xff] }
  0xfe   :  { %188 = vst.msk [vmem:[%s310_s5] sm:$0xff] %vm25_vm3, %v186_v21  ;;  %v187_v23 = vadd.f32 %v185_v20, %v183_v22 }
 0x100   :  { %189 = vst.msk [vmem:[%s310_s5 + $0x8] sm:$0xff] %vm25_vm3, %v187_v23 }

// kernel: llama_gptq_forward.17
= control target key start
LH: loop header
LB: loop body
LE: loop exit
PB: predicated region body
PF: predicated region fallthrough
CT: control target
= control target key end

     0   :  { %v159_v1 = vmov 0.0   ;;  %vm160_vm0 = vmmov 0   ;;  %s200_s0 = inlined_call_operand.vmem [shape: bf16[16,32], index: 0, kind: input, shape index: {}]   ;;  %s201_s1 = inlined_call_operand.vmem [shape: bf16[32,64], index: 1, kind: input, shape index: {}]   ;;  %s202_s2 = inlined_call_operand.hbm [shape: bf16[16,64], index: 2, kind: output, shape index: {}]  }
   0x1   :  { %v132_v0 = vld [vmem:[%s201_s1] sm:$0xff]   ;;  %119 = vmatprep.subr.bf16.mxu0 %v159_v1  ;;  %v133_v2 = vld [vmem:[%s201_s1 + $0x8] sm:$0xff]   ;;  %123 = vmatprep.mubr.msk.bf16.mxu0 %vm160_vm0, %v159_v1 }
   0x2   :  { %120 = vmatpush3.bf16.msra.mxu0 %v132_v0 }
   0x3   :  { %121 = vmatprep.subr.bf16.mxu0 %v159_v1 }
   0x4   :  { %7 = vsyncpa [#allocation3], 0  ;;  %v134_v3 = vld [vmem:[%s200_s0] sm:$0xff]   ;;  %vm36_vm1 = vcmask 261120   ;;  %s161_s15 = smov [#allocation2]   ;;  %vm89_vm2 = vcmask 519168  }
   0x5   :  { %s97_s16 = sshll.u32 %s161_s15, 4  ;;  %s98_s16 = int_to_ptr.vmem [resolvable:$true] %s97_s16 }
   0x6   :  { %122 = vmatpush3.bf16.msra.mxu0 %v133_v2  ;;  %s135_s1 = scalar_lea.vmem %s98_s16, 128  ;;  %p140_p1 = scmp.lt.s32.totalorder %s98_s16, %s98_s16 }
   0x7   :  { %p136_p0 = scmp.ne.s32.totalorder %s98_s16, %s135_s1  ;;  %p141_p2 = scmp.lt.s32.totalorder %s135_s1, %s135_s1 }
   0x9   :  { %124 = vmatmul.mubr.msk.bf16.vlgmr.msra.gmra.mrb[0].mxu0 %vm36_vm1, %v134_v3  ;;  %p142_p3 = por %p141_p2, %p140_p1 }
   0xb   :  { %p143_p4 = pnand %p142_p3, %p136_p0 }
  0xdc   :  { %v74_v4 = vpop.f32.mrb[0].mxu0 }
  0xdd   :  { %v114_v5 = vpack.c.bf16 %v74_v4, %v74_v4  ;;  %v125_v6 = vpop.f32.mrb[1].mxu0 }
  0xde   :  { %v77_v7 = vpop.f32.mrb[2].mxu0 }
  0xdf   :  { %90 = vst.msk [vmem:[#allocation2] sm:$0xf] %vm89_vm2, %v114_v5  ;;  %v115_v8 = vpack.c.bf16 %v77_v7, %v77_v7  ;;  %v126_v9 = vpop.f32.mrb[3].mxu0 }
  0xe1   :  { %91 = vst.msk [vmem:[#allocation2 + $0x4] sm:$0xf] %vm89_vm2, %v115_v8 }
  0xe2   :  { %146 = shalt.err (!%p143_p4)
}
  0xe3   :  { %s147_s18 = scalar_lea.hbm %s202_s2, 128 }
  0xe4   :  { %p148_p5 = scmp.ne.s32.totalorder %s202_s2, %s147_s18  ;;  %p151_p6 = scmp.lt.u32.totalorder %s147_s18, %s202_s2 }
  0xe6   :  { %p153_p7 = pnand %p151_p6, %p148_p5 }
  0xe8   :  { %156 = shalt.err (!%p153_p7)
}
  0xe9   :  { %s162_s23 = smov 64   ;;  %s163_s24 = smov 4  }
  0xea   :  { %103 = dma.vmem_to_hbm [thread:$0]  %s98_s16, 128, %s202_s2, [#allocation3], %s162_s23, %s162_s23, %s163_s24  }
  0xeb   :  { %157 = dma.done.wait [#allocation3], 128  }
  0xec   :  { %158 = vsyncadd [#allocation3], 4294967168 }
  0xed   :  { %107 = vsyncpa [#allocation3], 1 }

// kernel: llama_gptq_forward.14
= control target key start
LH: loop header
LB: loop body
LE: loop exit
PB: predicated region body
PF: predicated region fallthrough
CT: control target
= control target key end

     0   :  { %vm60_vm0 = vcmask 1041408   ;;  %vm63_vm1 = vcmask 1043456   ;;  %vm66_vm2 = vcmask 1045504   ;;  %v81_v1 = vlaneseq  ;;  %s381_s1 = inlined_call_operand.vmem [shape: s32[4,256], index: 1, kind: input, shape index: {}]   ;;  %s382_s0 = inlined_call_operand.vmem [shape: bf16[16,32], index: 0, kind: input, shape index: {}]   ;;  %s383_s2 = inlined_call_operand.vmem [shape: f32[2,256], index: 2, kind: input, shape index: {}]   ;;  %s384_s3 = inlined_call_operand.vmem [shape: f32[2,256], index: 3, kind: input, shape index: {}]   ;;  %s385_s4 = inlined_call_operand.vmem [shape: bf16[16,256], index: 4, kind: output, shape index: {}]  }
   0x1   :  { %v28_v0 = vld [vmem:[%s381_s1] sm:$0x33]  ;;  %v298_v6 = vmov 0   ;;  %v113_v49 = vld [vmem:[%s381_s1] sm:$0xcc]  ;;  %vm206_vm3 = vcmask 261120  }
   0x2   :  { %v29_v2 = vand.u32 15, %v28_v0  ;;  %v30_v3 = vshra.s32 %v28_v0, 4  ;;  %v32_v4 = vshra.s32 %v28_v0, 8  ;;  %v34_v5 = vshra.s32 %v28_v0, 12  ;;  %242 = vmatprep.mubr.bf16.mxu0 %v298_v6 }
   0x3   :  { %v36_v7 = vshra.s32 %v28_v0, 16  ;;  %v38_v8 = vshra.s32 %v28_v0, 20  ;;  %v40_v9 = vshra.s32 %v28_v0, 24  ;;  %v286_v10 = vshrl.u32 %v28_v0, 28 }
   0x4   :  { %v31_v11 = vand.u32 15, %v30_v3  ;;  %v33_v12 = vand.u32 15, %v32_v4  ;;  %v35_v13 = vand.u32 15, %v34_v5  ;;  %v44_v14 = vcombine.high %v29_v2, %v29_v2  ;;  %v79_v21 = vld [vmem:[%s383_s2] ss:$2 sm:$0x3] }
   0x5   :  { %v37_v15 = vand.u32 15, %v36_v7  ;;  %v39_v16 = vand.u32 15, %v38_v8  ;;  %v41_v17 = vand.u32 15, %v40_v9  ;;  %v57_v18 = vcombine.high %v286_v10, %v286_v10  ;;  %v95_v27 = vld [vmem:[%s384_s3] ss:$2 sm:$0x3] }
   0x6   :  { %v45_v19 = vcombine.high %v31_v11, %v31_v11  ;;  %v49_v20 = vcombine.high %v35_v13, %v35_v13  ;;  %v82_v22 = vshrl.u32 %v81_v1, 7  ;;  %v46_v23 = vrot.slane %v31_v11, 6  ;;  %v288_v7 = vld [vmem:[%s383_s2 + $0x1] ss:$2 sm:$0x3] }
   0x7   :  { %v52_v24 = vcombine.high %v37_v15, %v37_v15  ;;  %v53_v25 = vcombine.high %v39_v16, %v39_v16  ;;  %v59_v26 = vrot.slane %v57_v18, 2  ;;  %v48_v28 = vcombine.low %v33_v12, %v33_v12  ;;  %v289_v11 = vld [vmem:[%s384_s3 + $0x1] ss:$2 sm:$0x3] }
   0x8   :  { %v47_v29 = vrot.slane %v45_v19, 6  ;;  %v51_v30 = vrot.slane %v49_v20, 2  ;;  %v87_v31 = vsub.s32 1, %v82_v22  ;;  %v50_v32 = vrot.slane %v35_v13, 2 }
   0x9   :  { %v55_v33 = vrot.slane %v53_v25, 6  ;;  %v54_v34 = vrot.slane %v39_v16, 6  ;;  %v56_v35 = vcombine.low %v41_v17, %v41_v17  ;;  %v58_v36 = vrot.slane %v286_v10, 2 }
   0xa   :  { %v62_v37 = vsel %vm60_vm0, %v44_v14, %v47_v29  ;;  %v88_v38 = vrot.slane %v79_v21, %v87_v31  ;;  %v104_v39 = vrot.slane %v95_v27, %v87_v31  ;;  %v61_v40 = vsel %vm60_vm0, %v29_v2, %v46_v23 }
   0xb   :  { %v65_v41 = vsel %vm63_vm1, %v62_v37, %v33_v12  ;;  %v70_v42 = vsel %vm60_vm0, %v52_v24, %v55_v33  ;;  %v64_v43 = vsel %vm63_vm1, %v61_v40, %v48_v28  ;;  %v69_v44 = vsel %vm60_vm0, %v37_v15, %v54_v34 }
   0xc   :  { %v68_v45 = vsel %vm66_vm2, %v65_v41, %v51_v30  ;;  %v72_v46 = vsel %vm63_vm1, %v70_v42, %v41_v17  ;;  %v67_v47 = vsel %vm66_vm2, %v64_v43, %v50_v32  ;;  %v71_v48 = vsel %vm63_vm1, %v69_v44, %v56_v35 }
   0xd   :  { %v74_v50 = vsel %vm66_vm2, %v72_v46, %v59_v26  ;;  %v76_v51 = vcvt.s32.f32 %v68_v45  ;;  %v73_v52 = vsel %vm66_vm2, %v71_v48, %v58_v36  ;;  %v75_v53 = vcvt.s32.f32 %v67_v47 }
   0xe   :  { %v78_v54 = vcvt.s32.f32 %v74_v50  ;;  %v77_v55 = vcvt.s32.f32 %v73_v52  ;;  %v348_v56 = vsub.s32 0, %v82_v22  ;;  %v114_v57 = vand.u32 15, %v113_v49 }
   0xf   :  { %v92_v58 = vmul.f32 %v88_v38, %v76_v51  ;;  %v115_v59 = vshra.s32 %v113_v49, 4  ;;  %v117_v60 = vshra.s32 %v113_v49, 8  ;;  %v119_v61 = vshra.s32 %v113_v49, 12 }
  0x10   :  { %v94_v62 = vmul.f32 %v88_v38, %v78_v54  ;;  %v84_v63 = vrot.slane %v79_v21, %v348_v56  ;;  %v100_v0 = vrot.slane %v95_v27, %v348_v56  ;;  %v121_v1 = vshra.s32 %v113_v49, 16 }
  0x11   :  { %v108_v2 = vsub.f32 %v92_v58, %v104_v39  ;;  %v116_v3 = vand.u32 15, %v115_v59  ;;  %v118_v4 = vand.u32 15, %v117_v60  ;;  %v120_v5 = vand.u32 15, %v119_v61 }
  0x12   :  { %v110_v6 = vsub.f32 %v94_v62, %v104_v39  ;;  %v91_v8 = vmul.f32 %v84_v63, %v75_v53  ;;  %v93_v9 = vmul.f32 %v84_v63, %v77_v55  ;;  %v122_v10 = vand.u32 15, %v121_v1 }
  0x13   :  { %v123_v12 = vshra.s32 %v113_v49, 20  ;;  %v125_v13 = vshra.s32 %v113_v49, 24  ;;  %v287_v14 = vshrl.u32 %v113_v49, 28  ;;  %v129_v15 = vcombine.high %v114_v57, %v114_v57 }
  0x14   :  { %v112_v16 = vpack.c.bf16 %v110_v6, %v108_v2  ;;  %v107_v17 = vsub.f32 %v91_v8, %v100_v0  ;;  %v109_v18 = vsub.f32 %v93_v9, %v100_v0  ;;  %v132_v19 = vcombine.high %v116_v3, %v116_v3 }
  0x15   :  { %v124_v20 = vand.u32 15, %v123_v12  ;;  %v126_v21 = vand.u32 15, %v125_v13  ;;  %v131_v22 = vrot.slane %v129_v15, 2  ;;  %v133_v23 = vcombine.high %v118_v4, %v118_v4 }
  0x16   :  { %210 = vmatprep.subr.bf16.mxu0 %v112_v16  ;;  %v111_v24 = vpack.c.bf16 %v109_v18, %v107_v17  ;;  %v137_v25 = vcombine.high %v122_v10, %v122_v10  ;;  %v171_v26 = vrot.slane %v288_v7, %v87_v31  ;;  %v188_v27 = vrot.slane %v289_v11, %v87_v31 }
  0x17   :  { %v135_v28 = vrot.slane %v133_v23, 6  ;;  %v140_v29 = vcombine.high %v124_v20, %v124_v20  ;;  %v141_v30 = vcombine.high %v126_v21, %v126_v21  ;;  %v146_v32 = vsel %vm60_vm0, %v131_v22, %v132_v19 }
  0x18   :  { %211 = vmatpush1.bf16.msra.mxu0 %v111_v24  ;;  %v139_v33 = vrot.slane %v137_v25, 2  ;;  %v130_v34 = vrot.slane %v114_v57, 2  ;;  %v134_v35 = vrot.slane %v118_v4, 6  ;;  %v136_v36 = vcombine.low %v120_v5, %v120_v5  ;;  %v297_v4 = vld [vmem:[%s382_s0] sm:$0xff]  }
  0x19   :  { %v143_v37 = vrot.slane %v141_v30, 6  ;;  %v148_v38 = vsel %vm63_vm1, %v146_v32, %v135_v28  ;;  %v138_v39 = vrot.slane %v122_v10, 2  ;;  %v142_v40 = vrot.slane %v126_v21, 6 }
  0x1a   :  { %v150_v41 = vsel %vm66_vm2, %v148_v38, %v120_v5  ;;  %v152_v42 = vsel %vm60_vm0, %v139_v33, %v140_v29  ;;  %v144_v31 = vcombine.low %v287_v14, %v287_v14  ;;  %v145_v43 = vsel %vm60_vm0, %v130_v34, %v116_v3 }
  0x1b   :  { %v154_v44 = vsel %vm63_vm1, %v152_v42, %v143_v37  ;;  %v158_v45 = vcvt.s32.f32 %v150_v41  ;;  %v147_v46 = vsel %vm63_vm1, %v145_v43, %v134_v35  ;;  %v151_v47 = vsel %vm60_vm0, %v138_v39, %v124_v20 }
  0x1c   :  { %v156_v48 = vsel %vm66_vm2, %v154_v44, %v287_v14  ;;  %v149_v49 = vsel %vm66_vm2, %v147_v46, %v136_v36  ;;  %v153_v50 = vsel %vm63_vm1, %v151_v47, %v142_v40  ;;  %v167_v51 = vrot.slane %v288_v7, %v348_v56 }
  0x1d   :  { %v160_v52 = vcvt.s32.f32 %v156_v48  ;;  %v175_v53 = vmul.f32 %v171_v26, %v158_v45  ;;  %v155_v54 = vsel %vm66_vm2, %v153_v50, %v144_v31  ;;  %v157_v55 = vcvt.s32.f32 %v149_v49 }
  0x1e   :  { %v159_v57 = vcvt.s32.f32 %v155_v54  ;;  %v184_v58 = vrot.slane %v289_v11, %v348_v56 }
  0x1f   :  { %v177_v59 = vmul.f32 %v171_v26, %v160_v52  ;;  %v192_v60 = vsub.f32 %v175_v53, %v188_v27  ;;  %v174_v61 = vmul.f32 %v167_v51, %v157_v55 }
  0x20   :  { %v176_v62 = vmul.f32 %v167_v51, %v159_v57 }
  0x21   :  { %v194_v63 = vsub.f32 %v177_v59, %v188_v27  ;;  %v191_v0 = vsub.f32 %v174_v61, %v184_v58 }
  0x22   :  { %v193_v1 = vsub.f32 %v176_v62, %v184_v58 }
  0x23   :  { %v196_v2 = vpack.c.bf16 %v194_v63, %v192_v60 }
  0x24   :  { %v195_v3 = vpack.c.bf16 %v193_v1, %v191_v0 }
  0x25   :  { %212 = vmatprep.subr.bf16.mxu0 %v196_v2 }
  0x26   :  { %213 = vmatpush1.bf16.msra.mxu0 %v195_v3 }
  0x29   :  { %291 = vmatmul.mubr.msk.bf16.vlgmr.msra.gmra.mrb[0].mxu0 %vm206_vm3, %v297_v4 }
  0xfc   :  { %v244_v5 = vpop.f32.mrb[0].mxu0 }
  0xfd   :  { %v246_v6 = vpop.f32.mrb[1].mxu0 }
  0xfe   :  { %v294_v56 = vpack.c.bf16 %v246_v6, %v244_v5  ;;  %v248_v7 = vpop.f32.mrb[2].mxu0 }
  0xff   :  { %v250_v8 = vpop.f32.mrb[3].mxu0 }
 0x100   :  { %280 = vst [vmem:[%s385_s4] sm:$0xff] %v294_v56  ;;  %v295_v9 = vpack.c.bf16 %v250_v8, %v248_v7 }
 0x102   :  { %281 = vst [vmem:[%s385_s4 + $0x8] sm:$0xff] %v295_v9 }

// kernel: llama_gptq_forward.15
= control target key start
LH: loop header
LB: loop body
LE: loop exit
PB: predicated region body
PF: predicated region fallthrough
CT: control target
= control target key end

     0   :  { %vm172_vm0 = vcmask 1041408   ;;  %vm174_vm1 = vcmask 1043456   ;;  %vm176_vm2 = vcmask 1045504   ;;  %v660_v1 = vmov 0.0   ;;  %s858_s0 = inlined_call_operand.vmem [shape: bf16[16,256], index: 0, kind: input, shape index: {}, may-alias: {0,1}]   ;;  %s859_s1 = inlined_call_operand.vmem [shape: bf16[16,256], index: 1, kind: input, shape index: {}, may-alias: {0,1}]   ;;  %s860_s2 = inlined_call_operand.vmem [shape: s32[16,32], index: 2, kind: input, shape index: {}]   ;;  %s861_s3 = inlined_call_operand.vmem [shape: f32[8,32], index: 3, kind: input, shape index: {}]   ;;  %s862_s4 = inlined_call_operand.vmem [shape: f32[8,32], index: 4, kind: input, shape index: {}]   ;;  %s863_s5 = inlined_call_operand.vmem [shape: f32[16,32], index: 5, kind: input, shape index: {}]   ;;  %s864_s6 = inlined_call_operand.vmem [shape: f32[16,32], index: 6, kind: output, shape index: {}]  }
   0x1   :  { %v150_v0 = vld [vmem:[%s860_s2] sm:$0x3]  ;;  %630 = vmatprep.subr.bf16.mxu0 %v660_v1  ;;  %v198_v13 = vld [vmem:[%s860_s2 + $0x2] sm:$0x3]  ;;  %vm661_vm3 = vmmov 0   ;;  %vm122_vm4 = vcmask 261120  }
   0x2   :  { %v151_v2 = vand.u32 15, %v150_v0  ;;  %v152_v3 = vshra.s32 %v150_v0, 4  ;;  %v154_v4 = vshra.s32 %v150_v0, 8  ;;  %v156_v5 = vshra.s32 %v150_v0, 12  ;;  %646 = vmatprep.mubr.msk.bf16.mxu0 %vm661_vm3, %v660_v1  ;;  %v590_v36 = vld [vmem:[%s861_s3] ss:$0 sm:$0xff] }
   0x3   :  { %v158_v6 = vshra.s32 %v150_v0, 16  ;;  %v160_v7 = vshra.s32 %v150_v0, 20  ;;  %v162_v8 = vshra.s32 %v150_v0, 24  ;;  %v589_v9 = vshrl.u32 %v150_v0, 28  ;;  %v591_v44 = vld [vmem:[%s862_s4] ss:$0 sm:$0xff] }
   0x4   :  { %v153_v10 = vand.u32 15, %v152_v3  ;;  %v155_v11 = vand.u32 15, %v154_v4  ;;  %v157_v12 = vand.u32 15, %v156_v5  ;;  %v199_v21 = vand.u32 15, %v198_v13  ;;  %v243_v52 = vld [vmem:[%s860_s2 + $0x4] sm:$0x3] }
   0x5   :  { %v159_v14 = vand.u32 15, %v158_v6  ;;  %v161_v15 = vand.u32 15, %v160_v7  ;;  %v163_v16 = vand.u32 15, %v162_v8  ;;  %v171_v17 = vrot.slane %v589_v9, 2  ;;  %v593_v63 = vld [vmem:[%s861_s3 + $0x1] ss:$0 sm:$0xff] }
   0x6   :  { %v166_v18 = vrot.slane %v153_v10, 6  ;;  %v167_v19 = vrot.slane %v155_v11, 4  ;;  %v168_v20 = vrot.slane %v157_v12, 2  ;;  %v200_v24 = vshra.s32 %v198_v13, 4  ;;  %v594_v5 = vld [vmem:[%s862_s4 + $0x1] ss:$0 sm:$0xff] }
   0x7   :  { %v169_v22 = vrot.slane %v161_v15, 6  ;;  %v170_v23 = vrot.slane %v163_v16, 4  ;;  %v202_v25 = vshra.s32 %v198_v13, 8  ;;  %v204_v27 = vshra.s32 %v198_v13, 12  ;;  %v28_v12 = vld [vmem:[%s858_s0] sm:$0xf] }
   0x8   :  { %v173_v26 = vsel %vm172_vm0, %v151_v2, %v166_v18  ;;  %v206_v28 = vshra.s32 %v198_v13, 16  ;;  %v208_v29 = vshra.s32 %v198_v13, 20  ;;  %v201_v32 = vand.u32 15, %v200_v24  ;;  %29 = vst [vmem:[#allocation3] sm:$0xf] %v28_v12  ;;  %123 = vst.msk [vmem:[#allocation2] sm:$0xff] %vm122_vm4, %v660_v1 }
   0x9   :  { %v175_v30 = vsel %vm174_vm1, %v173_v26, %v167_v19  ;;  %v178_v31 = vsel %vm172_vm0, %v159_v14, %v169_v22  ;;  %v203_v33 = vand.u32 15, %v202_v25  ;;  %v205_v37 = vand.u32 15, %v204_v27  ;;  %v585_v18 = vld [vmem:[%s859_s1 + $0x4] sm:$0xf]  ;;  %v586_v19 = vld [vmem:[%s859_s1 + $0xc] sm:$0xf] }
   0xa   :  { %v177_v34 = vsel %vm176_vm2, %v175_v30, %v168_v20  ;;  %v179_v35 = vsel %vm174_vm1, %v178_v31, %v170_v23  ;;  %v207_v38 = vand.u32 15, %v206_v28  ;;  %v209_v41 = vand.u32 15, %v208_v29  ;;  %v288_v24 = vld [vmem:[%s860_s2 + $0x6] sm:$0x3]  ;;  %77 = vst [vmem:[#allocation4] sm:$0xf] %v585_v18 }
   0xb   :  { %v180_v39 = vsel %vm176_vm2, %v179_v35, %v171_v17  ;;  %v181_v40 = vcvt.s32.f32 %v177_v34  ;;  %v210_v42 = vshra.s32 %v198_v13, 24  ;;  %v592_v45 = vshrl.u32 %v198_v13, 28  ;;  %v30_v13 = vld [vmem:[%s858_s0 + $0x8] sm:$0xf]  ;;  %79 = vst [vmem:[#allocation4 + $0x4] sm:$0xf] %v586_v19 }
   0xc   :  { %v182_v43 = vcvt.s32.f32 %v180_v39  ;;  %v214_v46 = vrot.slane %v201_v32, 6  ;;  %v215_v47 = vrot.slane %v203_v33, 4  ;;  %v216_v50 = vrot.slane %v205_v37, 2  ;;  %31 = vst [vmem:[#allocation3 + $0x4] sm:$0xf] %v30_v13  ;;  %124 = vst.msk [vmem:[#allocation2 + $0x8] sm:$0xff] %vm122_vm4, %v660_v1 }
   0xd   :  { %v188_v48 = vmul.f32 %v590_v36, %v181_v40  ;;  %v211_v49 = vand.u32 15, %v210_v42  ;;  %v217_v51 = vrot.slane %v209_v41, 6  ;;  %v219_v54 = vrot.slane %v592_v45, 2  ;;  %v596_v40 = vld [vmem:[%s861_s3 + $0x2] ss:$0 sm:$0xff] }
   0xe   :  { %v189_v53 = vmul.f32 %v590_v36, %v182_v43  ;;  %v220_v55 = vsel %vm172_vm0, %v199_v21, %v214_v46  ;;  %v244_v56 = vand.u32 15, %v243_v52  ;;  %v245_v0 = vshra.s32 %v243_v52, 4 }
   0xf   :  { %v195_v57 = vsub.f32 %v188_v48, %v591_v44  ;;  %v218_v58 = vrot.slane %v211_v49, 4  ;;  %v221_v59 = vsel %vm174_vm1, %v220_v55, %v215_v47  ;;  %v223_v60 = vsel %vm172_vm0, %v207_v38, %v217_v51  ;;  %v597_v47 = vld [vmem:[%s862_s4 + $0x2] ss:$0 sm:$0xff] }
  0x10   :  { %v196_v61 = vsub.f32 %v189_v53, %v591_v44  ;;  %v222_v62 = vsel %vm176_vm2, %v221_v59, %v216_v50  ;;  %v247_v2 = vshra.s32 %v243_v52, 8  ;;  %v249_v6 = vshra.s32 %v243_v52, 12 }
  0x11   :  { %v224_v3 = vsel %vm174_vm1, %v223_v60, %v218_v58  ;;  %v226_v4 = vcvt.s32.f32 %v222_v62  ;;  %v251_v7 = vshra.s32 %v243_v52, 16  ;;  %v246_v10 = vand.u32 15, %v245_v0 }
  0x12   :  { %v197_v8 = vpack.c.bf16 %v196_v61, %v195_v57  ;;  %v225_v9 = vsel %vm176_vm2, %v224_v3, %v219_v54  ;;  %v248_v11 = vand.u32 15, %v247_v2  ;;  %v250_v16 = vand.u32 15, %v249_v6 }
  0x13   :  { %v227_v14 = vcvt.s32.f32 %v225_v9  ;;  %v233_v15 = vmul.f32 %v593_v63, %v226_v4  ;;  %v252_v17 = vand.u32 15, %v251_v7  ;;  %v253_v20 = vshra.s32 %v243_v52, 20 }
  0x14   :  { %631 = vmatpush3.bf16.msra.mxu0 %v197_v8  ;;  %v255_v21 = vshra.s32 %v243_v52, 24  ;;  %v595_v22 = vshrl.u32 %v243_v52, 28  ;;  %v259_v23 = vrot.slane %v246_v10, 6  ;;  %v260_v27 = vrot.slane %v248_v11, 4 }
  0x15   :  { %632 = vmatprep.subr.bf16.mxu0 %v660_v1  ;;  %v234_v25 = vmul.f32 %v593_v63, %v227_v14  ;;  %v240_v26 = vsub.f32 %v233_v15, %v594_v5  ;;  %v261_v28 = vrot.slane %v250_v16, 2  ;;  %v254_v29 = vand.u32 15, %v253_v20  ;;  %v333_v63 = vld [vmem:[%s860_s2 + $0x8] sm:$0x3]  ;;  %v599_v16 = vld [vmem:[%s861_s3 + $0x3] ss:$0 sm:$0xff] }
  0x16   :  { %v256_v30 = vand.u32 15, %v255_v21  ;;  %v264_v31 = vrot.slane %v595_v22, 2  ;;  %v265_v32 = vsel %vm172_vm0, %v244_v56, %v259_v23  ;;  %v289_v35 = vand.u32 15, %v288_v24 }
  0x17   :  { %v241_v33 = vsub.f32 %v234_v25, %v594_v5  ;;  %v266_v34 = vsel %vm174_vm1, %v265_v32, %v260_v27  ;;  %v290_v36 = vshra.s32 %v288_v24, 4  ;;  %v262_v37 = vrot.slane %v254_v29, 6 }
  0x18   :  { %v263_v38 = vrot.slane %v256_v30, 4  ;;  %v267_v39 = vsel %vm176_vm2, %v266_v34, %v261_v28  ;;  %v292_v41 = vshra.s32 %v288_v24, 8  ;;  %v294_v45 = vshra.s32 %v288_v24, 12 }
  0x19   :  { %v242_v42 = vpack.c.bf16 %v241_v33, %v240_v26  ;;  %v271_v43 = vcvt.s32.f32 %v267_v39  ;;  %v291_v44 = vand.u32 15, %v290_v36  ;;  %v268_v46 = vsel %vm172_vm0, %v252_v17, %v262_v37 }
  0x1a   :  { %v293_v48 = vand.u32 15, %v292_v41  ;;  %v296_v49 = vshra.s32 %v288_v24, 16  ;;  %v298_v50 = vshra.s32 %v288_v24, 20  ;;  %v269_v51 = vsel %vm174_vm1, %v268_v46, %v263_v38 }
  0x1b   :  { %633 = vmatpush3.bf16.msra.mxu0 %v242_v42  ;;  %v278_v52 = vmul.f32 %v596_v40, %v271_v43  ;;  %v295_v53 = vand.u32 15, %v294_v45  ;;  %v300_v54 = vshra.s32 %v288_v24, 24  ;;  %v270_v55 = vsel %vm176_vm2, %v269_v51, %v264_v31 }
  0x1c   :  { %634 = vmatprep.subr.bf16.mxu0 %v660_v1  ;;  %v297_v56 = vand.u32 15, %v296_v49  ;;  %v299_v57 = vand.u32 15, %v298_v50  ;;  %v598_v58 = vshrl.u32 %v288_v24, 28  ;;  %v272_v59 = vcvt.s32.f32 %v270_v55  ;;  %v600_v24 = vld [vmem:[%s862_s4 + $0x3] ss:$0 sm:$0xff] }
  0x1d   :  { %v285_v60 = vsub.f32 %v278_v52, %v597_v47  ;;  %v301_v61 = vand.u32 15, %v300_v54  ;;  %v304_v62 = vrot.slane %v291_v44, 6  ;;  %v305_v0 = vrot.slane %v293_v48, 4  ;;  %v602_v50 = vld [vmem:[%s861_s3 + $0x4] ss:$0 sm:$0xff] }
  0x1e   :  { %v306_v2 = vrot.slane %v295_v53, 2  ;;  %v307_v3 = vrot.slane %v299_v57, 6  ;;  %v309_v4 = vrot.slane %v598_v58, 2  ;;  %v279_v5 = vmul.f32 %v596_v40, %v272_v59  ;;  %v603_v58 = vld [vmem:[%s862_s4 + $0x4] ss:$0 sm:$0xff] }
  0x1f   :  { %v308_v6 = vrot.slane %v301_v61, 4  ;;  %v310_v7 = vsel %vm172_vm0, %v289_v35, %v304_v62  ;;  %v334_v8 = vand.u32 15, %v333_v63  ;;  %v335_v11 = vshra.s32 %v333_v63, 4  ;;  %v378_v35 = vld [vmem:[%s860_s2 + $0xa] sm:$0x3] }
  0x20   :  { %v311_v9 = vsel %vm174_vm1, %v310_v7, %v305_v0  ;;  %v313_v10 = vsel %vm172_vm0, %v297_v56, %v307_v3  ;;  %v337_v12 = vshra.s32 %v333_v63, 8  ;;  %v286_v13 = vsub.f32 %v279_v5, %v597_v47  ;;  %v423_v7 = vld [vmem:[%s860_s2 + $0xc] sm:$0x3] }
  0x21   :  { %v312_v14 = vsel %vm176_vm2, %v311_v9, %v306_v2  ;;  %v314_v15 = vsel %vm174_vm1, %v313_v10, %v308_v6  ;;  %v339_v17 = vshra.s32 %v333_v63, 12  ;;  %v336_v20 = vand.u32 15, %v335_v11 }
  0x22   :  { %v315_v18 = vsel %vm176_vm2, %v314_v15, %v309_v4  ;;  %v316_v19 = vcvt.s32.f32 %v312_v14  ;;  %v338_v21 = vand.u32 15, %v337_v12  ;;  %v287_v22 = vpack.c.bf16 %v286_v13, %v285_v60 }
  0x23   :  { %v317_v23 = vcvt.s32.f32 %v315_v18  ;;  %v340_v25 = vand.u32 15, %v339_v17  ;;  %v341_v26 = vshra.s32 %v333_v63, 16  ;;  %v343_v28 = vshra.s32 %v333_v63, 20 }
  0x24   :  { %v323_v27 = vmul.f32 %v599_v16, %v316_v19  ;;  %v345_v29 = vshra.s32 %v333_v63, 24  ;;  %v601_v30 = vshrl.u32 %v333_v63, 28  ;;  %635 = vmatpush3.bf16.msra.mxu0 %v287_v22  ;;  %v349_v33 = vrot.slane %v336_v20, 6 }
  0x25   :  { %v324_v31 = vmul.f32 %v599_v16, %v317_v23  ;;  %v342_v32 = vand.u32 15, %v341_v26  ;;  %v350_v34 = vrot.slane %v338_v21, 4  ;;  %636 = vmatprep.subr.bf16.mxu0 %v660_v1  ;;  %v344_v37 = vand.u32 15, %v343_v28  ;;  %v605_v23 = vld [vmem:[%s861_s3 + $0x5] ss:$0 sm:$0xff] }
  0x26   :  { %v330_v36 = vsub.f32 %v323_v27, %v600_v24  ;;  %v346_v38 = vand.u32 15, %v345_v29  ;;  %v351_v39 = vrot.slane %v340_v25, 2  ;;  %v354_v41 = vrot.slane %v601_v30, 2 }
  0x27   :  { %v331_v40 = vsub.f32 %v324_v31, %v600_v24  ;;  %v355_v42 = vsel %vm172_vm0, %v334_v8, %v349_v33  ;;  %v379_v43 = vand.u32 15, %v378_v35  ;;  %v352_v44 = vrot.slane %v344_v37, 6  ;;  %v606_v31 = vld [vmem:[%s862_s4 + $0x5] ss:$0 sm:$0xff] }
  0x28   :  { %v353_v45 = vrot.slane %v346_v38, 4  ;;  %v356_v46 = vsel %vm174_vm1, %v355_v42, %v350_v34  ;;  %v380_v47 = vshra.s32 %v378_v35, 4  ;;  %v382_v51 = vshra.s32 %v378_v35, 8 }
  0x29   :  { %v332_v48 = vpack.c.bf16 %v331_v40, %v330_v36  ;;  %v357_v49 = vsel %vm176_vm2, %v356_v46, %v351_v39  ;;  %v384_v52 = vshra.s32 %v378_v35, 12  ;;  %v358_v53 = vsel %vm172_vm0, %v342_v32, %v352_v44  ;;  %v468_v46 = vld [vmem:[%s860_s2 + $0xe] sm:$0x3] }
  0x2a   :  { %v361_v54 = vcvt.s32.f32 %v357_v49  ;;  %v381_v55 = vand.u32 15, %v380_v47  ;;  %v386_v56 = vshra.s32 %v378_v35, 16  ;;  %v359_v57 = vsel %vm174_vm1, %v358_v53, %v353_v45 }
  0x2b   :  { %637 = vmatpush3.bf16.msra.mxu0 %v332_v48  ;;  %v383_v59 = vand.u32 15, %v382_v51  ;;  %v385_v60 = vand.u32 15, %v384_v52  ;;  %v388_v61 = vshra.s32 %v378_v35, 20  ;;  %v360_v62 = vsel %vm176_vm2, %v359_v57, %v354_v41  ;;  %v608_v57 = vld [vmem:[%s861_s3 + $0x6] ss:$0 sm:$0xff] }
  0x2c   :  { %638 = vmatprep.subr.bf16.mxu0 %v660_v1  ;;  %v368_v63 = vmul.f32 %v602_v50, %v361_v54  ;;  %v387_v0 = vand.u32 15, %v386_v56  ;;  %v390_v2 = vshra.s32 %v378_v35, 24  ;;  %v362_v3 = vcvt.s32.f32 %v360_v62 }
  0x2d   :  { %v389_v4 = vand.u32 15, %v388_v61  ;;  %v604_v5 = vshrl.u32 %v378_v35, 28  ;;  %v394_v6 = vrot.slane %v381_v55, 6  ;;  %v395_v10 = vrot.slane %v383_v59, 4 }
  0x2e   :  { %v375_v8 = vsub.f32 %v368_v63, %v603_v58  ;;  %v391_v9 = vand.u32 15, %v390_v2  ;;  %v396_v11 = vrot.slane %v385_v60, 2  ;;  %v369_v12 = vmul.f32 %v602_v50, %v362_v3  ;;  %v609_v2 = vld [vmem:[%s862_s4 + $0x6] ss:$0 sm:$0xff] }
  0x2f   :  { %v397_v13 = vrot.slane %v389_v4, 6  ;;  %v399_v14 = vrot.slane %v604_v5, 2  ;;  %v400_v15 = vsel %vm172_vm0, %v379_v43, %v394_v6  ;;  %v424_v18 = vand.u32 15, %v423_v7 }
  0x30   :  { %v398_v16 = vrot.slane %v391_v9, 4  ;;  %v401_v17 = vsel %vm174_vm1, %v400_v15, %v395_v10  ;;  %v425_v19 = vshra.s32 %v423_v7, 4  ;;  %v376_v20 = vsub.f32 %v369_v12, %v603_v58 }
  0x31   :  { %v402_v21 = vsel %vm176_vm2, %v401_v17, %v396_v11  ;;  %v403_v22 = vsel %vm172_vm0, %v387_v0, %v397_v13  ;;  %v427_v24 = vshra.s32 %v423_v7, 8  ;;  %v429_v28 = vshra.s32 %v423_v7, 12 }
  0x32   :  { %v404_v25 = vsel %vm174_vm1, %v403_v22, %v398_v16  ;;  %v406_v26 = vcvt.s32.f32 %v402_v21  ;;  %v426_v27 = vand.u32 15, %v425_v19  ;;  %v377_v29 = vpack.c.bf16 %v376_v20, %v375_v8 }
  0x33   :  { %v405_v30 = vsel %vm176_vm2, %v404_v25, %v399_v14  ;;  %v428_v32 = vand.u32 15, %v427_v24  ;;  %v431_v33 = vshra.s32 %v423_v7, 16  ;;  %v430_v36 = vand.u32 15, %v429_v28  ;;  %v614_v14 = vld [vmem:[#allocation3] sm:$0xff]  }
  0x34   :  { %v407_v34 = vcvt.s32.f32 %v405_v30  ;;  %v413_v35 = vmul.f32 %v605_v23, %v406_v26  ;;  %v433_v37 = vshra.s32 %v423_v7, 20  ;;  %639 = vmatpush3.bf16.msra.mxu0 %v377_v29  ;;  %v435_v39 = vshra.s32 %v423_v7, 24 }
  0x35   :  { %v432_v38 = vand.u32 15, %v431_v33  ;;  %v607_v40 = vshrl.u32 %v423_v7, 28  ;;  %v439_v41 = vrot.slane %v426_v27, 6  ;;  %640 = vmatprep.subr.bf16.mxu0 %v660_v1  ;;  %v440_v45 = vrot.slane %v428_v32, 4  ;;  %v611_v32 = vld [vmem:[%s861_s3 + $0x7] ss:$0 sm:$0xff] }
  0x36   :  { %v414_v42 = vmul.f32 %v605_v23, %v407_v34  ;;  %v420_v43 = vsub.f32 %v413_v35, %v606_v31  ;;  %v434_v44 = vand.u32 15, %v433_v37  ;;  %v436_v47 = vand.u32 15, %v435_v39  ;;  %v612_v39 = vld [vmem:[%s862_s4 + $0x7] ss:$0 sm:$0xff] }
  0x37   :  { %v441_v48 = vrot.slane %v430_v36, 2  ;;  %v444_v49 = vrot.slane %v607_v40, 2  ;;  %v445_v50 = vsel %vm172_vm0, %v424_v18, %v439_v41  ;;  %v469_v54 = vand.u32 15, %v468_v46 }
  0x38   :  { %v421_v51 = vsub.f32 %v414_v42, %v606_v31  ;;  %v442_v52 = vrot.slane %v434_v44, 6  ;;  %v446_v53 = vsel %vm174_vm1, %v445_v50, %v440_v45  ;;  %v443_v55 = vrot.slane %v436_v47, 4  ;;  %v618_v50 = vld [vmem:[#allocation4] sm:$0xff]  }
  0x39   :  { %v447_v56 = vsel %vm176_vm2, %v446_v53, %v441_v48  ;;  %v470_v58 = vshra.s32 %v468_v46, 4  ;;  %v472_v59 = vshra.s32 %v468_v46, 8  ;;  %v474_v63 = vshra.s32 %v468_v46, 12 }
  0x3a   :  { %v422_v60 = vpack.c.bf16 %v421_v51, %v420_v43  ;;  %v448_v61 = vsel %vm172_vm0, %v432_v38, %v442_v52  ;;  %v451_v62 = vcvt.s32.f32 %v447_v56  ;;  %v476_v5 = vshra.s32 %v468_v46, 16 }
  0x3b   :  { %v449_v0 = vsel %vm174_vm1, %v448_v61, %v443_v55  ;;  %v471_v3 = vand.u32 15, %v470_v58  ;;  %v473_v4 = vand.u32 15, %v472_v59  ;;  %v475_v8 = vand.u32 15, %v474_v63  ;;  %v513_v59 = vld [vmem:[#allocation2] sm:$0xff]  ;;  %v514_v61 = vld [vmem:[#allocation2 + $0x8] sm:$0xff] }
  0x3c   :  { %641 = vmatpush3.bf16.msra.mxu0 %v422_v60  ;;  %v450_v6 = vsel %vm176_vm2, %v449_v0, %v444_v49  ;;  %v458_v7 = vmul.f32 %v608_v57, %v451_v62  ;;  %v478_v9 = vshra.s32 %v468_v46, 20  ;;  %v477_v11 = vand.u32 15, %v476_v5 }
  0x3d   :  { %642 = vmatprep.subr.bf16.mxu0 %v660_v1  ;;  %v452_v10 = vcvt.s32.f32 %v450_v6  ;;  %v480_v12 = vshra.s32 %v468_v46, 24  ;;  %v610_v13 = vshrl.u32 %v468_v46, 28  ;;  %v484_v17 = vrot.slane %v471_v3, 6  ;;  %v567_v6 = vld [vmem:[%s863_s5 + $0x8] sm:$0xff] }
  0x3e   :  { %v465_v15 = vsub.f32 %v458_v7, %v609_v2  ;;  %v479_v16 = vand.u32 15, %v478_v9  ;;  %v485_v18 = vrot.slane %v473_v4, 4  ;;  %v486_v21 = vrot.slane %v475_v8, 2  ;;  %v566_v4 = vld [vmem:[%s863_s5] sm:$0xff] }
  0x3f   :  { %v459_v19 = vmul.f32 %v608_v57, %v452_v10  ;;  %v481_v20 = vand.u32 15, %v480_v12  ;;  %v489_v22 = vrot.slane %v610_v13, 2  ;;  %v490_v24 = vsel %vm172_vm0, %v469_v54, %v484_v17 }
  0x40   :  { %v487_v23 = vrot.slane %v479_v16, 6  ;;  %v615_v25 = vunpack.c.l.bf16 %v614_v14  ;;  %v616_v26 = vunpack.c.h.bf16 %v614_v14  ;;  %v491_v29 = vsel %vm174_vm1, %v490_v24, %v485_v18 }
  0x41   :  { %v466_v27 = vsub.f32 %v459_v19, %v609_v2  ;;  %v488_v28 = vrot.slane %v481_v20, 4  ;;  %v492_v30 = vsel %vm176_vm2, %v491_v29, %v486_v21  ;;  %v619_v51 = vunpack.c.l.bf16 %v618_v50 }
  0x42   :  { %v493_v31 = vsel %vm172_vm0, %v477_v11, %v487_v23  ;;  %v587_v33 = vmul.f32 -1.442695, %v615_v25  ;;  %v496_v36 = vcvt.s32.f32 %v492_v30  ;;  %v588_v37 = vmul.f32 -1.442695, %v616_v26 }
  0x43   :  { %v467_v34 = vpack.c.bf16 %v466_v27, %v465_v15  ;;  %v494_v35 = vsel %vm174_vm1, %v493_v31, %v488_v28  ;;  %v620_v53 = vunpack.c.h.bf16 %v618_v50 }
  0x44   :  { %v495_v38 = vsel %vm176_vm2, %v494_v35, %v489_v22  ;;  %652 = vpow2.f32 %v587_v33  ;;  %v503_v41 = vmul.f32 %v611_v32, %v496_v36 }
  0x45   :  { %643 = vmatpush3.bf16.msra.mxu0 %v467_v34  ;;  %v497_v40 = vcvt.s32.f32 %v495_v38  ;;  %654 = vpow2.f32 %v588_v37 }
  0x46   :  { %644 = vmatprep.subr.bf16.mxu0 %v660_v1  ;;  %v510_v43 = vsub.f32 %v503_v41, %v612_v39 }
  0x47   :  { %v504_v42 = vmul.f32 %v611_v32, %v497_v40 }
  0x49   :  { %v511_v44 = vsub.f32 %v504_v42, %v612_v39 }
  0x4b   :  { %v512_v45 = vpack.c.bf16 %v511_v44, %v510_v43 }
  0x4d   :  { %645 = vmatpush3.bf16.msra.mxu0 %v512_v45 }
  0x4e   :  { %v653_v46 = vpop.eup %652 }
  0x4f   :  { %v655_v47 = vpop.eup %654  ;;  %v139_v48 = vadd.f32 1.0, %v653_v46 }
  0x50   :  { %v140_v49 = vadd.f32 1.0, %v655_v47 }
  0x51   :  { %656 = vrcp.f32 %v139_v48 }
  0x52   :  { %658 = vrcp.f32 %v140_v49 }
  0x5b   :  { %v657_v52 = vpop.eup %656 }
  0x5c   :  { %v659_v54 = vpop.eup %658  ;;  %v145_v55 = vmul.f32 %v657_v52, %v615_v25 }
  0x5d   :  { %v146_v56 = vmul.f32 %v659_v54, %v616_v26 }
  0x5e   :  { %v147_v57 = vmul.f32 %v619_v51, %v145_v55 }
  0x5f   :  { %v148_v1 = vmul.f32 %v620_v53, %v146_v56 }
  0x61   :  { %v149_v58 = vpack.c.bf16 %v148_v1, %v147_v57 }
  0x63   :  { %647 = vmatmul.mubr.bf16.vlgmr.msra.gmra.mrb[0].mxu0 %v149_v58 }
 0x136   :  { %v549_v60 = vpop.f32.mrb[0].mxu0 }
 0x137   :  { %v556_v62 = vadd.f32 %v549_v60, %v513_v59  ;;  %v648_v63 = vpop.f32.mrb[1].mxu0 }
 0x138   :  { %v552_v0 = vpop.f32.mrb[2].mxu0 }
 0x139   :  { %559 = vst.msk [vmem:[#allocation2] sm:$0xff] %vm122_vm4, %v556_v62  ;;  %v557_v2 = vadd.f32 %v552_v0, %v514_v61  ;;  %v649_v3 = vpop.f32.mrb[3].mxu0 }
 0x13b   :  { %560 = vst.msk [vmem:[#allocation2 + $0x8] sm:$0xff] %vm122_vm4, %v557_v2 }
 0x140   :  { %v564_v5 = vld [vmem:[#allocation2] sm:$0xff] }
 0x141   :  { %v568_v7 = vadd.f32 %v566_v4, %v564_v5 }
 0x142   :  { %v565_v8 = vld [vmem:[#allocation2 + $0x8] sm:$0xff] }
 0x143   :  { %570 = vst.msk [vmem:[%s864_s6] sm:$0xff] %vm122_vm4, %v568_v7  ;;  %v569_v9 = vadd.f32 %v567_v6, %v565_v8 }
 0x145   :  { %571 = vst.msk [vmem:[%s864_s6 + $0x8] sm:$0xff] %vm122_vm4, %v569_v9 }

</bundles_post_ra>
